<compile_context>
chip_gen: v5e
topology: v5e:2x2
jax: 0.10.0
libtpu: 0.0.40
codegen_flags: <defaults>
</compile_context>

<pallas_src>
import functools
import math

import jax
import jax.numpy as jnp
from jax import lax
from jax.experimental import pallas as pl
from jax.experimental.pallas import tpu as pltpu


def _default_vmem_limit():
    """Generation-aware scoped-VMEM budget (v5e/v6e: ~96MB, v7x: ~48MB)."""
    try:
        cap = pltpu.get_tpu_info().vmem_capacity_bytes
    except Exception:                       # conservative fallback, safe on v7x
        cap = 64 * 1024 * 1024
    return min((cap * 3) // 4, 100 * 1024 * 1024)


_VMEM_LIMIT = _default_vmem_limit()


# ============================ Pallas kernels ============================

def _fused_block_kernel(x_ref, m_ref,
                        wqkv_ref, bqkv_ref, wo_ref, bo_ref,
                        ln1g_ref, ln1b_ref, ff1w_ref, ff1b_ref,
                        ff2w_ref, ff2b_ref, ln2g_ref, ln2b_ref,
                        o_ref, *, num_heads):
    """One post-norm transformer encoder block, whole batch per grid step."""
    nb = x_ref.shape[1]                    # sequences handled by this step
    d = x_ref.shape[3]
    dh = d // num_heads
    scale = 1.0 / math.sqrt(dh)

    # weights loaded once per grid step (resident across the batch loop)
    wqkv = wqkv_ref[0]                     # (D, 3D) bf16
    bqkv = bqkv_ref[0]                     # (1, 3D) f32
    wo = wo_ref[0]                         # (D, D)  bf16
    bo = bo_ref[0]                         # (1, D)
    g1, b1 = ln1g_ref[0], ln1b_ref[0]
    w1, c1 = ff1w_ref[0], ff1b_ref[0]      # (D, F) bf16 / (1, F)
    w2, c2 = ff2w_ref[0], ff2b_ref[0]      # (F, D) bf16 / (1, D)
    g2, b2 = ln2g_ref[0], ln2b_ref[0]

    def _ln(z, g_, b_):                    # LayerNorm in f32
        mu = jnp.mean(z, axis=-1, keepdims=True)
        var = jnp.mean(jnp.square(z - mu), axis=-1, keepdims=True)
        return (z - mu) * lax.rsqrt(var + 1e-5) * g_ + b_

    # TODO(synk): at production sizes flatten to (nb*L, D) row slabs (with L
    # padded to a multiple of 8) instead of this static per-sequence loop.
    for bi in range(nb):
        x = x_ref[0, bi]                   # (L, D) f32
        mask = m_ref[bi]                   # (1, L) additive key-padding mask

        # ---- fused QKV projection (bf16 MXU operands, f32 accumulate) ----
        qkv = jnp.dot(x.astype(jnp.bfloat16), wqkv,
                      preferred_element_type=jnp.float32) + bqkv      # (L, 3D)

        heads = []
        for h in range(num_heads):         # static unroll (small H)
            qh = qkv[:, h * dh:(h + 1) * dh]
            kh = qkv[:, d + h * dh:d + (h + 1) * dh]
            vh = qkv[:, 2 * d + h * dh:2 * d + (h + 1) * dh]
            # q @ k^T without an explicit transpose (contract last dims)
            s = lax.dot_general(qh.astype(jnp.bfloat16),
                                kh.astype(jnp.bfloat16),
                                (((1,), (1,)), ((), ())),
                                preferred_element_type=jnp.float32) * scale
            s = s + mask                   # f32 mask / softmax math
            s = s - jnp.max(s, axis=-1, keepdims=True)
            p = jnp.exp(s)
            p = p * pl.reciprocal(jnp.sum(p, axis=-1, keepdims=True),
                                  approx=True)
            heads.append(jnp.dot(p.astype(jnp.bfloat16),
                                 vh.astype(jnp.bfloat16),
                                 preferred_element_type=jnp.float32))  # (L, dh)

        # heads along lanes -> single (L,D)@(D,D) output projection
        attn = jnp.concatenate(heads, axis=-1)                         # (L, D)
        attn = jnp.dot(attn.astype(jnp.bfloat16), wo,
                       preferred_element_type=jnp.float32) + bo

        h1 = _ln(x + attn, g1, b1)

        # ---- feed forward (intermediate stays in vregs/VMEM) ----
        ff = jnp.dot(h1.astype(jnp.bfloat16), w1,
                     preferred_element_type=jnp.float32) + c1
        ff = jnp.maximum(ff, 0.0)
        ff = jnp.dot(ff.astype(jnp.bfloat16), w2,
                     preferred_element_type=jnp.float32) + c2

        o_ref[0, bi] = _ln(h1 + ff, g2, b2)


def fused_transformer_block(x, mask, wp, num_heads, *, mask_per_group):
    """x: (G, NB, L, D); wp leading dim is G (per-group) or 1 (shared).

    mask_per_group=False: mask is (NB, 1, L), shared by all grid steps.
    mask_per_group=True : mask is (G, 1, L), one row per grid step (NB == 1).
    """
    g, nb, l, d = x.shape
    gw = wp["wqkv"].shape[0]
    f = wp["ff1_w"].shape[-1]

    if gw == 1:
        wmap = lambda i: (0, 0, 0)          # weights resident across all steps
    else:
        assert gw == g
        wmap = lambda i: (i, 0, 0)
    xmap = lambda i: (i, 0, 0, 0)

    if mask_per_group:
        assert nb == 1 and mask.shape == (g, 1, l)
        mspec = pl.BlockSpec((1, 1, l), lambda i: (i, 0, 0))
    else:
        assert mask.shape == (nb, 1, l)
        mspec = pl.BlockSpec((nb, 1, l), lambda i: (0, 0, 0))   # not tiled

    kern = functools.partial(_fused_block_kernel, num_heads=num_heads)
    return pl.pallas_call(
        kern,
        out_shape=jax.ShapeDtypeStruct((g, nb, l, d), jnp.float32),
        grid=(g,),
        in_specs=[
            pl.BlockSpec((1, nb, l, d), xmap),     # x
            mspec,                                  # additive key mask
            pl.BlockSpec((1, d, 3 * d), wmap),      # wqkv (bf16)
            pl.BlockSpec((1, 1, 3 * d), wmap),      # bqkv
            pl.BlockSpec((1, d, d), wmap),          # wo (bf16)
            pl.BlockSpec((1, 1, d), wmap),          # bo
            pl.BlockSpec((1, 1, d), wmap),          # ln1_g
            pl.BlockSpec((1, 1, d), wmap),          # ln1_b
            pl.BlockSpec((1, d, f), wmap),          # ff1_w (bf16)
            pl.BlockSpec((1, 1, f), wmap),          # ff1_b
            pl.BlockSpec((1, f, d), wmap),          # ff2_w (bf16)
            pl.BlockSpec((1, 1, d), wmap),          # ff2_b
            pl.BlockSpec((1, 1, d), wmap),          # ln2_g
            pl.BlockSpec((1, 1, d), wmap),          # ln2_b
        ],
        out_specs=pl.BlockSpec((1, nb, l, d), xmap),
        compiler_params=pltpu.CompilerParams(
            dimension_semantics=("parallel",),
            vmem_limit_bytes=_VMEM_LIMIT),
    )(x, mask, wp["wqkv"], wp["bqkv"], wp["wo"], wp["bo"],
      wp["ln1_g"], wp["ln1_b"], wp["ff1_w"], wp["ff1_b"],
      wp["ff2_w"], wp["ff2_b"], wp["ln2_g"], wp["ln2_b"])


def _featurize_kernel(style_ref, text0_ref, taux_ref,
                      ws_ref, bs_ref, wt_ref, bt_ref,
                      wg_ref, bg_ref, wp_ref, bp_ref,
                      o_ref, *, td, n_aux):
    """Fused style / text / gate-softmax / prompt featurisation (one row)."""
    st = style_ref[0]                       # (S, style_dim)
    t0 = text0_ref[0]                       # (S, text_dim)
    ta = taux_ref[0]                        # (S, n_aux * text_dim)

    style_e = jnp.dot(st, ws_ref[...],
                      preferred_element_type=jnp.float32) + bs_ref[...]
    text_e = jnp.dot(t0, wt_ref[...],
                     preferred_element_type=jnp.float32) + bt_ref[...]

    # gate: single matmul over the concatenated aux slab (torch Linear-on-concat)
    glog = jnp.dot(ta, wg_ref[...],
                   preferred_element_type=jnp.float32) + bg_ref[...]   # (S, n_aux)
    glog = glog - jnp.max(glog, axis=-1, keepdims=True)
    g = jnp.exp(glog)
    g = g / jnp.sum(g, axis=-1, keepdims=True)      # exact softmax (matches torch)

    # prompt = (sum_i g_i * aux_i) @ Wp + bp  -> one matmul
    weighted = g[:, 0:1] * ta[:, 0:td]
    for i in range(1, n_aux):
        weighted = weighted + g[:, i:i + 1] * ta[:, i * td:(i + 1) * td]
    prompt_e = jnp.dot(weighted, wp_ref[...],
                       preferred_element_type=jnp.float32) + bp_ref[...]

    # one lane-dense (S, 3D) output slab, split in the wrapper
    o_ref[0] = jnp.concatenate([style_e, text_e, prompt_e], axis=-1)


def featurize_pallas(seqs_all, fp, cfg):
    b, s, _ = seqs_all.shape
    d = cfg["input_dim"]
    sd, td, tel = cfg["style_dim"], cfg["text_dim"], cfg["text_embedding_len"]
    n_aux = tel - 1

    # cheap contiguous XLA-level slices (no restack)
    style_in = seqs_all[:, :, :sd]                                  # (B,S,sd)
    text0_in = seqs_all[:, :, sd:sd + td]                           # (B,S,td)
    taux_in = seqs_all[:, :, sd + td: sd + tel * td]                # (B,S,n_aux*td)

    kern = functools.partial(_featurize_kernel, td=td, n_aux=n_aux)
    row = lambda i: (i, 0, 0)
    c2 = lambda i: (0, 0)
    out = pl.pallas_call(
        kern,
        out_shape=jax.ShapeDtypeStruct((b, s, 3 * d), jnp.float32),
        grid=(b,),
        in_specs=[
            pl.BlockSpec((1, s, sd), row),
            pl.BlockSpec((1, s, td), row),
            pl.BlockSpec((1, s, n_aux * td), row),
            pl.BlockSpec((sd, d), c2),
            pl.BlockSpec((1, d), c2),
            pl.BlockSpec((td, d), c2),
            pl.BlockSpec((1, d), c2),
            pl.BlockSpec((n_aux * td, n_aux), c2),
            pl.BlockSpec((1, n_aux), c2),
            pl.BlockSpec((td, d), c2),
            pl.BlockSpec((1, d), c2),
        ],
        out_specs=pl.BlockSpec((1, s, 3 * d), row),
        compiler_params=pltpu.CompilerParams(
            dimension_semantics=("parallel",),
            vmem_limit_bytes=_VMEM_LIMIT),
    )(style_in, text0_in, taux_in,
      fp["ws"], fp["bs"], fp["wt"], fp["bt"],
      fp["wg"], fp["bg"], fp["wp"], fp["bp"])
    return out


def _repr_kernel(x_ref, w_ref, b_ref, o_ref, *, num_mods):
    """All representation heads in one grid step; whole batch per matmul."""
    for mi in range(num_mods):
        o_ref[mi] = (jnp.dot(x_ref[mi], w_ref[mi],
                             preferred_element_type=jnp.float32) + b_ref[mi])


def repr_head_pallas(x_cloze, w_stack, b_stack):
    m, b, d = x_cloze.shape
    od = w_stack.shape[-1]
    c3 = lambda i: (0, 0, 0)
    return pl.pallas_call(
        functools.partial(_repr_kernel, num_mods=m),
        out_shape=jax.ShapeDtypeStruct((m, b, od), jnp.float32),
        grid=(1,),
        in_specs=[pl.BlockSpec((m, b, d), c3),
                  pl.BlockSpec((m, d, od), c3),
                  pl.BlockSpec((m, 1, od), c3)],
        out_specs=pl.BlockSpec((m, b, od), c3),
        compiler_params=pltpu.CompilerParams(
            dimension_semantics=("arbitrary",),
            vmem_limit_bytes=_VMEM_LIMIT),
    )(x_cloze, w_stack, b_stack)


# ========================== parameter handling ==========================

def _dense(key, din, dout, scale=0.02):
    return {"w": jax.random.normal(key, (din, dout), jnp.float32) * scale,
            "b": jnp.zeros((dout,), jnp.float32)}


def _block_params(key, d, ff):
    k = jax.random.split(key, 4)
    s = 0.02
    return {
        "qkv_w": jax.random.normal(k[0], (d, 3 * d), jnp.float32) * s,
        "qkv_b": jnp.zeros((3 * d,), jnp.float32),
        "out_w": jax.random.normal(k[1], (d, d), jnp.float32) * s,
        "out_b": jnp.zeros((d,), jnp.float32),
        "ff1_w": jax.random.normal(k[2], (d, ff), jnp.float32) * s,
        "ff1_b": jnp.zeros((ff,), jnp.float32),
        "ff2_w": jax.random.normal(k[3], (ff, d), jnp.float32) * s,
        "ff2_b": jnp.zeros((d,), jnp.float32),
        "ln1_g": jnp.ones((d,), jnp.float32),
        "ln1_b": jnp.zeros((d,), jnp.float32),
        "ln2_g": jnp.ones((d,), jnp.float32),
        "ln2_b": jnp.zeros((d,), jnp.float32),
    }


def init_params(key, cfg):
    d = cfg["input_dim"]
    max_len = cfg["max_len"]
    keys = iter(jax.random.split(key, 64))
    p = {}
    tok = jax.random.normal(next(keys), (cfg["num_items"] + 2, d), jnp.float32) * 0.02
    p["token_emb"] = tok.at[0].set(0.0)                        # padding_idx = 0
    p["style_proj"] = _dense(next(keys), cfg["style_dim"], d)
    p["text_proj"] = _dense(next(keys), cfg["text_dim"], d)
    p["prompt_proj"] = _dense(next(keys), cfg["text_dim"], d)
    tel = cfg["text_embedding_len"]
    p["gate_text"] = _dense(next(keys), cfg["text_dim"] * (tel - 1), tel - 1)
    p["cloze"] = {m: jax.random.normal(next(keys), (1, 1, d), jnp.float32) * 0.02
                  for m in cfg["modalities"]}
    p["pos"] = {m: jax.random.normal(next(keys), (1, max_len + 1, d), jnp.float32) * 0.02
                for m in cfg["modalities"]}
    p["tst"] = jax.random.normal(next(keys), (1, max_len + 1, d), jnp.float32) * 0.02
    p["enc"] = {m: [_block_params(next(keys), d, cfg["hidden_dim"][m])
                    for _ in range(cfg["num_blocks"][m])]
                for m in cfg["modalities"]}
    p["fusion"] = [_block_params(next(keys), d, cfg["fusion_hidden_dim"])
                   for _ in range(cfg["fusion_num_blocks"])]
    p["repr"] = {
        "token": _dense(next(keys), d, cfg["output_dim"]),
        "style": _dense(next(keys), d, cfg["output_dim"]),
        "text": _dense(next(keys), d, cfg["output_dim"]),
        "prompt": _dense(next(keys), d, cfg["output_dim"]),
        "saleprice": _dense(next(keys), d, 1),
    }
    return p


def prepare_params(params, cfg):
    """One-time weight relayout / bf16 cast, hoisted out of the forward pass."""
    d = cfg["input_dim"]
    tel = cfg["text_embedding_len"]
    mods = cfg["modalities"]

    def one_block(bp):
        return {
            "wqkv": bp["qkv_w"].astype(jnp.bfloat16),            # (D, 3D)
            "bqkv": bp["qkv_b"].reshape(1, -1),
            "wo": bp["out_w"].astype(jnp.bfloat16),              # (D, D)
            "bo": bp["out_b"].reshape(1, d),
            "ln1_g": bp["ln1_g"].reshape(1, d), "ln1_b": bp["ln1_b"].reshape(1, d),
            "ff1_w": bp["ff1_w"].astype(jnp.bfloat16),
            "ff1_b": bp["ff1_b"].reshape(1, -1),
            "ff2_w": bp["ff2_w"].astype(jnp.bfloat16),
            "ff2_b": bp["ff2_b"].reshape(1, d),
            "ln2_g": bp["ln2_g"].reshape(1, d), "ln2_b": bp["ln2_b"].reshape(1, d),
        }

    def stack_blocks(blocks):
        ps = [one_block(bp) for bp in blocks]
        return {k: jnp.stack([q[k] for q in ps], axis=0) for k in ps[0]}

    prep = {
        "token_emb": params["token_emb"],
        "cloze": params["cloze"],
        "pos": params["pos"],
        "tst": params["tst"],
        "feat": {
            "ws": params["style_proj"]["w"],
            "bs": params["style_proj"]["b"].reshape(1, d),
            "wt": params["text_proj"]["w"],
            "bt": params["text_proj"]["b"].reshape(1, d),
            "wg": params["gate_text"]["w"],
            "bg": params["gate_text"]["b"].reshape(1, tel - 1),
            "wp": params["prompt_proj"]["w"],
            "bp": params["prompt_proj"]["b"].reshape(1, d),
        },
        "fusion_layers": [stack_blocks([blk]) for blk in params["fusion"]],
    }

    nb_all = [cfg["num_blocks"][m] for m in mods]
    nh_all = [cfg["num_heads"][m] for m in mods]
    ff_all = [cfg["hidden_dim"][m] for m in mods]
    if len(set(nb_all)) == 1 and len(set(nh_all)) == 1 and len(set(ff_all)) == 1:
        prep["enc_layers"] = [stack_blocks([params["enc"][m][layer] for m in mods])
                              for layer in range(nb_all[0])]
    else:
        prep["enc_per_mod"] = {m: [stack_blocks([blk]) for blk in params["enc"][m]]
                               for m in mods}

    # stacked (and zero-padded to a common width) representation heads
    od_max = max(cfg["output_dim"], 1)
    w_list, b_list = [], []
    for m in mods:
        w = params["repr"][m]["w"]
        bv = params["repr"][m]["b"].reshape(1, -1)
        w_list.append(jnp.zeros((d, od_max), jnp.float32).at[:, :w.shape[1]].set(w))
        b_list.append(jnp.zeros((1, od_max), jnp.float32).at[:, :bv.shape[1]].set(bv))
    prep["repr_w"] = jnp.stack(w_list, axis=0)                 # (M, D, od_max)
    prep["repr_b"] = jnp.stack(b_list, axis=0)                 # (M, 1, od_max)
    return prep


# ================================ forward ================================

def mtstrec_forward(prep, seqs, seqs_all, cfg):
    """Eval-mode forward (dropout = identity). Assumes all five modalities on."""
    b, seq_len = seqs.shape
    d = cfg["input_dim"]
    mods = cfg["modalities"]
    L = seq_len + 1

    # ---- input featurisation (one fused pallas_call + gather glue) ----
    x = {}
    x["token"] = prep["token_emb"][seqs]                       # embedding gather
    feat = featurize_pallas(seqs_all, prep["feat"], cfg)       # (B, S, 3D)
    x["style"] = feat[:, :, :d]
    x["text"] = feat[:, :, d:2 * d]
    x["prompt"] = feat[:, :, 2 * d:]
    x["saleprice"] = jnp.broadcast_to(seqs_all[:, :, -1:], (b, seq_len, d))

    # ---- temporal encode: append cloze token, add learned position embs ----
    for m in mods:
        cloze = jnp.broadcast_to(prep["cloze"][m], (b, 1, d))
        x[m] = jnp.concatenate([x[m], cloze], axis=1) + prep["pos"][m]

    kpm = jnp.concatenate([seqs == 0, jnp.zeros((b, 1), dtype=bool)], axis=1)
    mask_add = jnp.where(kpm, -1e9, 0.0).astype(jnp.float32)   # (B, L) additive
    mask3 = mask_add[:, None, :]                               # (B, 1, L)

    # ---- per-modality encoders: grid over modalities, whole batch per step ----
    if "enc_layers" in prep:
        xs = jnp.stack([x[m] for m in mods], axis=0)           # (M, B, L, D)
        nh = cfg["num_heads"][mods[0]]
        for wset in prep["enc_layers"]:
            xs = fused_transformer_block(xs, mask3, wset, nh, mask_per_group=False)
        for mi, m in enumerate(mods):
            x[m] = xs[mi]
    else:  # heterogeneous per-modality configs: per-modality calls
        for m in mods:
            h_m = x[m][None]                                   # (1, B, L, D)
            for wset in prep["enc_per_mod"][m]:
                h_m = fused_transformer_block(h_m, mask3, wset,
                                              cfg["num_heads"][m],
                                              mask_per_group=False)
            x[m] = h_m[0]

    # TODO(synk): MTSTEncoder / CLOZEWrapper / AddPositionEmbs sources were not
    # provided; fusion is implemented as post-norm transformer blocks over the
    # concatenation [modality tokens ..., tst tokens] with the padding mask.
    tst = jnp.broadcast_to(prep["tst"], (b, L, d))
    fused_x = jnp.concatenate([x[m] for m in mods] + [tst], axis=1)   # (B, Ltot, D)
    fmask = jnp.concatenate([mask_add] * len(mods)
                            + [jnp.zeros((b, L), jnp.float32)], axis=1)
    fmask3 = fmask[:, None, :]                                        # (B, 1, Ltot)

    fx = fused_x[:, None]                                             # (B, 1, Ltot, D)
    for wset in prep["fusion_layers"]:
        # grid over sequences (even grid for v7x megacore), shared weights
        fx = fused_transformer_block(fx, fmask3, wset,
                                     cfg["fusion_num_heads"], mask_per_group=True)
    fused_x = fx[:, 0]

    # ---- cloze-position token per modality + fused representation heads ----
    pos_idx = [mi * L + seq_len for mi in range(len(mods))]
    x_cloze = jnp.stack([fused_x[:, p_, :] for p_ in pos_idx], axis=0)   # (M, B, D)
    rep = repr_head_pallas(x_cloze, prep["repr_w"], prep["repr_b"])      # (M, B, od)

    out_dims = [1 if m == "saleprice" else cfg["output_dim"] for m in mods]
    final = jnp.concatenate([rep[mi, :, :out_dims[mi]]
                             for mi in range(len(mods))], axis=-1)       # (B, 65)
    return final[:, None, :]


# ================================== main ==================================

if __name__ == "__main__":
    cfg = dict(
        max_len=8, num_items=20, input_dim=32, output_dim=16,
        style_dim=48, text_dim=40, text_embedding_len=3,
        modalities=("token", "style", "text", "prompt", "saleprice"),
        num_blocks={"token": 1, "style": 1, "text": 1, "prompt": 1, "saleprice": 1},
        num_heads={"token": 2, "style": 2, "text": 2, "prompt": 2, "saleprice": 2},
        hidden_dim={"token": 64, "style": 64, "text": 64, "prompt": 64, "saleprice": 64},
        fusion_num_blocks=1, fusion_num_heads=2, fusion_hidden_dim=64,
    )
    key = jax.random.PRNGKey(0)
    k_par, k_seq, k_all = jax.random.split(key, 3)
    params = init_params(k_par, cfg)
    prep = prepare_params(params, cfg)     # one-time weight relayout / bf16 cast

    batch, seq_len = 2, cfg["max_len"]
    feat_dim = cfg["style_dim"] + cfg["text_embedding_len"] * cfg["text_dim"] + 1  # 169
    seqs = jax.random.randint(k_seq, (batch, seq_len), 1, cfg["num_items"] + 1,
                              dtype=jnp.int32)
    seqs = seqs.at[:, -2:].set(0)          # trailing padding to exercise the mask
    seqs_all = jax.random.normal(k_all, (batch, seq_len, feat_dim), jnp.float32)

    fwd = jax.jit(functools.partial(mtstrec_forward, cfg=cfg))
    out = fwd(prep, seqs, seqs_all)
    jax.block_until_ready(out)
    assert out.shape == (batch, 1, 4 * cfg["output_dim"] + 1), out.shape
    assert bool(jnp.all(jnp.isfinite(out)))
    print("KERNEL_OK")
</pallas_src>

<mosaic_0001>
module attributes {stable_mosaic.version = 11 : i64} {
  func.func @_featurize_kernel(%arg0: i32, %arg1: memref<1x8x48xf32, #tpu.memory_space<vmem>>, %arg2: memref<1x8x40xf32, #tpu.memory_space<vmem>>, %arg3: memref<1x8x80xf32, #tpu.memory_space<vmem>>, %arg4: memref<48x32xf32, #tpu.memory_space<vmem>>, %arg5: memref<1x32xf32, #tpu.memory_space<vmem>>, %arg6: memref<40x32xf32, #tpu.memory_space<vmem>>, %arg7: memref<1x32xf32, #tpu.memory_space<vmem>>, %arg8: memref<80x2xf32, #tpu.memory_space<vmem>>, %arg9: memref<1x2xf32, #tpu.memory_space<vmem>>, %arg10: memref<40x32xf32, #tpu.memory_space<vmem>>, %arg11: memref<1x32xf32, #tpu.memory_space<vmem>>, %arg12: memref<1x8x96xf32, #tpu.memory_space<vmem>>) attributes {dimension_semantics = [#tpu.dimension_semantics<parallel>], iteration_bounds = array<i64: 2>, scalar_prefetch = 0 : i64, scratch_operands = 0 : i64, tpu.core_type = #tpu.core_type<tc>, window_params = [{transform_indices = @transform_0, window_bounds = array<i64: 1, 8, 48>}, {transform_indices = @transform_1, window_bounds = array<i64: 1, 8, 40>}, {transform_indices = @transform_2, window_bounds = array<i64: 1, 8, 80>}, {pipeline_mode = #tpu.pipeline_mode<synchronous>, transform_indices = @transform_3, window_bounds = array<i64: 48, 32>}, {pipeline_mode = #tpu.pipeline_mode<synchronous>, transform_indices = @transform_4, window_bounds = array<i64: 1, 32>}, {pipeline_mode = #tpu.pipeline_mode<synchronous>, transform_indices = @transform_5, window_bounds = array<i64: 40, 32>}, {pipeline_mode = #tpu.pipeline_mode<synchronous>, transform_indices = @transform_6, window_bounds = array<i64: 1, 32>}, {pipeline_mode = #tpu.pipeline_mode<synchronous>, transform_indices = @transform_7, window_bounds = array<i64: 80, 2>}, {pipeline_mode = #tpu.pipeline_mode<synchronous>, transform_indices = @transform_8, window_bounds = array<i64: 1, 2>}, {pipeline_mode = #tpu.pipeline_mode<synchronous>, transform_indices = @transform_9, window_bounds = array<i64: 40, 32>}, {pipeline_mode = #tpu.pipeline_mode<synchronous>, transform_indices = @transform_10, window_bounds = array<i64: 1, 32>}, {transform_indices = @transform_11, window_bounds = array<i64: 1, 8, 96>}]} {
    %c0 = arith.constant 0 : index
    %c0_0 = arith.constant 0 : index
    %c0_1 = arith.constant 0 : index
    %0 = vector.load %arg1[%c0, %c0_0, %c0_1] : memref<1x8x48xf32, #tpu.memory_space<vmem>>, vector<1x8x48xf32>
    %1 = vector.shape_cast %0 : vector<1x8x48xf32> to vector<8x48xf32>
    %c0_2 = arith.constant 0 : index
    %c0_3 = arith.constant 0 : index
    %c0_4 = arith.constant 0 : index
    %2 = vector.load %arg2[%c0_2, %c0_3, %c0_4] : memref<1x8x40xf32, #tpu.memory_space<vmem>>, vector<1x8x40xf32>
    %3 = vector.shape_cast %2 : vector<1x8x40xf32> to vector<8x40xf32>
    %c0_5 = arith.constant 0 : index
    %c0_6 = arith.constant 0 : index
    %c0_7 = arith.constant 0 : index
    %4 = vector.load %arg3[%c0_5, %c0_6, %c0_7] : memref<1x8x80xf32, #tpu.memory_space<vmem>>, vector<1x8x80xf32>
    %5 = vector.shape_cast %4 : vector<1x8x80xf32> to vector<8x80xf32>
    %c0_8 = arith.constant 0 : index
    %c0_9 = arith.constant 0 : index
    %6 = vector.load %arg4[%c0_8, %c0_9] : memref<48x32xf32, #tpu.memory_space<vmem>>, vector<48x32xf32>
    %cst = arith.constant dense<0.000000e+00> : vector<8x32xf32>
    %7 = tpu.matmul %1, %6, %cst {dimension_numbers = #tpu.dot_dimension_numbers<[1], [0], [0], [1], [0, 0, 1, 1], [], []>} : vector<8x48xf32>, vector<48x32xf32>, vector<8x32xf32> -> vector<8x32xf32>
    %c0_10 = arith.constant 0 : index
    %c0_11 = arith.constant 0 : index
    %8 = vector.load %arg5[%c0_10, %c0_11] : memref<1x32xf32, #tpu.memory_space<vmem>>, vector<1x32xf32>
    %9 = vector.broadcast %8 : vector<1x32xf32> to vector<8x32xf32>
    %10 = arith.addf %7, %9 : vector<8x32xf32>
    %c0_12 = arith.constant 0 : index
    %c0_13 = arith.constant 0 : index
    %11 = vector.load %arg6[%c0_12, %c0_13] : memref<40x32xf32, #tpu.memory_space<vmem>>, vector<40x32xf32>
    %cst_14 = arith.constant dense<0.000000e+00> : vector<8x32xf32>
    %12 = tpu.matmul %3, %11, %cst_14 {dimension_numbers = #tpu.dot_dimension_numbers<[1], [0], [0], [1], [0, 0, 1, 1], [], []>} : vector<8x40xf32>, vector<40x32xf32>, vector<8x32xf32> -> vector<8x32xf32>
    %c0_15 = arith.constant 0 : index
    %c0_16 = arith.constant 0 : index
    %13 = vector.load %arg7[%c0_15, %c0_16] : memref<1x32xf32, #tpu.memory_space<vmem>>, vector<1x32xf32>
    %14 = vector.broadcast %13 : vector<1x32xf32> to vector<8x32xf32>
    %15 = arith.addf %12, %14 : vector<8x32xf32>
    %c0_17 = arith.constant 0 : index
    %c0_18 = arith.constant 0 : index
    %16 = vector.load %arg8[%c0_17, %c0_18] : memref<80x2xf32, #tpu.memory_space<vmem>>, vector<80x2xf32>
    %cst_19 = arith.constant dense<0.000000e+00> : vector<8x2xf32>
    %17 = tpu.matmul %5, %16, %cst_19 {dimension_numbers = #tpu.dot_dimension_numbers<[1], [0], [0], [1], [0, 0, 1, 1], [], []>} : vector<8x80xf32>, vector<80x2xf32>, vector<8x2xf32> -> vector<8x2xf32>
    %c0_20 = arith.constant 0 : index
    %c0_21 = arith.constant 0 : index
    %18 = vector.load %arg9[%c0_20, %c0_21] : memref<1x2xf32, #tpu.memory_space<vmem>>, vector<1x2xf32>
    %19 = vector.broadcast %18 : vector<1x2xf32> to vector<8x2xf32>
    %20 = arith.addf %17, %19 : vector<8x2xf32>
    %cst_22 = arith.constant dense<0xFF800000> : vector<8xf32>
    %21 = vector.multi_reduction <maximumf>, %20, %cst_22 [1] : vector<8x2xf32> to vector<8xf32>
    %22 = vector.shape_cast %21 : vector<8xf32> to vector<8x1xf32>
    %23 = vector.broadcast %22 : vector<8x1xf32> to vector<8x2xf32>
    %24 = arith.subf %20, %23 : vector<8x2xf32>
    %25 = math.exp %24 : vector<8x2xf32>
    %cst_23 = arith.constant dense<0.000000e+00> : vector<8xf32>
    %26 = vector.multi_reduction <add>, %25, %cst_23 [1] : vector<8x2xf32> to vector<8xf32>
    %27 = vector.shape_cast %26 : vector<8xf32> to vector<8x1xf32>
    %28 = vector.broadcast %27 : vector<8x1xf32> to vector<8x2xf32>
    %29 = arith.divf %25, %28 : vector<8x2xf32>
    %30 = vector.extract_strided_slice %29 {offsets = [0, 0], sizes = [8, 1], strides = [1, 1]} : vector<8x2xf32> to vector<8x1xf32>
    %31 = vector.extract_strided_slice %5 {offsets = [0, 0], sizes = [8, 40], strides = [1, 1]} : vector<8x80xf32> to vector<8x40xf32>
    %32 = vector.broadcast %30 : vector<8x1xf32> to vector<8x40xf32>
    %33 = arith.mulf %32, %31 : vector<8x40xf32>
    %34 = vector.extract_strided_slice %29 {offsets = [0, 1], sizes = [8, 1], strides = [1, 1]} : vector<8x2xf32> to vector<8x1xf32>
    %35 = vector.extract_strided_slice %5 {offsets = [0, 40], sizes = [8, 40], strides = [1, 1]} : vector<8x80xf32> to vector<8x40xf32>
    %36 = vector.broadcast %34 : vector<8x1xf32> to vector<8x40xf32>
    %37 = arith.mulf %36, %35 : vector<8x40xf32>
    %38 = arith.addf %33, %37 : vector<8x40xf32>
    %c0_24 = arith.constant 0 : index
    %c0_25 = arith.constant 0 : index
    %39 = vector.load %arg10[%c0_24, %c0_25] : memref<40x32xf32, #tpu.memory_space<vmem>>, vector<40x32xf32>
    %cst_26 = arith.constant dense<0.000000e+00> : vector<8x32xf32>
    %40 = tpu.matmul %38, %39, %cst_26 {dimension_numbers = #tpu.dot_dimension_numbers<[1], [0], [0], [1], [0, 0, 1, 1], [], []>} : vector<8x40xf32>, vector<40x32xf32>, vector<8x32xf32> -> vector<8x32xf32>
    %c0_27 = arith.constant 0 : index
    %c0_28 = arith.constant 0 : index
    %41 = vector.load %arg11[%c0_27, %c0_28] : memref<1x32xf32, #tpu.memory_space<vmem>>, vector<1x32xf32>
    %42 = vector.broadcast %41 : vector<1x32xf32> to vector<8x32xf32>
    %43 = arith.addf %40, %42 : vector<8x32xf32>
    %44 = tpu.concatenate %10, %15, %43 in 1 : vector<8x32xf32>, vector<8x32xf32>, vector<8x32xf32> -> vector<8x96xf32>
    %c0_29 = arith.constant 0 : index
    %c0_30 = arith.constant 0 : index
    %c0_31 = arith.constant 0 : index
    %45 = vector.load %arg12[%c0_29, %c0_30, %c0_31] : memref<1x8x96xf32, #tpu.memory_space<vmem>>, vector<1x8x96xf32>
    %46 = vector.shape_cast %45 : vector<1x8x96xf32> to vector<8x96xf32>
    %47 = vector.shape_cast %44 : vector<8x96xf32> to vector<1x8x96xf32>
    tpu.vector_store %arg12[%c0_29, %c0_30, %c0_31], %47 {strides = array<i32>} : memref<1x8x96xf32, #tpu.memory_space<vmem>>, vector<1x8x96xf32>,
    return
  }
  func.func @transform_0(%arg0: i32) -> (i32, i32, i32) {
    %c0_i32 = arith.constant 0 : i32
    %c0_i32_0 = arith.constant 0 : i32
    %c0_i32_1 = arith.constant 0 : i32
    return %arg0, %c0_i32, %c0_i32_0 : i32, i32, i32
  }
  func.func @transform_1(%arg0: i32) -> (i32, i32, i32) {
    %c0_i32 = arith.constant 0 : i32
    %c0_i32_0 = arith.constant 0 : i32
    %c0_i32_1 = arith.constant 0 : i32
    return %arg0, %c0_i32, %c0_i32_0 : i32, i32, i32
  }
  func.func @transform_2(%arg0: i32) -> (i32, i32, i32) {
    %c0_i32 = arith.constant 0 : i32
    %c0_i32_0 = arith.constant 0 : i32
    %c0_i32_1 = arith.constant 0 : i32
    return %arg0, %c0_i32, %c0_i32_0 : i32, i32, i32
  }
  func.func @transform_3(%arg0: i32) -> (i32, i32) {
    %c0_i32 = arith.constant 0 : i32
    %c0_i32_0 = arith.constant 0 : i32
    %c0_i32_1 = arith.constant 0 : i32
    return %c0_i32, %c0_i32_0 : i32, i32
  }
  func.func @transform_4(%arg0: i32) -> (i32, i32) {
    %c0_i32 = arith.constant 0 : i32
    %c0_i32_0 = arith.constant 0 : i32
    %c0_i32_1 = arith.constant 0 : i32
    return %c0_i32, %c0_i32_0 : i32, i32
  }
  func.func @transform_5(%arg0: i32) -> (i32, i32) {
    %c0_i32 = arith.constant 0 : i32
    %c0_i32_0 = arith.constant 0 : i32
    %c0_i32_1 = arith.constant 0 : i32
    return %c0_i32, %c0_i32_0 : i32, i32
  }
  func.func @transform_6(%arg0: i32) -> (i32, i32) {
    %c0_i32 = arith.constant 0 : i32
    %c0_i32_0 = arith.constant 0 : i32
    %c0_i32_1 = arith.constant 0 : i32
    return %c0_i32, %c0_i32_0 : i32, i32
  }
  func.func @transform_7(%arg0: i32) -> (i32, i32) {
    %c0_i32 = arith.constant 0 : i32
    %c0_i32_0 = arith.constant 0 : i32
    %c0_i32_1 = arith.constant 0 : i32
    return %c0_i32, %c0_i32_0 : i32, i32
  }
  func.func @transform_8(%arg0: i32) -> (i32, i32) {
    %c0_i32 = arith.constant 0 : i32
    %c0_i32_0 = arith.constant 0 : i32
    %c0_i32_1 = arith.constant 0 : i32
    return %c0_i32, %c0_i32_0 : i32, i32
  }
  func.func @transform_9(%arg0: i32) -> (i32, i32) {
    %c0_i32 = arith.constant 0 : i32
    %c0_i32_0 = arith.constant 0 : i32
    %c0_i32_1 = arith.constant 0 : i32
    return %c0_i32, %c0_i32_0 : i32, i32
  }
  func.func @transform_10(%arg0: i32) -> (i32, i32) {
    %c0_i32 = arith.constant 0 : i32
    %c0_i32_0 = arith.constant 0 : i32
    %c0_i32_1 = arith.constant 0 : i32
    return %c0_i32, %c0_i32_0 : i32, i32
  }
  func.func @transform_11(%arg0: i32) -> (i32, i32, i32) {
    %c0_i32 = arith.constant 0 : i32
    %c0_i32_0 = arith.constant 0 : i32
    %c0_i32_1 = arith.constant 0 : i32
    return %arg0, %c0_i32, %c0_i32_0 : i32, i32, i32
  }
}

module attributes {stable_mosaic.version = 11 : i64} {
  func.func @_fused_block_kernel(%arg0: i32, %arg1: memref<1x2x9x32xf32, #tpu.memory_space<vmem>>, %arg2: memref<2x1x9xf32, #tpu.memory_space<vmem>>, %arg3: memref<1x32x96xbf16, #tpu.memory_space<vmem>>, %arg4: memref<1x1x96xf32, #tpu.memory_space<vmem>>, %arg5: memref<1x32x32xbf16, #tpu.memory_space<vmem>>, %arg6: memref<1x1x32xf32, #tpu.memory_space<vmem>>, %arg7: memref<1x1x32xf32, #tpu.memory_space<vmem>>, %arg8: memref<1x1x32xf32, #tpu.memory_space<vmem>>, %arg9: memref<1x32x64xbf16, #tpu.memory_space<vmem>>, %arg10: memref<1x1x64xf32, #tpu.memory_space<vmem>>, %arg11: memref<1x64x32xbf16, #tpu.memory_space<vmem>>, %arg12: memref<1x1x32xf32, #tpu.memory_space<vmem>>, %arg13: memref<1x1x32xf32, #tpu.memory_space<vmem>>, %arg14: memref<1x1x32xf32, #tpu.memory_space<vmem>>, %arg15: memref<1x2x9x32xf32, #tpu.memory_space<vmem>>) attributes {dimension_semantics = [#tpu.dimension_semantics<parallel>], iteration_bounds = array<i64: 5>, scalar_prefetch = 0 : i64, scratch_operands = 0 : i64, tpu.core_type = #tpu.core_type<tc>, window_params = [{transform_indices = @transform_0, window_bounds = array<i64: 1, 2, 9, 32>}, {pipeline_mode = #tpu.pipeline_mode<synchronous>, transform_indices = @transform_1, window_bounds = array<i64: 2, 1, 9>}, {transform_indices = @transform_2, window_bounds = array<i64: 1, 32, 96>}, {transform_indices = @transform_3, window_bounds = array<i64: 1, 1, 96>}, {transform_indices = @transform_4, window_bounds = array<i64: 1, 32, 32>}, {transform_indices = @transform_5, window_bounds = array<i64: 1, 1, 32>}, {transform_indices = @transform_6, window_bounds = array<i64: 1, 1, 32>}, {transform_indices = @transform_7, window_bounds = array<i64: 1, 1, 32>}, {transform_indices = @transform_8, window_bounds = array<i64: 1, 32, 64>}, {transform_indices = @transform_9, window_bounds = array<i64: 1, 1, 64>}, {transform_indices = @transform_10, window_bounds = array<i64: 1, 64, 32>}, {transform_indices = @transform_11, window_bounds = array<i64: 1, 1, 32>}, {transform_indices = @transform_12, window_bounds = array<i64: 1, 1, 32>}, {transform_indices = @transform_13, window_bounds = array<i64: 1, 1, 32>}, {transform_indices = @transform_14, window_bounds = array<i64: 1, 2, 9, 32>}]} {
    %c0 = arith.constant 0 : index
    %c0_0 = arith.constant 0 : index
    %c0_1 = arith.constant 0 : index
    %0 = vector.load %arg3[%c0, %c0_0, %c0_1] : memref<1x32x96xbf16, #tpu.memory_space<vmem>>, vector<1x32x96xbf16>
    %1 = vector.shape_cast %0 : vector<1x32x96xbf16> to vector<32x96xbf16>
    %c0_2 = arith.constant 0 : index
    %c0_3 = arith.constant 0 : index
    %c0_4 = arith.constant 0 : index
    %2 = vector.load %arg4[%c0_2, %c0_3, %c0_4] : memref<1x1x96xf32, #tpu.memory_space<vmem>>, vector<1x1x96xf32>
    %3 = vector.shape_cast %2 : vector<1x1x96xf32> to vector<1x96xf32>
    %c0_5 = arith.constant 0 : index
    %c0_6 = arith.constant 0 : index
    %c0_7 = arith.constant 0 : index
    %4 = vector.load %arg5[%c0_5, %c0_6, %c0_7] : memref<1x32x32xbf16, #tpu.memory_space<vmem>>, vector<1x32x32xbf16>
    %5 = vector.shape_cast %4 : vector<1x32x32xbf16> to vector<32x32xbf16>
    %c0_8 = arith.constant 0 : index
    %c0_9 = arith.constant 0 : index
    %c0_10 = arith.constant 0 : index
    %6 = vector.load %arg6[%c0_8, %c0_9, %c0_10] : memref<1x1x32xf32, #tpu.memory_space<vmem>>, vector<1x1x32xf32>
    %7 = vector.shape_cast %6 : vector<1x1x32xf32> to vector<1x32xf32>
    %c0_11 = arith.constant 0 : index
    %c0_12 = arith.constant 0 : index
    %c0_13 = arith.constant 0 : index
    %8 = vector.load %arg7[%c0_11, %c0_12, %c0_13] : memref<1x1x32xf32, #tpu.memory_space<vmem>>, vector<1x1x32xf32>
    %9 = vector.shape_cast %8 : vector<1x1x32xf32> to vector<1x32xf32>
    %c0_14 = arith.constant 0 : index
    %c0_15 = arith.constant 0 : index
    %c0_16 = arith.constant 0 : index
    %10 = vector.load %arg8[%c0_14, %c0_15, %c0_16] : memref<1x1x32xf32, #tpu.memory_space<vmem>>, vector<1x1x32xf32>
    %11 = vector.shape_cast %10 : vector<1x1x32xf32> to vector<1x32xf32>
    %c0_17 = arith.constant 0 : index
    %c0_18 = arith.constant 0 : index
    %c0_19 = arith.constant 0 : index
    %12 = vector.load %arg9[%c0_17, %c0_18, %c0_19] : memref<1x32x64xbf16, #tpu.memory_space<vmem>>, vector<1x32x64xbf16>
    %13 = vector.shape_cast %12 : vector<1x32x64xbf16> to vector<32x64xbf16>
    %c0_20 = arith.constant 0 : index
    %c0_21 = arith.constant 0 : index
    %c0_22 = arith.constant 0 : index
    %14 = vector.load %arg10[%c0_20, %c0_21, %c0_22] : memref<1x1x64xf32, #tpu.memory_space<vmem>>, vector<1x1x64xf32>
    %15 = vector.shape_cast %14 : vector<1x1x64xf32> to vector<1x64xf32>
    %c0_23 = arith.constant 0 : index
    %c0_24 = arith.constant 0 : index
    %c0_25 = arith.constant 0 : index
    %16 = vector.load %arg11[%c0_23, %c0_24, %c0_25] : memref<1x64x32xbf16, #tpu.memory_space<vmem>>, vector<1x64x32xbf16>
    %17 = vector.shape_cast %16 : vector<1x64x32xbf16> to vector<64x32xbf16>
    %c0_26 = arith.constant 0 : index
    %c0_27 = arith.constant 0 : index
    %c0_28 = arith.constant 0 : index
    %18 = vector.load %arg12[%c0_26, %c0_27, %c0_28] : memref<1x1x32xf32, #tpu.memory_space<vmem>>, vector<1x1x32xf32>
    %19 = vector.shape_cast %18 : vector<1x1x32xf32> to vector<1x32xf32>
    %c0_29 = arith.constant 0 : index
    %c0_30 = arith.constant 0 : index
    %c0_31 = arith.constant 0 : index
    %20 = vector.load %arg13[%c0_29, %c0_30, %c0_31] : memref<1x1x32xf32, #tpu.memory_space<vmem>>, vector<1x1x32xf32>
    %21 = vector.shape_cast %20 : vector<1x1x32xf32> to vector<1x32xf32>
    %c0_32 = arith.constant 0 : index
    %c0_33 = arith.constant 0 : index
    %c0_34 = arith.constant 0 : index
    %22 = vector.load %arg14[%c0_32, %c0_33, %c0_34] : memref<1x1x32xf32, #tpu.memory_space<vmem>>, vector<1x1x32xf32>
    %23 = vector.shape_cast %22 : vector<1x1x32xf32> to vector<1x32xf32>
    %c0_35 = arith.constant 0 : index
    %c0_36 = arith.constant 0 : index
    %c0_37 = arith.constant 0 : index
    %c0_38 = arith.constant 0 : index
    %24 = vector.load %arg1[%c0_35, %c0_36, %c0_37, %c0_38] : memref<1x2x9x32xf32, #tpu.memory_space<vmem>>, vector<1x1x9x32xf32>
    %25 = vector.shape_cast %24 : vector<1x1x9x32xf32> to vector<9x32xf32>
    %c0_39 = arith.constant 0 : index
    %c0_40 = arith.constant 0 : index
    %c0_41 = arith.constant 0 : index
    %26 = vector.load %arg2[%c0_39, %c0_40, %c0_41] : memref<2x1x9xf32, #tpu.memory_space<vmem>>, vector<1x1x9xf32>
    %27 = vector.shape_cast %26 : vector<1x1x9xf32> to vector<1x9xf32>
    %28 = arith.truncf %25 : vector<9x32xf32> to vector<9x32xbf16>
    %cst = arith.constant dense<0.000000e+00> : vector<9x96xf32>
    %29 = tpu.matmul %28, %1, %cst {dimension_numbers = #tpu.dot_dimension_numbers<[1], [0], [0], [1], [0, 0, 1, 1], [], []>} : vector<9x32xbf16>, vector<32x96xbf16>, vector<9x96xf32> -> vector<9x96xf32>
    %30 = vector.broadcast %3 : vector<1x96xf32> to vector<9x96xf32>
    %31 = arith.addf %29, %30 : vector<9x96xf32>
    %32 = vector.extract_strided_slice %31 {offsets = [0, 0], sizes = [9, 16], strides = [1, 1]} : vector<9x96xf32> to vector<9x16xf32>
    %33 = vector.extract_strided_slice %31 {offsets = [0, 32], sizes = [9, 16], strides = [1, 1]} : vector<9x96xf32> to vector<9x16xf32>
    %34 = vector.extract_strided_slice %31 {offsets = [0, 64], sizes = [9, 16], strides = [1, 1]} : vector<9x96xf32> to vector<9x16xf32>
    %35 = arith.truncf %32 : vector<9x16xf32> to vector<9x16xbf16>
    %36 = arith.truncf %33 : vector<9x16xf32> to vector<9x16xbf16>
    %cst_42 = arith.constant dense<0.000000e+00> : vector<9x9xf32>
    %37 = tpu.matmul %35, %36, %cst_42 {dimension_numbers = #tpu.dot_dimension_numbers<[1], [1], [0], [0], [0, 0, 1, 0], [], []>} : vector<9x16xbf16>, vector<9x16xbf16>, vector<9x9xf32> -> vector<9x9xf32>
    %cst_43 = arith.constant 2.500000e-01 : f32
    %38 = vector.broadcast %cst_43 : f32 to vector<9x9xf32>
    %39 = arith.mulf %37, %38 : vector<9x9xf32>
    %40 = vector.broadcast %27 : vector<1x9xf32> to vector<9x9xf32>
    %41 = arith.addf %39, %40 : vector<9x9xf32>
    %cst_44 = arith.constant dense<0xFF800000> : vector<9xf32>
    %42 = vector.multi_reduction <maximumf>, %41, %cst_44 [1] : vector<9x9xf32> to vector<9xf32>
    %43 = vector.shape_cast %42 : vector<9xf32> to vector<9x1xf32>
    %44 = vector.broadcast %43 : vector<9x1xf32> to vector<9x9xf32>
    %45 = arith.subf %41, %44 : vector<9x9xf32>
    %46 = math.exp %45 : vector<9x9xf32>
    %cst_45 = arith.constant dense<0.000000e+00> : vector<9xf32>
    %47 = vector.multi_reduction <add>, %46, %cst_45 [1] : vector<9x9xf32> to vector<9xf32>
    %48 = vector.shape_cast %47 : vector<9xf32> to vector<9x1xf32>
    %49 = tpu.reciprocal %48 {approx = true} : vector<9x1xf32> -> vector<9x1xf32>
    %50 = vector.broadcast %49 : vector<9x1xf32> to vector<9x9xf32>
    %51 = arith.mulf %46, %50 : vector<9x9xf32>
    %52 = arith.truncf %51 : vector<9x9xf32> to vector<9x9xbf16>
    %53 = arith.truncf %34 : vector<9x16xf32> to vector<9x16xbf16>
    %cst_46 = arith.constant dense<0.000000e+00> : vector<9x16xf32>
    %54 = tpu.matmul %52, %53, %cst_46 {dimension_numbers = #tpu.dot_dimension_numbers<[1], [0], [0], [1], [0, 0, 1, 1], [], []>} : vector<9x9xbf16>, vector<9x16xbf16>, vector<9x16xf32> -> vector<9x16xf32>
    %55 = vector.extract_strided_slice %31 {offsets = [0, 16], sizes = [9, 16], strides = [1, 1]} : vector<9x96xf32> to vector<9x16xf32>
    %56 = vector.extract_strided_slice %31 {offsets = [0, 48], sizes = [9, 16], strides = [1, 1]} : vector<9x96xf32> to vector<9x16xf32>
    %57 = vector.extract_strided_slice %31 {offsets = [0, 80], sizes = [9, 16], strides = [1, 1]} : vector<9x96xf32> to vector<9x16xf32>
    %58 = arith.truncf %55 : vector<9x16xf32> to vector<9x16xbf16>
    %59 = arith.truncf %56 : vector<9x16xf32> to vector<9x16xbf16>
    %cst_47 = arith.constant dense<0.000000e+00> : vector<9x9xf32>
    %60 = tpu.matmul %58, %59, %cst_47 {dimension_numbers = #tpu.dot_dimension_numbers<[1], [1], [0], [0], [0, 0, 1, 0], [], []>} : vector<9x16xbf16>, vector<9x16xbf16>, vector<9x9xf32> -> vector<9x9xf32>
    %cst_48 = arith.constant 2.500000e-01 : f32
    %61 = vector.broadcast %cst_48 : f32 to vector<9x9xf32>
    %62 = arith.mulf %60, %61 : vector<9x9xf32>
    %63 = vector.broadcast %27 : vector<1x9xf32> to vector<9x9xf32>
    %64 = arith.addf %62, %63 : vector<9x9xf32>
    %cst_49 = arith.constant dense<0xFF800000> : vector<9xf32>
    %65 = vector.multi_reduction <maximumf>, %64, %cst_49 [1] : vector<9x9xf32> to vector<9xf32>
    %66 = vector.shape_cast %65 : vector<9xf32> to vector<9x1xf32>
    %67 = vector.broadcast %66 : vector<9x1xf32> to vector<9x9xf32>
    %68 = arith.subf %64, %67 : vector<9x9xf32>
    %69 = math.exp %68 : vector<9x9xf32>
    %cst_50 = arith.constant dense<0.000000e+00> : vector<9xf32>
    %70 = vector.multi_reduction <add>, %69, %cst_50 [1] : vector<9x9xf32> to vector<9xf32>
    %71 = vector.shape_cast %70 : vector<9xf32> to vector<9x1xf32>
    %72 = tpu.reciprocal %71 {approx = true} : vector<9x1xf32> -> vector<9x1xf32>
    %73 = vector.broadcast %72 : vector<9x1xf32> to vector<9x9xf32>
    %74 = arith.mulf %69, %73 : vector<9x9xf32>
    %75 = arith.truncf %74 : vector<9x9xf32> to vector<9x9xbf16>
    %76 = arith.truncf %57 : vector<9x16xf32> to vector<9x16xbf16>
    %cst_51 = arith.constant dense<0.000000e+00> : vector<9x16xf32>
    %77 = tpu.matmul %75, %76, %cst_51 {dimension_numbers = #tpu.dot_dimension_numbers<[1], [0], [0], [1], [0, 0, 1, 1], [], []>} : vector<9x9xbf16>, vector<9x16xbf16>, vector<9x16xf32> -> vector<9x16xf32>
    %78 = tpu.concatenate %54, %77 in 1 : vector<9x16xf32>, vector<9x16xf32> -> vector<9x32xf32>
    %79 = arith.truncf %78 : vector<9x32xf32> to vector<9x32xbf16>
    %cst_52 = arith.constant dense<0.000000e+00> : vector<9x32xf32>
    %80 = tpu.matmul %79, %5, %cst_52 {dimension_numbers = #tpu.dot_dimension_numbers<[1], [0], [0], [1], [0, 0, 1, 1], [], []>} : vector<9x32xbf16>, vector<32x32xbf16>, vector<9x32xf32> -> vector<9x32xf32>
    %81 = vector.broadcast %7 : vector<1x32xf32> to vector<9x32xf32>
    %82 = arith.addf %80, %81 : vector<9x32xf32>
    %83 = arith.addf %25, %82 : vector<9x32xf32>
    %cst_53 = arith.constant dense<0.000000e+00> : vector<9xf32>
    %84 = vector.multi_reduction <add>, %83, %cst_53 [1] : vector<9x32xf32> to vector<9xf32>
    %85 = vector.shape_cast %84 : vector<9xf32> to vector<9x1xf32>
    %cst_54 = arith.constant 3.200000e+01 : f32
    %86 = vector.broadcast %cst_54 : f32 to vector<9x1xf32>
    %87 = arith.divf %85, %86 : vector<9x1xf32>
    %88 = vector.broadcast %87 : vector<9x1xf32> to vector<9x32xf32>
    %89 = arith.subf %83, %88 : vector<9x32xf32>
    %90 = arith.mulf %89, %89 : vector<9x32xf32>
    %cst_55 = arith.constant dense<0.000000e+00> : vector<9xf32>
    %91 = vector.multi_reduction <add>, %90, %cst_55 [1] : vector<9x32xf32> to vector<9xf32>
    %92 = vector.shape_cast %91 : vector<9xf32> to vector<9x1xf32>
    %cst_56 = arith.constant 3.200000e+01 : f32
    %93 = vector.broadcast %cst_56 : f32 to vector<9x1xf32>
    %94 = arith.divf %92, %93 : vector<9x1xf32>
    %95 = vector.broadcast %87 : vector<9x1xf32> to vector<9x32xf32>
    %96 = arith.subf %83, %95 : vector<9x32xf32>
    %cst_57 = arith.constant 9.99999974E-6 : f32
    %97 = vector.broadcast %cst_57 : f32 to vector<9x1xf32>
    %98 = arith.addf %94, %97 : vector<9x1xf32>
    %99 = math.rsqrt %98 : vector<9x1xf32>
    %100 = vector.broadcast %99 : vector<9x1xf32> to vector<9x32xf32>
    %101 = arith.mulf %96, %100 : vector<9x32xf32>
    %102 = vector.broadcast %9 : vector<1x32xf32> to vector<9x32xf32>
    %103 = arith.mulf %101, %102 : vector<9x32xf32>
    %104 = vector.broadcast %11 : vector<1x32xf32> to vector<9x32xf32>
    %105 = arith.addf %103, %104 : vector<9x32xf32>
    %106 = arith.truncf %105 : vector<9x32xf32> to vector<9x32xbf16>
    %cst_58 = arith.constant dense<0.000000e+00> : vector<9x64xf32>
    %107 = tpu.matmul %106, %13, %cst_58 {dimension_numbers = #tpu.dot_dimension_numbers<[1], [0], [0], [1], [0, 0, 1, 1], [], []>} : vector<9x32xbf16>, vector<32x64xbf16>, vector<9x64xf32> -> vector<9x64xf32>
    %108 = vector.broadcast %15 : vector<1x64xf32> to vector<9x64xf32>
    %109 = arith.addf %107, %108 : vector<9x64xf32>
    %cst_59 = arith.constant 0.000000e+00 : f32
    %110 = vector.broadcast %cst_59 : f32 to vector<9x64xf32>
    %111 = arith.maximumf %109, %110 : vector<9x64xf32>
    %112 = arith.truncf %111 : vector<9x64xf32> to vector<9x64xbf16>
    %cst_60 = arith.constant dense<0.000000e+00> : vector<9x32xf32>
    %113 = tpu.matmul %112, %17, %cst_60 {dimension_numbers = #tpu.dot_dimension_numbers<[1], [0], [0], [1], [0, 0, 1, 1], [], []>} : vector<9x64xbf16>, vector<64x32xbf16>, vector<9x32xf32> -> vector<9x32xf32>
    %114 = vector.broadcast %19 : vector<1x32xf32> to vector<9x32xf32>
    %115 = arith.addf %113, %114 : vector<9x32xf32>
    %116 = arith.addf %105, %115 : vector<9x32xf32>
    %cst_61 = arith.constant dense<0.000000e+00> : vector<9xf32>
    %117 = vector.multi_reduction <add>, %116, %cst_61 [1] : vector<9x32xf32> to vector<9xf32>
    %118 = vector.shape_cast %117 : vector<9xf32> to vector<9x1xf32>
    %cst_62 = arith.constant 3.200000e+01 : f32
    %119 = vector.broadcast %cst_62 : f32 to vector<9x1xf32>
    %120 = arith.divf %118, %119 : vector<9x1xf32>
    %121 = vector.broadcast %120 : vector<9x1xf32> to vector<9x32xf32>
    %122 = arith.subf %116, %121 : vector<9x32xf32>
    %123 = arith.mulf %122, %122 : vector<9x32xf32>
    %cst_63 = arith.constant dense<0.000000e+00> : vector<9xf32>
    %124 = vector.multi_reduction <add>, %123, %cst_63 [1] : vector<9x32xf32> to vector<9xf32>
    %125 = vector.shape_cast %124 : vector<9xf32> to vector<9x1xf32>
    %cst_64 = arith.constant 3.200000e+01 : f32
    %126 = vector.broadcast %cst_64 : f32 to vector<9x1xf32>
    %127 = arith.divf %125, %126 : vector<9x1xf32>
    %128 = vector.broadcast %120 : vector<9x1xf32> to vector<9x32xf32>
    %129 = arith.subf %116, %128 : vector<9x32xf32>
    %cst_65 = arith.constant 9.99999974E-6 : f32
    %130 = vector.broadcast %cst_65 : f32 to vector<9x1xf32>
    %131 = arith.addf %127, %130 : vector<9x1xf32>
    %132 = math.rsqrt %131 : vector<9x1xf32>
    %133 = vector.broadcast %132 : vector<9x1xf32> to vector<9x32xf32>
    %134 = arith.mulf %129, %133 : vector<9x32xf32>
    %135 = vector.broadcast %21 : vector<1x32xf32> to vector<9x32xf32>
    %136 = arith.mulf %134, %135 : vector<9x32xf32>
    %137 = vector.broadcast %23 : vector<1x32xf32> to vector<9x32xf32>
    %138 = arith.addf %136, %137 : vector<9x32xf32>
    %c0_66 = arith.constant 0 : index
    %c0_67 = arith.constant 0 : index
    %c0_68 = arith.constant 0 : index
    %c0_69 = arith.constant 0 : index
    %139 = vector.load %arg15[%c0_66, %c0_67, %c0_68, %c0_69] : memref<1x2x9x32xf32, #tpu.memory_space<vmem>>, vector<1x1x9x32xf32>
    %140 = vector.shape_cast %139 : vector<1x1x9x32xf32> to vector<9x32xf32>
    %141 = vector.shape_cast %138 : vector<9x32xf32> to vector<1x1x9x32xf32>
    tpu.vector_store %arg15[%c0_66, %c0_67, %c0_68, %c0_69], %141 {strides = array<i32>} : memref<1x2x9x32xf32, #tpu.memory_space<vmem>>, vector<1x1x9x32xf32>,
    %c0_70 = arith.constant 0 : index
    %c1 = arith.constant 1 : index
    %c0_71 = arith.constant 0 : index
    %c0_72 = arith.constant 0 : index
    %142 = vector.load %arg1[%c0_70, %c1, %c0_71, %c0_72] : memref<1x2x9x32xf32, #tpu.memory_space<vmem>>, vector<1x1x9x32xf32>
    %143 = vector.shape_cast %142 : vector<1x1x9x32xf32> to vector<9x32xf32>
    %c1_73 = arith.constant 1 : index
    %c0_74 = arith.constant 0 : index
    %c0_75 = arith.constant 0 : index
    %144 = vector.load %arg2[%c1_73, %c0_74, %c0_75] : memref<2x1x9xf32, #tpu.memory_space<vmem>>, vector<1x1x9xf32>
    %145 = vector.shape_cast %144 : vector<1x1x9xf32> to vector<1x9xf32>
    %146 = arith.truncf %143 : vector<9x32xf32> to vector<9x32xbf16>
    %cst_76 = arith.constant dense<0.000000e+00> : vector<9x96xf32>
    %147 = tpu.matmul %146, %1, %cst_76 {dimension_numbers = #tpu.dot_dimension_numbers<[1], [0], [0], [1], [0, 0, 1, 1], [], []>} : vector<9x32xbf16>, vector<32x96xbf16>, vector<9x96xf32> -> vector<9x96xf32>
    %148 = vector.broadcast %3 : vector<1x96xf32> to vector<9x96xf32>
    %149 = arith.addf %147, %148 : vector<9x96xf32>
    %150 = vector.extract_strided_slice %149 {offsets = [0, 0], sizes = [9, 16], strides = [1, 1]} : vector<9x96xf32> to vector<9x16xf32>
    %151 = vector.extract_strided_slice %149 {offsets = [0, 32], sizes = [9, 16], strides = [1, 1]} : vector<9x96xf32> to vector<9x16xf32>
    %152 = vector.extract_strided_slice %149 {offsets = [0, 64], sizes = [9, 16], strides = [1, 1]} : vector<9x96xf32> to vector<9x16xf32>
    %153 = arith.truncf %150 : vector<9x16xf32> to vector<9x16xbf16>
    %154 = arith.truncf %151 : vector<9x16xf32> to vector<9x16xbf16>
    %cst_77 = arith.constant dense<0.000000e+00> : vector<9x9xf32>
    %155 = tpu.matmul %153, %154, %cst_77 {dimension_numbers = #tpu.dot_dimension_numbers<[1], [1], [0], [0], [0, 0, 1, 0], [], []>} : vector<9x16xbf16>, vector<9x16xbf16>, vector<9x9xf32> -> vector<9x9xf32>
    %cst_78 = arith.constant 2.500000e-01 : f32
    %156 = vector.broadcast %cst_78 : f32 to vector<9x9xf32>
    %157 = arith.mulf %155, %156 : vector<9x9xf32>
    %158 = vector.broadcast %145 : vector<1x9xf32> to vector<9x9xf32>
    %159 = arith.addf %157, %158 : vector<9x9xf32>
    %cst_79 = arith.constant dense<0xFF800000> : vector<9xf32>
    %160 = vector.multi_reduction <maximumf>, %159, %cst_79 [1] : vector<9x9xf32> to vector<9xf32>
    %161 = vector.shape_cast %160 : vector<9xf32> to vector<9x1xf32>
    %162 = vector.broadcast %161 : vector<9x1xf32> to vector<9x9xf32>
    %163 = arith.subf %159, %162 : vector<9x9xf32>
    %164 = math.exp %163 : vector<9x9xf32>
    %cst_80 = arith.constant dense<0.000000e+00> : vector<9xf32>
    %165 = vector.multi_reduction <add>, %164, %cst_80 [1] : vector<9x9xf32> to vector<9xf32>
    %166 = vector.shape_cast %165 : vector<9xf32> to vector<9x1xf32>
    %167 = tpu.reciprocal %166 {approx = true} : vector<9x1xf32> -> vector<9x1xf32>
    %168 = vector.broadcast %167 : vector<9x1xf32> to vector<9x9xf32>
    %169 = arith.mulf %164, %168 : vector<9x9xf32>
    %170 = arith.truncf %169 : vector<9x9xf32> to vector<9x9xbf16>
    %171 = arith.truncf %152 : vector<9x16xf32> to vector<9x16xbf16>
    %cst_81 = arith.constant dense<0.000000e+00> : vector<9x16xf32>
    %172 = tpu.matmul %170, %171, %cst_81 {dimension_numbers = #tpu.dot_dimension_numbers<[1], [0], [0], [1], [0, 0, 1, 1], [], []>} : vector<9x9xbf16>, vector<9x16xbf16>, vector<9x16xf32> -> vector<9x16xf32>
    %173 = vector.extract_strided_slice %149 {offsets = [0, 16], sizes = [9, 16], strides = [1, 1]} : vector<9x96xf32> to vector<9x16xf32>
    %174 = vector.extract_strided_slice %149 {offsets = [0, 48], sizes = [9, 16], strides = [1, 1]} : vector<9x96xf32> to vector<9x16xf32>
    %175 = vector.extract_strided_slice %149 {offsets = [0, 80], sizes = [9, 16], strides = [1, 1]} : vector<9x96xf32> to vector<9x16xf32>
    %176 = arith.truncf %173 : vector<9x16xf32> to vector<9x16xbf16>
    %177 = arith.truncf %174 : vector<9x16xf32> to vector<9x16xbf16>
    %cst_82 = arith.constant dense<0.000000e+00> : vector<9x9xf32>
    %178 = tpu.matmul %176, %177, %cst_82 {dimension_numbers = #tpu.dot_dimension_numbers<[1], [1], [0], [0], [0, 0, 1, 0], [], []>} : vector<9x16xbf16>, vector<9x16xbf16>, vector<9x9xf32> -> vector<9x9xf32>
    %cst_83 = arith.constant 2.500000e-01 : f32
    %179 = vector.broadcast %cst_83 : f32 to vector<9x9xf32>
    %180 = arith.mulf %178, %179 : vector<9x9xf32>
    %181 = vector.broadcast %145 : vector<1x9xf32> to vector<9x9xf32>
    %182 = arith.addf %180, %181 : vector<9x9xf32>
    %cst_84 = arith.constant dense<0xFF800000> : vector<9xf32>
    %183 = vector.multi_reduction <maximumf>, %182, %cst_84 [1] : vector<9x9xf32> to vector<9xf32>
    %184 = vector.shape_cast %183 : vector<9xf32> to vector<9x1xf32>
    %185 = vector.broadcast %184 : vector<9x1xf32> to vector<9x9xf32>
    %186 = arith.subf %182, %185 : vector<9x9xf32>
    %187 = math.exp %186 : vector<9x9xf32>
    %cst_85 = arith.constant dense<0.000000e+00> : vector<9xf32>
    %188 = vector.multi_reduction <add>, %187, %cst_85 [1] : vector<9x9xf32> to vector<9xf32>
    %189 = vector.shape_cast %188 : vector<9xf32> to vector<9x1xf32>
    %190 = tpu.reciprocal %189 {approx = true} : vector<9x1xf32> -> vector<9x1xf32>
    %191 = vector.broadcast %190 : vector<9x1xf32> to vector<9x9xf32>
    %192 = arith.mulf %187, %191 : vector<9x9xf32>
    %193 = arith.truncf %192 : vector<9x9xf32> to vector<9x9xbf16>
    %194 = arith.truncf %175 : vector<9x16xf32> to vector<9x16xbf16>
    %cst_86 = arith.constant dense<0.000000e+00> : vector<9x16xf32>
    %195 = tpu.matmul %193, %194, %cst_86 {dimension_numbers = #tpu.dot_dimension_numbers<[1], [0], [0], [1], [0, 0, 1, 1], [], []>} : vector<9x9xbf16>, vector<9x16xbf16>, vector<9x16xf32> -> vector<9x16xf32>
    %196 = tpu.concatenate %172, %195 in 1 : vector<9x16xf32>, vector<9x16xf32> -> vector<9x32xf32>
    %197 = arith.truncf %196 : vector<9x32xf32> to vector<9x32xbf16>
    %cst_87 = arith.constant dense<0.000000e+00> : vector<9x32xf32>
    %198 = tpu.matmul %197, %5, %cst_87 {dimension_numbers = #tpu.dot_dimension_numbers<[1], [0], [0], [1], [0, 0, 1, 1], [], []>} : vector<9x32xbf16>, vector<32x32xbf16>, vector<9x32xf32> -> vector<9x32xf32>
    %199 = vector.broadcast %7 : vector<1x32xf32> to vector<9x32xf32>
    %200 = arith.addf %198, %199 : vector<9x32xf32>
    %201 = arith.addf %143, %200 : vector<9x32xf32>
    %cst_88 = arith.constant dense<0.000000e+00> : vector<9xf32>
    %202 = vector.multi_reduction <add>, %201, %cst_88 [1] : vector<9x32xf32> to vector<9xf32>
    %203 = vector.shape_cast %202 : vector<9xf32> to vector<9x1xf32>
    %cst_89 = arith.constant 3.200000e+01 : f32
    %204 = vector.broadcast %cst_89 : f32 to vector<9x1xf32>
    %205 = arith.divf %203, %204 : vector<9x1xf32>
    %206 = vector.broadcast %205 : vector<9x1xf32> to vector<9x32xf32>
    %207 = arith.subf %201, %206 : vector<9x32xf32>
    %208 = arith.mulf %207, %207 : vector<9x32xf32>
    %cst_90 = arith.constant dense<0.000000e+00> : vector<9xf32>
    %209 = vector.multi_reduction <add>, %208, %cst_90 [1] : vector<9x32xf32> to vector<9xf32>
    %210 = vector.shape_cast %209 : vector<9xf32> to vector<9x1xf32>
    %cst_91 = arith.constant 3.200000e+01 : f32
    %211 = vector.broadcast %cst_91 : f32 to vector<9x1xf32>
    %212 = arith.divf %210, %211 : vector<9x1xf32>
    %213 = vector.broadcast %205 : vector<9x1xf32> to vector<9x32xf32>
    %214 = arith.subf %201, %213 : vector<9x32xf32>
    %cst_92 = arith.constant 9.99999974E-6 : f32
    %215 = vector.broadcast %cst_92 : f32 to vector<9x1xf32>
    %216 = arith.addf %212, %215 : vector<9x1xf32>
    %217 = math.rsqrt %216 : vector<9x1xf32>
    %218 = vector.broadcast %217 : vector<9x1xf32> to vector<9x32xf32>
    %219 = arith.mulf %214, %218 : vector<9x32xf32>
    %220 = vector.broadcast %9 : vector<1x32xf32> to vector<9x32xf32>
    %221 = arith.mulf %219, %220 : vector<9x32xf32>
    %222 = vector.broadcast %11 : vector<1x32xf32> to vector<9x32xf32>
    %223 = arith.addf %221, %222 : vector<9x32xf32>
    %224 = arith.truncf %223 : vector<9x32xf32> to vector<9x32xbf16>
    %cst_93 = arith.constant dense<0.000000e+00> : vector<9x64xf32>
    %225 = tpu.matmul %224, %13, %cst_93 {dimension_numbers = #tpu.dot_dimension_numbers<[1], [0], [0], [1], [0, 0, 1, 1], [], []>} : vector<9x32xbf16>, vector<32x64xbf16>, vector<9x64xf32> -> vector<9x64xf32>
    %226 = vector.broadcast %15 : vector<1x64xf32> to vector<9x64xf32>
    %227 = arith.addf %225, %226 : vector<9x64xf32>
    %cst_94 = arith.constant 0.000000e+00 : f32
    %228 = vector.broadcast %cst_94 : f32 to vector<9x64xf32>
    %229 = arith.maximumf %227, %228 : vector<9x64xf32>
    %230 = arith.truncf %229 : vector<9x64xf32> to vector<9x64xbf16>
    %cst_95 = arith.constant dense<0.000000e+00> : vector<9x32xf32>
    %231 = tpu.matmul %230, %17, %cst_95 {dimension_numbers = #tpu.dot_dimension_numbers<[1], [0], [0], [1], [0, 0, 1, 1], [], []>} : vector<9x64xbf16>, vector<64x32xbf16>, vector<9x32xf32> -> vector<9x32xf32>
    %232 = vector.broadcast %19 : vector<1x32xf32> to vector<9x32xf32>
    %233 = arith.addf %231, %232 : vector<9x32xf32>
    %234 = arith.addf %223, %233 : vector<9x32xf32>
    %cst_96 = arith.constant dense<0.000000e+00> : vector<9xf32>
    %235 = vector.multi_reduction <add>, %234, %cst_96 [1] : vector<9x32xf32> to vector<9xf32>
    %236 = vector.shape_cast %235 : vector<9xf32> to vector<9x1xf32>
    %cst_97 = arith.constant 3.200000e+01 : f32
    %237 = vector.broadcast %cst_97 : f32 to vector<9x1xf32>
    %238 = arith.divf %236, %237 : vector<9x1xf32>
    %239 = vector.broadcast %238 : vector<9x1xf32> to vector<9x32xf32>
    %240 = arith.subf %234, %239 : vector<9x32xf32>
    %241 = arith.mulf %240, %240 : vector<9x32xf32>
    %cst_98 = arith.constant dense<0.000000e+00> : vector<9xf32>
    %242 = vector.multi_reduction <add>, %241, %cst_98 [1] : vector<9x32xf32> to vector<9xf32>
    %243 = vector.shape_cast %242 : vector<9xf32> to vector<9x1xf32>
    %cst_99 = arith.constant 3.200000e+01 : f32
    %244 = vector.broadcast %cst_99 : f32 to vector<9x1xf32>
    %245 = arith.divf %243, %244 : vector<9x1xf32>
    %246 = vector.broadcast %238 : vector<9x1xf32> to vector<9x32xf32>
    %247 = arith.subf %234, %246 : vector<9x32xf32>
    %cst_100 = arith.constant 9.99999974E-6 : f32
    %248 = vector.broadcast %cst_100 : f32 to vector<9x1xf32>
    %249 = arith.addf %245, %248 : vector<9x1xf32>
    %250 = math.rsqrt %249 : vector<9x1xf32>
    %251 = vector.broadcast %250 : vector<9x1xf32> to vector<9x32xf32>
    %252 = arith.mulf %247, %251 : vector<9x32xf32>
    %253 = vector.broadcast %21 : vector<1x32xf32> to vector<9x32xf32>
    %254 = arith.mulf %252, %253 : vector<9x32xf32>
    %255 = vector.broadcast %23 : vector<1x32xf32> to vector<9x32xf32>
    %256 = arith.addf %254, %255 : vector<9x32xf32>
    %c0_101 = arith.constant 0 : index
    %c1_102 = arith.constant 1 : index
    %c0_103 = arith.constant 0 : index
    %c0_104 = arith.constant 0 : index
    %257 = vector.load %arg15[%c0_101, %c1_102, %c0_103, %c0_104] : memref<1x2x9x32xf32, #tpu.memory_space<vmem>>, vector<1x1x9x32xf32>
    %258 = vector.shape_cast %257 : vector<1x1x9x32xf32> to vector<9x32xf32>
    %259 = vector.shape_cast %256 : vector<9x32xf32> to vector<1x1x9x32xf32>
    tpu.vector_store %arg15[%c0_101, %c1_102, %c0_103, %c0_104], %259 {strides = array<i32>} : memref<1x2x9x32xf32, #tpu.memory_space<vmem>>, vector<1x1x9x32xf32>,
    return
  }
  func.func @transform_0(%arg0: i32) -> (i32, i32, i32, i32) {
    %c0_i32 = arith.constant 0 : i32
    %c0_i32_0 = arith.constant 0 : i32
    %c0_i32_1 = arith.constant 0 : i32
    %c0_i32_2 = arith.constant 0 : i32
    return %arg0, %c0_i32, %c0_i32_0, %c0_i32_1 : i32, i32, i32, i32
  }
  func.func @transform_1(%arg0: i32) -> (i32, i32, i32) {
    %c0_i32 = arith.constant 0 : i32
    %c0_i32_0 = arith.constant 0 : i32
    %c0_i32_1 = arith.constant 0 : i32
    %c0_i32_2 = arith.constant 0 : i32
    return %c0_i32, %c0_i32_0, %c0_i32_1 : i32, i32, i32
  }
  func.func @transform_2(%arg0: i32) -> (i32, i32, i32) {
    %c0_i32 = arith.constant 0 : i32
    %c0_i32_0 = arith.constant 0 : i32
    %c0_i32_1 = arith.constant 0 : i32
    return %arg0, %c0_i32, %c0_i32_0 : i32, i32, i32
  }
  func.func @transform_3(%arg0: i32) -> (i32, i32, i32) {
    %c0_i32 = arith.constant 0 : i32
    %c0_i32_0 = arith.constant 0 : i32
    %c0_i32_1 = arith.constant 0 : i32
    return %arg0, %c0_i32, %c0_i32_0 : i32, i32, i32
  }
  func.func @transform_4(%arg0: i32) -> (i32, i32, i32) {
    %c0_i32 = arith.constant 0 : i32
    %c0_i32_0 = arith.constant 0 : i32
    %c0_i32_1 = arith.constant 0 : i32
    return %arg0, %c0_i32, %c0_i32_0 : i32, i32, i32
  }
  func.func @transform_5(%arg0: i32) -> (i32, i32, i32) {
    %c0_i32 = arith.constant 0 : i32
    %c0_i32_0 = arith.constant 0 : i32
    %c0_i32_1 = arith.constant 0 : i32
    return %arg0, %c0_i32, %c0_i32_0 : i32, i32, i32
  }
  func.func @transform_6(%arg0: i32) -> (i32, i32, i32) {
    %c0_i32 = arith.constant 0 : i32
    %c0_i32_0 = arith.constant 0 : i32
    %c0_i32_1 = arith.constant 0 : i32
    return %arg0, %c0_i32, %c0_i32_0 : i32, i32, i32
  }
  func.func @transform_7(%arg0: i32) -> (i32, i32, i32) {
    %c0_i32 = arith.constant 0 : i32
    %c0_i32_0 = arith.constant 0 : i32
    %c0_i32_1 = arith.constant 0 : i32
    return %arg0, %c0_i32, %c0_i32_0 : i32, i32, i32
  }
  func.func @transform_8(%arg0: i32) -> (i32, i32, i32) {
    %c0_i32 = arith.constant 0 : i32
    %c0_i32_0 = arith.constant 0 : i32
    %c0_i32_1 = arith.constant 0 : i32
    return %arg0, %c0_i32, %c0_i32_0 : i32, i32, i32
  }
  func.func @transform_9(%arg0: i32) -> (i32, i32, i32) {
    %c0_i32 = arith.constant 0 : i32
    %c0_i32_0 = arith.constant 0 : i32
    %c0_i32_1 = arith.constant 0 : i32
    return %arg0, %c0_i32, %c0_i32_0 : i32, i32, i32
  }
  func.func @transform_10(%arg0: i32) -> (i32, i32, i32) {
    %c0_i32 = arith.constant 0 : i32
    %c0_i32_0 = arith.constant 0 : i32
    %c0_i32_1 = arith.constant 0 : i32
    return %arg0, %c0_i32, %c0_i32_0 : i32, i32, i32
  }
  func.func @transform_11(%arg0: i32) -> (i32, i32, i32) {
    %c0_i32 = arith.constant 0 : i32
    %c0_i32_0 = arith.constant 0 : i32
    %c0_i32_1 = arith.constant 0 : i32
    return %arg0, %c0_i32, %c0_i32_0 : i32, i32, i32
  }
  func.func @transform_12(%arg0: i32) -> (i32, i32, i32) {
    %c0_i32 = arith.constant 0 : i32
    %c0_i32_0 = arith.constant 0 : i32
    %c0_i32_1 = arith.constant 0 : i32
    return %arg0, %c0_i32, %c0_i32_0 : i32, i32, i32
  }
  func.func @transform_13(%arg0: i32) -> (i32, i32, i32) {
    %c0_i32 = arith.constant 0 : i32
    %c0_i32_0 = arith.constant 0 : i32
    %c0_i32_1 = arith.constant 0 : i32
    return %arg0, %c0_i32, %c0_i32_0 : i32, i32, i32
  }
  func.func @transform_14(%arg0: i32) -> (i32, i32, i32, i32) {
    %c0_i32 = arith.constant 0 : i32
    %c0_i32_0 = arith.constant 0 : i32
    %c0_i32_1 = arith.constant 0 : i32
    %c0_i32_2 = arith.constant 0 : i32
    return %arg0, %c0_i32, %c0_i32_0, %c0_i32_1 : i32, i32, i32, i32
  }
}

module attributes {stable_mosaic.version = 11 : i64} {
  func.func @_fused_block_kernel(%arg0: i32, %arg1: memref<1x1x54x32xf32, #tpu.memory_space<vmem>>, %arg2: memref<1x1x54xf32, #tpu.memory_space<vmem>>, %arg3: memref<1x32x96xbf16, #tpu.memory_space<vmem>>, %arg4: memref<1x1x96xf32, #tpu.memory_space<vmem>>, %arg5: memref<1x32x32xbf16, #tpu.memory_space<vmem>>, %arg6: memref<1x1x32xf32, #tpu.memory_space<vmem>>, %arg7: memref<1x1x32xf32, #tpu.memory_space<vmem>>, %arg8: memref<1x1x32xf32, #tpu.memory_space<vmem>>, %arg9: memref<1x32x64xbf16, #tpu.memory_space<vmem>>, %arg10: memref<1x1x64xf32, #tpu.memory_space<vmem>>, %arg11: memref<1x64x32xbf16, #tpu.memory_space<vmem>>, %arg12: memref<1x1x32xf32, #tpu.memory_space<vmem>>, %arg13: memref<1x1x32xf32, #tpu.memory_space<vmem>>, %arg14: memref<1x1x32xf32, #tpu.memory_space<vmem>>, %arg15: memref<1x1x54x32xf32, #tpu.memory_space<vmem>>) attributes {dimension_semantics = [#tpu.dimension_semantics<parallel>], iteration_bounds = array<i64: 2>, scalar_prefetch = 0 : i64, scratch_operands = 0 : i64, tpu.core_type = #tpu.core_type<tc>, window_params = [{transform_indices = @transform_0, window_bounds = array<i64: 1, 1, 54, 32>}, {transform_indices = @transform_1, window_bounds = array<i64: 1, 1, 54>}, {pipeline_mode = #tpu.pipeline_mode<synchronous>, transform_indices = @transform_2, window_bounds = array<i64: 1, 32, 96>}, {pipeline_mode = #tpu.pipeline_mode<synchronous>, transform_indices = @transform_3, window_bounds = array<i64: 1, 1, 96>}, {pipeline_mode = #tpu.pipeline_mode<synchronous>, transform_indices = @transform_4, window_bounds = array<i64: 1, 32, 32>}, {pipeline_mode = #tpu.pipeline_mode<synchronous>, transform_indices = @transform_5, window_bounds = array<i64: 1, 1, 32>}, {pipeline_mode = #tpu.pipeline_mode<synchronous>, transform_indices = @transform_6, window_bounds = array<i64: 1, 1, 32>}, {pipeline_mode = #tpu.pipeline_mode<synchronous>, transform_indices = @transform_7, window_bounds = array<i64: 1, 1, 32>}, {pipeline_mode = #tpu.pipeline_mode<synchronous>, transform_indices = @transform_8, window_bounds = array<i64: 1, 32, 64>}, {pipeline_mode = #tpu.pipeline_mode<synchronous>, transform_indices = @transform_9, window_bounds = array<i64: 1, 1, 64>}, {pipeline_mode = #tpu.pipeline_mode<synchronous>, transform_indices = @transform_10, window_bounds = array<i64: 1, 64, 32>}, {pipeline_mode = #tpu.pipeline_mode<synchronous>, transform_indices = @transform_11, window_bounds = array<i64: 1, 1, 32>}, {pipeline_mode = #tpu.pipeline_mode<synchronous>, transform_indices = @transform_12, window_bounds = array<i64: 1, 1, 32>}, {pipeline_mode = #tpu.pipeline_mode<synchronous>, transform_indices = @transform_13, window_bounds = array<i64: 1, 1, 32>}, {transform_indices = @transform_14, window_bounds = array<i64: 1, 1, 54, 32>}]} {
    %c0 = arith.constant 0 : index
    %c0_0 = arith.constant 0 : index
    %c0_1 = arith.constant 0 : index
    %0 = vector.load %arg3[%c0, %c0_0, %c0_1] : memref<1x32x96xbf16, #tpu.memory_space<vmem>>, vector<1x32x96xbf16>
    %1 = vector.shape_cast %0 : vector<1x32x96xbf16> to vector<32x96xbf16>
    %c0_2 = arith.constant 0 : index
    %c0_3 = arith.constant 0 : index
    %c0_4 = arith.constant 0 : index
    %2 = vector.load %arg4[%c0_2, %c0_3, %c0_4] : memref<1x1x96xf32, #tpu.memory_space<vmem>>, vector<1x1x96xf32>
    %3 = vector.shape_cast %2 : vector<1x1x96xf32> to vector<1x96xf32>
    %c0_5 = arith.constant 0 : index
    %c0_6 = arith.constant 0 : index
    %c0_7 = arith.constant 0 : index
    %4 = vector.load %arg5[%c0_5, %c0_6, %c0_7] : memref<1x32x32xbf16, #tpu.memory_space<vmem>>, vector<1x32x32xbf16>
    %5 = vector.shape_cast %4 : vector<1x32x32xbf16> to vector<32x32xbf16>
    %c0_8 = arith.constant 0 : index
    %c0_9 = arith.constant 0 : index
    %c0_10 = arith.constant 0 : index
    %6 = vector.load %arg6[%c0_8, %c0_9, %c0_10] : memref<1x1x32xf32, #tpu.memory_space<vmem>>, vector<1x1x32xf32>
    %7 = vector.shape_cast %6 : vector<1x1x32xf32> to vector<1x32xf32>
    %c0_11 = arith.constant 0 : index
    %c0_12 = arith.constant 0 : index
    %c0_13 = arith.constant 0 : index
    %8 = vector.load %arg7[%c0_11, %c0_12, %c0_13] : memref<1x1x32xf32, #tpu.memory_space<vmem>>, vector<1x1x32xf32>
    %9 = vector.shape_cast %8 : vector<1x1x32xf32> to vector<1x32xf32>
    %c0_14 = arith.constant 0 : index
    %c0_15 = arith.constant 0 : index
    %c0_16 = arith.constant 0 : index
    %10 = vector.load %arg8[%c0_14, %c0_15, %c0_16] : memref<1x1x32xf32, #tpu.memory_space<vmem>>, vector<1x1x32xf32>
    %11 = vector.shape_cast %10 : vector<1x1x32xf32> to vector<1x32xf32>
    %c0_17 = arith.constant 0 : index
    %c0_18 = arith.constant 0 : index
    %c0_19 = arith.constant 0 : index
    %12 = vector.load %arg9[%c0_17, %c0_18, %c0_19] : memref<1x32x64xbf16, #tpu.memory_space<vmem>>, vector<1x32x64xbf16>
    %13 = vector.shape_cast %12 : vector<1x32x64xbf16> to vector<32x64xbf16>
    %c0_20 = arith.constant 0 : index
    %c0_21 = arith.constant 0 : index
    %c0_22 = arith.constant 0 : index
    %14 = vector.load %arg10[%c0_20, %c0_21, %c0_22] : memref<1x1x64xf32, #tpu.memory_space<vmem>>, vector<1x1x64xf32>
    %15 = vector.shape_cast %14 : vector<1x1x64xf32> to vector<1x64xf32>
    %c0_23 = arith.constant 0 : index
    %c0_24 = arith.constant 0 : index
    %c0_25 = arith.constant 0 : index
    %16 = vector.load %arg11[%c0_23, %c0_24, %c0_25] : memref<1x64x32xbf16, #tpu.memory_space<vmem>>, vector<1x64x32xbf16>
    %17 = vector.shape_cast %16 : vector<1x64x32xbf16> to vector<64x32xbf16>
    %c0_26 = arith.constant 0 : index
    %c0_27 = arith.constant 0 : index
    %c0_28 = arith.constant 0 : index
    %18 = vector.load %arg12[%c0_26, %c0_27, %c0_28] : memref<1x1x32xf32, #tpu.memory_space<vmem>>, vector<1x1x32xf32>
    %19 = vector.shape_cast %18 : vector<1x1x32xf32> to vector<1x32xf32>
    %c0_29 = arith.constant 0 : index
    %c0_30 = arith.constant 0 : index
    %c0_31 = arith.constant 0 : index
    %20 = vector.load %arg13[%c0_29, %c0_30, %c0_31] : memref<1x1x32xf32, #tpu.memory_space<vmem>>, vector<1x1x32xf32>
    %21 = vector.shape_cast %20 : vector<1x1x32xf32> to vector<1x32xf32>
    %c0_32 = arith.constant 0 : index
    %c0_33 = arith.constant 0 : index
    %c0_34 = arith.constant 0 : index
    %22 = vector.load %arg14[%c0_32, %c0_33, %c0_34] : memref<1x1x32xf32, #tpu.memory_space<vmem>>, vector<1x1x32xf32>
    %23 = vector.shape_cast %22 : vector<1x1x32xf32> to vector<1x32xf32>
    %c0_35 = arith.constant 0 : index
    %c0_36 = arith.constant 0 : index
    %c0_37 = arith.constant 0 : index
    %c0_38 = arith.constant 0 : index
    %24 = vector.load %arg1[%c0_35, %c0_36, %c0_37, %c0_38] : memref<1x1x54x32xf32, #tpu.memory_space<vmem>>, vector<1x1x54x32xf32>
    %25 = vector.shape_cast %24 : vector<1x1x54x32xf32> to vector<54x32xf32>
    %c0_39 = arith.constant 0 : index
    %c0_40 = arith.constant 0 : index
    %c0_41 = arith.constant 0 : index
    %26 = vector.load %arg2[%c0_39, %c0_40, %c0_41] : memref<1x1x54xf32, #tpu.memory_space<vmem>>, vector<1x1x54xf32>
    %27 = vector.shape_cast %26 : vector<1x1x54xf32> to vector<1x54xf32>
    %28 = arith.truncf %25 : vector<54x32xf32> to vector<54x32xbf16>
    %cst = arith.constant dense<0.000000e+00> : vector<54x96xf32>
    %29 = tpu.matmul %28, %1, %cst {dimension_numbers = #tpu.dot_dimension_numbers<[1], [0], [0], [1], [0, 0, 1, 1], [], []>} : vector<54x32xbf16>, vector<32x96xbf16>, vector<54x96xf32> -> vector<54x96xf32>
    %30 = vector.broadcast %3 : vector<1x96xf32> to vector<54x96xf32>
    %31 = arith.addf %29, %30 : vector<54x96xf32>
    %32 = vector.extract_strided_slice %31 {offsets = [0, 0], sizes = [54, 16], strides = [1, 1]} : vector<54x96xf32> to vector<54x16xf32>
    %33 = vector.extract_strided_slice %31 {offsets = [0, 32], sizes = [54, 16], strides = [1, 1]} : vector<54x96xf32> to vector<54x16xf32>
    %34 = vector.extract_strided_slice %31 {offsets = [0, 64], sizes = [54, 16], strides = [1, 1]} : vector<54x96xf32> to vector<54x16xf32>
    %35 = arith.truncf %32 : vector<54x16xf32> to vector<54x16xbf16>
    %36 = arith.truncf %33 : vector<54x16xf32> to vector<54x16xbf16>
    %cst_42 = arith.constant dense<0.000000e+00> : vector<54x54xf32>
    %37 = tpu.matmul %35, %36, %cst_42 {dimension_numbers = #tpu.dot_dimension_numbers<[1], [1], [0], [0], [0, 0, 1, 0], [], []>} : vector<54x16xbf16>, vector<54x16xbf16>, vector<54x54xf32> -> vector<54x54xf32>
    %cst_43 = arith.constant 2.500000e-01 : f32
    %38 = vector.broadcast %cst_43 : f32 to vector<54x54xf32>
    %39 = arith.mulf %37, %38 : vector<54x54xf32>
    %40 = vector.broadcast %27 : vector<1x54xf32> to vector<54x54xf32>
    %41 = arith.addf %39, %40 : vector<54x54xf32>
    %cst_44 = arith.constant dense<0xFF800000> : vector<54xf32>
    %42 = vector.multi_reduction <maximumf>, %41, %cst_44 [1] : vector<54x54xf32> to vector<54xf32>
    %43 = vector.shape_cast %42 : vector<54xf32> to vector<54x1xf32>
    %44 = vector.broadcast %43 : vector<54x1xf32> to vector<54x54xf32>
    %45 = arith.subf %41, %44 : vector<54x54xf32>
    %46 = math.exp %45 : vector<54x54xf32>
    %cst_45 = arith.constant dense<0.000000e+00> : vector<54xf32>
    %47 = vector.multi_reduction <add>, %46, %cst_45 [1] : vector<54x54xf32> to vector<54xf32>
    %48 = vector.shape_cast %47 : vector<54xf32> to vector<54x1xf32>
    %49 = tpu.reciprocal %48 {approx = true} : vector<54x1xf32> -> vector<54x1xf32>
    %50 = vector.broadcast %49 : vector<54x1xf32> to vector<54x54xf32>
    %51 = arith.mulf %46, %50 : vector<54x54xf32>
    %52 = arith.truncf %51 : vector<54x54xf32> to vector<54x54xbf16>
    %53 = arith.truncf %34 : vector<54x16xf32> to vector<54x16xbf16>
    %cst_46 = arith.constant dense<0.000000e+00> : vector<54x16xf32>
    %54 = tpu.matmul %52, %53, %cst_46 {dimension_numbers = #tpu.dot_dimension_numbers<[1], [0], [0], [1], [0, 0, 1, 1], [], []>} : vector<54x54xbf16>, vector<54x16xbf16>, vector<54x16xf32> -> vector<54x16xf32>
    %55 = vector.extract_strided_slice %31 {offsets = [0, 16], sizes = [54, 16], strides = [1, 1]} : vector<54x96xf32> to vector<54x16xf32>
    %56 = vector.extract_strided_slice %31 {offsets = [0, 48], sizes = [54, 16], strides = [1, 1]} : vector<54x96xf32> to vector<54x16xf32>
    %57 = vector.extract_strided_slice %31 {offsets = [0, 80], sizes = [54, 16], strides = [1, 1]} : vector<54x96xf32> to vector<54x16xf32>
    %58 = arith.truncf %55 : vector<54x16xf32> to vector<54x16xbf16>
    %59 = arith.truncf %56 : vector<54x16xf32> to vector<54x16xbf16>
    %cst_47 = arith.constant dense<0.000000e+00> : vector<54x54xf32>
    %60 = tpu.matmul %58, %59, %cst_47 {dimension_numbers = #tpu.dot_dimension_numbers<[1], [1], [0], [0], [0, 0, 1, 0], [], []>} : vector<54x16xbf16>, vector<54x16xbf16>, vector<54x54xf32> -> vector<54x54xf32>
    %cst_48 = arith.constant 2.500000e-01 : f32
    %61 = vector.broadcast %cst_48 : f32 to vector<54x54xf32>
    %62 = arith.mulf %60, %61 : vector<54x54xf32>
    %63 = vector.broadcast %27 : vector<1x54xf32> to vector<54x54xf32>
    %64 = arith.addf %62, %63 : vector<54x54xf32>
    %cst_49 = arith.constant dense<0xFF800000> : vector<54xf32>
    %65 = vector.multi_reduction <maximumf>, %64, %cst_49 [1] : vector<54x54xf32> to vector<54xf32>
    %66 = vector.shape_cast %65 : vector<54xf32> to vector<54x1xf32>
    %67 = vector.broadcast %66 : vector<54x1xf32> to vector<54x54xf32>
    %68 = arith.subf %64, %67 : vector<54x54xf32>
    %69 = math.exp %68 : vector<54x54xf32>
    %cst_50 = arith.constant dense<0.000000e+00> : vector<54xf32>
    %70 = vector.multi_reduction <add>, %69, %cst_50 [1] : vector<54x54xf32> to vector<54xf32>
    %71 = vector.shape_cast %70 : vector<54xf32> to vector<54x1xf32>
    %72 = tpu.reciprocal %71 {approx = true} : vector<54x1xf32> -> vector<54x1xf32>
    %73 = vector.broadcast %72 : vector<54x1xf32> to vector<54x54xf32>
    %74 = arith.mulf %69, %73 : vector<54x54xf32>
    %75 = arith.truncf %74 : vector<54x54xf32> to vector<54x54xbf16>
    %76 = arith.truncf %57 : vector<54x16xf32> to vector<54x16xbf16>
    %cst_51 = arith.constant dense<0.000000e+00> : vector<54x16xf32>
    %77 = tpu.matmul %75, %76, %cst_51 {dimension_numbers = #tpu.dot_dimension_numbers<[1], [0], [0], [1], [0, 0, 1, 1], [], []>} : vector<54x54xbf16>, vector<54x16xbf16>, vector<54x16xf32> -> vector<54x16xf32>
    %78 = tpu.concatenate %54, %77 in 1 : vector<54x16xf32>, vector<54x16xf32> -> vector<54x32xf32>
    %79 = arith.truncf %78 : vector<54x32xf32> to vector<54x32xbf16>
    %cst_52 = arith.constant dense<0.000000e+00> : vector<54x32xf32>
    %80 = tpu.matmul %79, %5, %cst_52 {dimension_numbers = #tpu.dot_dimension_numbers<[1], [0], [0], [1], [0, 0, 1, 1], [], []>} : vector<54x32xbf16>, vector<32x32xbf16>, vector<54x32xf32> -> vector<54x32xf32>
    %81 = vector.broadcast %7 : vector<1x32xf32> to vector<54x32xf32>
    %82 = arith.addf %80, %81 : vector<54x32xf32>
    %83 = arith.addf %25, %82 : vector<54x32xf32>
    %cst_53 = arith.constant dense<0.000000e+00> : vector<54xf32>
    %84 = vector.multi_reduction <add>, %83, %cst_53 [1] : vector<54x32xf32> to vector<54xf32>
    %85 = vector.shape_cast %84 : vector<54xf32> to vector<54x1xf32>
    %cst_54 = arith.constant 3.200000e+01 : f32
    %86 = vector.broadcast %cst_54 : f32 to vector<54x1xf32>
    %87 = arith.divf %85, %86 : vector<54x1xf32>
    %88 = vector.broadcast %87 : vector<54x1xf32> to vector<54x32xf32>
    %89 = arith.subf %83, %88 : vector<54x32xf32>
    %90 = arith.mulf %89, %89 : vector<54x32xf32>
    %cst_55 = arith.constant dense<0.000000e+00> : vector<54xf32>
    %91 = vector.multi_reduction <add>, %90, %cst_55 [1] : vector<54x32xf32> to vector<54xf32>
    %92 = vector.shape_cast %91 : vector<54xf32> to vector<54x1xf32>
    %cst_56 = arith.constant 3.200000e+01 : f32
    %93 = vector.broadcast %cst_56 : f32 to vector<54x1xf32>
    %94 = arith.divf %92, %93 : vector<54x1xf32>
    %95 = vector.broadcast %87 : vector<54x1xf32> to vector<54x32xf32>
    %96 = arith.subf %83, %95 : vector<54x32xf32>
    %cst_57 = arith.constant 9.99999974E-6 : f32
    %97 = vector.broadcast %cst_57 : f32 to vector<54x1xf32>
    %98 = arith.addf %94, %97 : vector<54x1xf32>
    %99 = math.rsqrt %98 : vector<54x1xf32>
    %100 = vector.broadcast %99 : vector<54x1xf32> to vector<54x32xf32>
    %101 = arith.mulf %96, %100 : vector<54x32xf32>
    %102 = vector.broadcast %9 : vector<1x32xf32> to vector<54x32xf32>
    %103 = arith.mulf %101, %102 : vector<54x32xf32>
    %104 = vector.broadcast %11 : vector<1x32xf32> to vector<54x32xf32>
    %105 = arith.addf %103, %104 : vector<54x32xf32>
    %106 = arith.truncf %105 : vector<54x32xf32> to vector<54x32xbf16>
    %cst_58 = arith.constant dense<0.000000e+00> : vector<54x64xf32>
    %107 = tpu.matmul %106, %13, %cst_58 {dimension_numbers = #tpu.dot_dimension_numbers<[1], [0], [0], [1], [0, 0, 1, 1], [], []>} : vector<54x32xbf16>, vector<32x64xbf16>, vector<54x64xf32> -> vector<54x64xf32>
    %108 = vector.broadcast %15 : vector<1x64xf32> to vector<54x64xf32>
    %109 = arith.addf %107, %108 : vector<54x64xf32>
    %cst_59 = arith.constant 0.000000e+00 : f32
    %110 = vector.broadcast %cst_59 : f32 to vector<54x64xf32>
    %111 = arith.maximumf %109, %110 : vector<54x64xf32>
    %112 = arith.truncf %111 : vector<54x64xf32> to vector<54x64xbf16>
    %cst_60 = arith.constant dense<0.000000e+00> : vector<54x32xf32>
    %113 = tpu.matmul %112, %17, %cst_60 {dimension_numbers = #tpu.dot_dimension_numbers<[1], [0], [0], [1], [0, 0, 1, 1], [], []>} : vector<54x64xbf16>, vector<64x32xbf16>, vector<54x32xf32> -> vector<54x32xf32>
    %114 = vector.broadcast %19 : vector<1x32xf32> to vector<54x32xf32>
    %115 = arith.addf %113, %114 : vector<54x32xf32>
    %116 = arith.addf %105, %115 : vector<54x32xf32>
    %cst_61 = arith.constant dense<0.000000e+00> : vector<54xf32>
    %117 = vector.multi_reduction <add>, %116, %cst_61 [1] : vector<54x32xf32> to vector<54xf32>
    %118 = vector.shape_cast %117 : vector<54xf32> to vector<54x1xf32>
    %cst_62 = arith.constant 3.200000e+01 : f32
    %119 = vector.broadcast %cst_62 : f32 to vector<54x1xf32>
    %120 = arith.divf %118, %119 : vector<54x1xf32>
    %121 = vector.broadcast %120 : vector<54x1xf32> to vector<54x32xf32>
    %122 = arith.subf %116, %121 : vector<54x32xf32>
    %123 = arith.mulf %122, %122 : vector<54x32xf32>
    %cst_63 = arith.constant dense<0.000000e+00> : vector<54xf32>
    %124 = vector.multi_reduction <add>, %123, %cst_63 [1] : vector<54x32xf32> to vector<54xf32>
    %125 = vector.shape_cast %124 : vector<54xf32> to vector<54x1xf32>
    %cst_64 = arith.constant 3.200000e+01 : f32
    %126 = vector.broadcast %cst_64 : f32 to vector<54x1xf32>
    %127 = arith.divf %125, %126 : vector<54x1xf32>
    %128 = vector.broadcast %120 : vector<54x1xf32> to vector<54x32xf32>
    %129 = arith.subf %116, %128 : vector<54x32xf32>
    %cst_65 = arith.constant 9.99999974E-6 : f32
    %130 = vector.broadcast %cst_65 : f32 to vector<54x1xf32>
    %131 = arith.addf %127, %130 : vector<54x1xf32>
    %132 = math.rsqrt %131 : vector<54x1xf32>
    %133 = vector.broadcast %132 : vector<54x1xf32> to vector<54x32xf32>
    %134 = arith.mulf %129, %133 : vector<54x32xf32>
    %135 = vector.broadcast %21 : vector<1x32xf32> to vector<54x32xf32>
    %136 = arith.mulf %134, %135 : vector<54x32xf32>
    %137 = vector.broadcast %23 : vector<1x32xf32> to vector<54x32xf32>
    %138 = arith.addf %136, %137 : vector<54x32xf32>
    %c0_66 = arith.constant 0 : index
    %c0_67 = arith.constant 0 : index
    %c0_68 = arith.constant 0 : index
    %c0_69 = arith.constant 0 : index
    %139 = vector.load %arg15[%c0_66, %c0_67, %c0_68, %c0_69] : memref<1x1x54x32xf32, #tpu.memory_space<vmem>>, vector<1x1x54x32xf32>
    %140 = vector.shape_cast %139 : vector<1x1x54x32xf32> to vector<54x32xf32>
    %141 = vector.shape_cast %138 : vector<54x32xf32> to vector<1x1x54x32xf32>
    tpu.vector_store %arg15[%c0_66, %c0_67, %c0_68, %c0_69], %141 {strides = array<i32>} : memref<1x1x54x32xf32, #tpu.memory_space<vmem>>, vector<1x1x54x32xf32>,
    return
  }
  func.func @transform_0(%arg0: i32) -> (i32, i32, i32, i32) {
    %c0_i32 = arith.constant 0 : i32
    %c0_i32_0 = arith.constant 0 : i32
    %c0_i32_1 = arith.constant 0 : i32
    %c0_i32_2 = arith.constant 0 : i32
    return %arg0, %c0_i32, %c0_i32_0, %c0_i32_1 : i32, i32, i32, i32
  }
  func.func @transform_1(%arg0: i32) -> (i32, i32, i32) {
    %c0_i32 = arith.constant 0 : i32
    %c0_i32_0 = arith.constant 0 : i32
    %c0_i32_1 = arith.constant 0 : i32
    return %arg0, %c0_i32, %c0_i32_0 : i32, i32, i32
  }
  func.func @transform_2(%arg0: i32) -> (i32, i32, i32) {
    %c0_i32 = arith.constant 0 : i32
    %c0_i32_0 = arith.constant 0 : i32
    %c0_i32_1 = arith.constant 0 : i32
    %c0_i32_2 = arith.constant 0 : i32
    return %c0_i32, %c0_i32_0, %c0_i32_1 : i32, i32, i32
  }
  func.func @transform_3(%arg0: i32) -> (i32, i32, i32) {
    %c0_i32 = arith.constant 0 : i32
    %c0_i32_0 = arith.constant 0 : i32
    %c0_i32_1 = arith.constant 0 : i32
    %c0_i32_2 = arith.constant 0 : i32
    return %c0_i32, %c0_i32_0, %c0_i32_1 : i32, i32, i32
  }
  func.func @transform_4(%arg0: i32) -> (i32, i32, i32) {
    %c0_i32 = arith.constant 0 : i32
    %c0_i32_0 = arith.constant 0 : i32
    %c0_i32_1 = arith.constant 0 : i32
    %c0_i32_2 = arith.constant 0 : i32
    return %c0_i32, %c0_i32_0, %c0_i32_1 : i32, i32, i32
  }
  func.func @transform_5(%arg0: i32) -> (i32, i32, i32) {
    %c0_i32 = arith.constant 0 : i32
    %c0_i32_0 = arith.constant 0 : i32
    %c0_i32_1 = arith.constant 0 : i32
    %c0_i32_2 = arith.constant 0 : i32
    return %c0_i32, %c0_i32_0, %c0_i32_1 : i32, i32, i32
  }
  func.func @transform_6(%arg0: i32) -> (i32, i32, i32) {
    %c0_i32 = arith.constant 0 : i32
    %c0_i32_0 = arith.constant 0 : i32
    %c0_i32_1 = arith.constant 0 : i32
    %c0_i32_2 = arith.constant 0 : i32
    return %c0_i32, %c0_i32_0, %c0_i32_1 : i32, i32, i32
  }
  func.func @transform_7(%arg0: i32) -> (i32, i32, i32) {
    %c0_i32 = arith.constant 0 : i32
    %c0_i32_0 = arith.constant 0 : i32
    %c0_i32_1 = arith.constant 0 : i32
    %c0_i32_2 = arith.constant 0 : i32
    return %c0_i32, %c0_i32_0, %c0_i32_1 : i32, i32, i32
  }
  func.func @transform_8(%arg0: i32) -> (i32, i32, i32) {
    %c0_i32 = arith.constant 0 : i32
    %c0_i32_0 = arith.constant 0 : i32
    %c0_i32_1 = arith.constant 0 : i32
    %c0_i32_2 = arith.constant 0 : i32
    return %c0_i32, %c0_i32_0, %c0_i32_1 : i32, i32, i32
  }
  func.func @transform_9(%arg0: i32) -> (i32, i32, i32) {
    %c0_i32 = arith.constant 0 : i32
    %c0_i32_0 = arith.constant 0 : i32
    %c0_i32_1 = arith.constant 0 : i32
    %c0_i32_2 = arith.constant 0 : i32
    return %c0_i32, %c0_i32_0, %c0_i32_1 : i32, i32, i32
  }
  func.func @transform_10(%arg0: i32) -> (i32, i32, i32) {
    %c0_i32 = arith.constant 0 : i32
    %c0_i32_0 = arith.constant 0 : i32
    %c0_i32_1 = arith.constant 0 : i32
    %c0_i32_2 = arith.constant 0 : i32
    return %c0_i32, %c0_i32_0, %c0_i32_1 : i32, i32, i32
  }
  func.func @transform_11(%arg0: i32) -> (i32, i32, i32) {
    %c0_i32 = arith.constant 0 : i32
    %c0_i32_0 = arith.constant 0 : i32
    %c0_i32_1 = arith.constant 0 : i32
    %c0_i32_2 = arith.constant 0 : i32
    return %c0_i32, %c0_i32_0, %c0_i32_1 : i32, i32, i32
  }
  func.func @transform_12(%arg0: i32) -> (i32, i32, i32) {
    %c0_i32 = arith.constant 0 : i32
    %c0_i32_0 = arith.constant 0 : i32
    %c0_i32_1 = arith.constant 0 : i32
    %c0_i32_2 = arith.constant 0 : i32
    return %c0_i32, %c0_i32_0, %c0_i32_1 : i32, i32, i32
  }
  func.func @transform_13(%arg0: i32) -> (i32, i32, i32) {
    %c0_i32 = arith.constant 0 : i32
    %c0_i32_0 = arith.constant 0 : i32
    %c0_i32_1 = arith.constant 0 : i32
    %c0_i32_2 = arith.constant 0 : i32
    return %c0_i32, %c0_i32_0, %c0_i32_1 : i32, i32, i32
  }
  func.func @transform_14(%arg0: i32) -> (i32, i32, i32, i32) {
    %c0_i32 = arith.constant 0 : i32
    %c0_i32_0 = arith.constant 0 : i32
    %c0_i32_1 = arith.constant 0 : i32
    %c0_i32_2 = arith.constant 0 : i32
    return %arg0, %c0_i32, %c0_i32_0, %c0_i32_1 : i32, i32, i32, i32
  }
}

module attributes {stable_mosaic.version = 11 : i64} {
  func.func @_repr_kernel(%arg0: i32, %arg1: memref<5x2x32xf32, #tpu.memory_space<vmem>>, %arg2: memref<5x32x16xf32, #tpu.memory_space<vmem>>, %arg3: memref<5x1x16xf32, #tpu.memory_space<vmem>>, %arg4: memref<5x2x16xf32, #tpu.memory_space<vmem>>) attributes {dimension_semantics = [#tpu.dimension_semantics<arbitrary>], iteration_bounds = array<i64: 1>, scalar_prefetch = 0 : i64, scratch_operands = 0 : i64, tpu.core_type = #tpu.core_type<tc>, window_params = [{pipeline_mode = #tpu.pipeline_mode<synchronous>, transform_indices = @transform_0, window_bounds = array<i64: 5, 2, 32>}, {pipeline_mode = #tpu.pipeline_mode<synchronous>, transform_indices = @transform_1, window_bounds = array<i64: 5, 32, 16>}, {pipeline_mode = #tpu.pipeline_mode<synchronous>, transform_indices = @transform_2, window_bounds = array<i64: 5, 1, 16>}, {pipeline_mode = #tpu.pipeline_mode<synchronous>, transform_indices = @transform_3, window_bounds = array<i64: 5, 2, 16>}]} {
    %c0 = arith.constant 0 : index
    %c0_0 = arith.constant 0 : index
    %c0_1 = arith.constant 0 : index
    %0 = vector.load %arg1[%c0, %c0_0, %c0_1] : memref<5x2x32xf32, #tpu.memory_space<vmem>>, vector<1x2x32xf32>
    %1 = vector.shape_cast %0 : vector<1x2x32xf32> to vector<2x32xf32>
    %c0_2 = arith.constant 0 : index
    %c0_3 = arith.constant 0 : index
    %c0_4 = arith.constant 0 : index
    %2 = vector.load %arg2[%c0_2, %c0_3, %c0_4] : memref<5x32x16xf32, #tpu.memory_space<vmem>>, vector<1x32x16xf32>
    %3 = vector.shape_cast %2 : vector<1x32x16xf32> to vector<32x16xf32>
    %cst = arith.constant dense<0.000000e+00> : vector<2x16xf32>
    %4 = tpu.matmul %1, %3, %cst {dimension_numbers = #tpu.dot_dimension_numbers<[1], [0], [0], [1], [0, 0, 1, 1], [], []>} : vector<2x32xf32>, vector<32x16xf32>, vector<2x16xf32> -> vector<2x16xf32>
    %c0_5 = arith.constant 0 : index
    %c0_6 = arith.constant 0 : index
    %c0_7 = arith.constant 0 : index
    %5 = vector.load %arg3[%c0_5, %c0_6, %c0_7] : memref<5x1x16xf32, #tpu.memory_space<vmem>>, vector<1x1x16xf32>
    %6 = vector.shape_cast %5 : vector<1x1x16xf32> to vector<1x16xf32>
    %7 = vector.broadcast %6 : vector<1x16xf32> to vector<2x16xf32>
    %8 = arith.addf %4, %7 : vector<2x16xf32>
    %c0_8 = arith.constant 0 : index
    %c0_9 = arith.constant 0 : index
    %c0_10 = arith.constant 0 : index
    %9 = vector.load %arg4[%c0_8, %c0_9, %c0_10] : memref<5x2x16xf32, #tpu.memory_space<vmem>>, vector<1x2x16xf32>
    %10 = vector.shape_cast %9 : vector<1x2x16xf32> to vector<2x16xf32>
    %11 = vector.shape_cast %8 : vector<2x16xf32> to vector<1x2x16xf32>
    tpu.vector_store %arg4[%c0_8, %c0_9, %c0_10], %11 {strides = array<i32>} : memref<5x2x16xf32, #tpu.memory_space<vmem>>, vector<1x2x16xf32>,
    %c1 = arith.constant 1 : index
    %c0_11 = arith.constant 0 : index
    %c0_12 = arith.constant 0 : index
    %12 = vector.load %arg1[%c1, %c0_11, %c0_12] : memref<5x2x32xf32, #tpu.memory_space<vmem>>, vector<1x2x32xf32>
    %13 = vector.shape_cast %12 : vector<1x2x32xf32> to vector<2x32xf32>
    %c1_13 = arith.constant 1 : index
    %c0_14 = arith.constant 0 : index
    %c0_15 = arith.constant 0 : index
    %14 = vector.load %arg2[%c1_13, %c0_14, %c0_15] : memref<5x32x16xf32, #tpu.memory_space<vmem>>, vector<1x32x16xf32>
    %15 = vector.shape_cast %14 : vector<1x32x16xf32> to vector<32x16xf32>
    %cst_16 = arith.constant dense<0.000000e+00> : vector<2x16xf32>
    %16 = tpu.matmul %13, %15, %cst_16 {dimension_numbers = #tpu.dot_dimension_numbers<[1], [0], [0], [1], [0, 0, 1, 1], [], []>} : vector<2x32xf32>, vector<32x16xf32>, vector<2x16xf32> -> vector<2x16xf32>
    %c1_17 = arith.constant 1 : index
    %c0_18 = arith.constant 0 : index
    %c0_19 = arith.constant 0 : index
    %17 = vector.load %arg3[%c1_17, %c0_18, %c0_19] : memref<5x1x16xf32, #tpu.memory_space<vmem>>, vector<1x1x16xf32>
    %18 = vector.shape_cast %17 : vector<1x1x16xf32> to vector<1x16xf32>
    %19 = vector.broadcast %18 : vector<1x16xf32> to vector<2x16xf32>
    %20 = arith.addf %16, %19 : vector<2x16xf32>
    %c1_20 = arith.constant 1 : index
    %c0_21 = arith.constant 0 : index
    %c0_22 = arith.constant 0 : index
    %21 = vector.load %arg4[%c1_20, %c0_21, %c0_22] : memref<5x2x16xf32, #tpu.memory_space<vmem>>, vector<1x2x16xf32>
    %22 = vector.shape_cast %21 : vector<1x2x16xf32> to vector<2x16xf32>
    %23 = vector.shape_cast %20 : vector<2x16xf32> to vector<1x2x16xf32>
    tpu.vector_store %arg4[%c1_20, %c0_21, %c0_22], %23 {strides = array<i32>} : memref<5x2x16xf32, #tpu.memory_space<vmem>>, vector<1x2x16xf32>,
    %c2 = arith.constant 2 : index
    %c0_23 = arith.constant 0 : index
    %c0_24 = arith.constant 0 : index
    %24 = vector.load %arg1[%c2, %c0_23, %c0_24] : memref<5x2x32xf32, #tpu.memory_space<vmem>>, vector<1x2x32xf32>
    %25 = vector.shape_cast %24 : vector<1x2x32xf32> to vector<2x32xf32>
    %c2_25 = arith.constant 2 : index
    %c0_26 = arith.constant 0 : index
    %c0_27 = arith.constant 0 : index
    %26 = vector.load %arg2[%c2_25, %c0_26, %c0_27] : memref<5x32x16xf32, #tpu.memory_space<vmem>>, vector<1x32x16xf32>
    %27 = vector.shape_cast %26 : vector<1x32x16xf32> to vector<32x16xf32>
    %cst_28 = arith.constant dense<0.000000e+00> : vector<2x16xf32>
    %28 = tpu.matmul %25, %27, %cst_28 {dimension_numbers = #tpu.dot_dimension_numbers<[1], [0], [0], [1], [0, 0, 1, 1], [], []>} : vector<2x32xf32>, vector<32x16xf32>, vector<2x16xf32> -> vector<2x16xf32>
    %c2_29 = arith.constant 2 : index
    %c0_30 = arith.constant 0 : index
    %c0_31 = arith.constant 0 : index
    %29 = vector.load %arg3[%c2_29, %c0_30, %c0_31] : memref<5x1x16xf32, #tpu.memory_space<vmem>>, vector<1x1x16xf32>
    %30 = vector.shape_cast %29 : vector<1x1x16xf32> to vector<1x16xf32>
    %31 = vector.broadcast %30 : vector<1x16xf32> to vector<2x16xf32>
    %32 = arith.addf %28, %31 : vector<2x16xf32>
    %c2_32 = arith.constant 2 : index
    %c0_33 = arith.constant 0 : index
    %c0_34 = arith.constant 0 : index
    %33 = vector.load %arg4[%c2_32, %c0_33, %c0_34] : memref<5x2x16xf32, #tpu.memory_space<vmem>>, vector<1x2x16xf32>
    %34 = vector.shape_cast %33 : vector<1x2x16xf32> to vector<2x16xf32>
    %35 = vector.shape_cast %32 : vector<2x16xf32> to vector<1x2x16xf32>
    tpu.vector_store %arg4[%c2_32, %c0_33, %c0_34], %35 {strides = array<i32>} : memref<5x2x16xf32, #tpu.memory_space<vmem>>, vector<1x2x16xf32>,
    %c3 = arith.constant 3 : index
    %c0_35 = arith.constant 0 : index
    %c0_36 = arith.constant 0 : index
    %36 = vector.load %arg1[%c3, %c0_35, %c0_36] : memref<5x2x32xf32, #tpu.memory_space<vmem>>, vector<1x2x32xf32>
    %37 = vector.shape_cast %36 : vector<1x2x32xf32> to vector<2x32xf32>
    %c3_37 = arith.constant 3 : index
    %c0_38 = arith.constant 0 : index
    %c0_39 = arith.constant 0 : index
    %38 = vector.load %arg2[%c3_37, %c0_38, %c0_39] : memref<5x32x16xf32, #tpu.memory_space<vmem>>, vector<1x32x16xf32>
    %39 = vector.shape_cast %38 : vector<1x32x16xf32> to vector<32x16xf32>
    %cst_40 = arith.constant dense<0.000000e+00> : vector<2x16xf32>
    %40 = tpu.matmul %37, %39, %cst_40 {dimension_numbers = #tpu.dot_dimension_numbers<[1], [0], [0], [1], [0, 0, 1, 1], [], []>} : vector<2x32xf32>, vector<32x16xf32>, vector<2x16xf32> -> vector<2x16xf32>
    %c3_41 = arith.constant 3 : index
    %c0_42 = arith.constant 0 : index
    %c0_43 = arith.constant 0 : index
    %41 = vector.load %arg3[%c3_41, %c0_42, %c0_43] : memref<5x1x16xf32, #tpu.memory_space<vmem>>, vector<1x1x16xf32>
    %42 = vector.shape_cast %41 : vector<1x1x16xf32> to vector<1x16xf32>
    %43 = vector.broadcast %42 : vector<1x16xf32> to vector<2x16xf32>
    %44 = arith.addf %40, %43 : vector<2x16xf32>
    %c3_44 = arith.constant 3 : index
    %c0_45 = arith.constant 0 : index
    %c0_46 = arith.constant 0 : index
    %45 = vector.load %arg4[%c3_44, %c0_45, %c0_46] : memref<5x2x16xf32, #tpu.memory_space<vmem>>, vector<1x2x16xf32>
    %46 = vector.shape_cast %45 : vector<1x2x16xf32> to vector<2x16xf32>
    %47 = vector.shape_cast %44 : vector<2x16xf32> to vector<1x2x16xf32>
    tpu.vector_store %arg4[%c3_44, %c0_45, %c0_46], %47 {strides = array<i32>} : memref<5x2x16xf32, #tpu.memory_space<vmem>>, vector<1x2x16xf32>,
    %c4 = arith.constant 4 : index
    %c0_47 = arith.constant 0 : index
    %c0_48 = arith.constant 0 : index
    %48 = vector.load %arg1[%c4, %c0_47, %c0_48] : memref<5x2x32xf32, #tpu.memory_space<vmem>>, vector<1x2x32xf32>
    %49 = vector.shape_cast %48 : vector<1x2x32xf32> to vector<2x32xf32>
    %c4_49 = arith.constant 4 : index
    %c0_50 = arith.constant 0 : index
    %c0_51 = arith.constant 0 : index
    %50 = vector.load %arg2[%c4_49, %c0_50, %c0_51] : memref<5x32x16xf32, #tpu.memory_space<vmem>>, vector<1x32x16xf32>
    %51 = vector.shape_cast %50 : vector<1x32x16xf32> to vector<32x16xf32>
    %cst_52 = arith.constant dense<0.000000e+00> : vector<2x16xf32>
    %52 = tpu.matmul %49, %51, %cst_52 {dimension_numbers = #tpu.dot_dimension_numbers<[1], [0], [0], [1], [0, 0, 1, 1], [], []>} : vector<2x32xf32>, vector<32x16xf32>, vector<2x16xf32> -> vector<2x16xf32>
    %c4_53 = arith.constant 4 : index
    %c0_54 = arith.constant 0 : index
    %c0_55 = arith.constant 0 : index
    %53 = vector.load %arg3[%c4_53, %c0_54, %c0_55] : memref<5x1x16xf32, #tpu.memory_space<vmem>>, vector<1x1x16xf32>
    %54 = vector.shape_cast %53 : vector<1x1x16xf32> to vector<1x16xf32>
    %55 = vector.broadcast %54 : vector<1x16xf32> to vector<2x16xf32>
    %56 = arith.addf %52, %55 : vector<2x16xf32>
    %c4_56 = arith.constant 4 : index
    %c0_57 = arith.constant 0 : index
    %c0_58 = arith.constant 0 : index
    %57 = vector.load %arg4[%c4_56, %c0_57, %c0_58] : memref<5x2x16xf32, #tpu.memory_space<vmem>>, vector<1x2x16xf32>
    %58 = vector.shape_cast %57 : vector<1x2x16xf32> to vector<2x16xf32>
    %59 = vector.shape_cast %56 : vector<2x16xf32> to vector<1x2x16xf32>
    tpu.vector_store %arg4[%c4_56, %c0_57, %c0_58], %59 {strides = array<i32>} : memref<5x2x16xf32, #tpu.memory_space<vmem>>, vector<1x2x16xf32>,
    return
  }
  func.func @transform_0(%arg0: i32) -> (i32, i32, i32) {
    %c0_i32 = arith.constant 0 : i32
    %c0_i32_0 = arith.constant 0 : i32
    %c0_i32_1 = arith.constant 0 : i32
    %c0_i32_2 = arith.constant 0 : i32
    return %c0_i32, %c0_i32_0, %c0_i32_1 : i32, i32, i32
  }
  func.func @transform_1(%arg0: i32) -> (i32, i32, i32) {
    %c0_i32 = arith.constant 0 : i32
    %c0_i32_0 = arith.constant 0 : i32
    %c0_i32_1 = arith.constant 0 : i32
    %c0_i32_2 = arith.constant 0 : i32
    return %c0_i32, %c0_i32_0, %c0_i32_1 : i32, i32, i32
  }
  func.func @transform_2(%arg0: i32) -> (i32, i32, i32) {
    %c0_i32 = arith.constant 0 : i32
    %c0_i32_0 = arith.constant 0 : i32
    %c0_i32_1 = arith.constant 0 : i32
    %c0_i32_2 = arith.constant 0 : i32
    return %c0_i32, %c0_i32_0, %c0_i32_1 : i32, i32, i32
  }
  func.func @transform_3(%arg0: i32) -> (i32, i32, i32) {
    %c0_i32 = arith.constant 0 : i32
    %c0_i32_0 = arith.constant 0 : i32
    %c0_i32_1 = arith.constant 0 : i32
    %c0_i32_2 = arith.constant 0 : i32
    return %c0_i32, %c0_i32_0, %c0_i32_1 : i32, i32, i32
  }
}

</mosaic_0001>

<bundles_post_ra>
// kernel: mtstrec_forward.4
= control target key start
LH: loop header
LB: loop body
LE: loop exit
PB: predicated region body
PF: predicated region fallthrough
CT: control target
= control target key end

     0   :  { %s800_s17 = smov 0   ;;  %s924_s0 = inlined_call_operand.vmem [shape: f32[2,8,48], index: 0, kind: input, shape index: {}]   ;;  %s925_s1 = inlined_call_operand.vmem [shape: f32[2,8,40], index: 1, kind: input, shape index: {}]   ;;  %s926_s2 = inlined_call_operand.vmem [shape: f32[2,8,80], index: 2, kind: input, shape index: {}]   ;;  %s927_s3 = inlined_call_operand.vmem [shape: f32[48,32], index: 3, kind: input, shape index: {}]   ;;  %s928_s4 = inlined_call_operand.vmem [shape: f32[1,32], index: 4, kind: input, shape index: {}]   ;;  %s929_s5 = inlined_call_operand.vmem [shape: f32[40,32], index: 5, kind: input, shape index: {}]   ;;  %s930_s6 = inlined_call_operand.vmem [shape: f32[1,32], index: 6, kind: input, shape index: {}]   ;;  %s931_s7 = inlined_call_operand.vmem [shape: f32[80,2], index: 7, kind: input, shape index: {}]   ;;  %s932_s8 = inlined_call_operand.vmem [shape: f32[1,2], index: 8, kind: input, shape index: {}]   ;;  %s933_s9 = inlined_call_operand.vmem [shape: f32[40,32], index: 9, kind: input, shape index: {}]   ;;  %s934_s10 = inlined_call_operand.vmem [shape: f32[1,32], index: 10, kind: input, shape index: {}]   ;;  %s935_s11 = inlined_call_operand.vmem [shape: f32[2,8,96], index: 11, kind: output, shape index: {}]  }
   0x1 LB: > { %s688_s18 = sadd.s32 4294967295, %s733_s17   ;;  %p692_p0 = scmp.ge.s32.totalorder %s733_s17, 1  ;;  %s733_s17 = sphi %s800_s17, %s21_s17  }
   0x2   : > { %p354_p1 = scmp.lt.s32.totalorder %s733_s17, 3 }
   0x4   : > { %p355_p2 = pnand %p692_p0, %p354_p1 }
   0x5   : > { %p400_p3 = scmp.lt.s32.totalorder (!%p355_p2), %s688_s18, 1  ;;  %s737_s19 = smov (!%p355_p2), 88  }
   0x6   : > { %358 = sbr.rel (%p355_p2) target bundleno = 890 (0x37a), region = 64  ;;  %s738_s16 = smov (!%p355_p2), 32  }
   0x7   : > { %s739_s21 = smov (!%p355_p2), 64  }
   0xb   : > { %v495_v0 = vld [vmem:[%s931_s7 + $0x48] sm:$0xff]  ;;  %v494_v1 = vld [vmem:[%s931_s7 + $0x40] sm:$0xff]  ;;  %v493_v2 = vld [vmem:[%s931_s7 + $0x38] sm:$0xff]  ;;  %s937_s18 = smov (!%p400_p3, %s688_s18), 1  ;;  %vm500_vm0 = vcmask 654336   ;;  %vm524_vm1 = vcmask 15360  }
   0xc   : > { %510 = vmatpush.msra.mxu2 %v495_v0  ;;  %v492_v3 = vld [vmem:[%s931_s7 + $0x30] sm:$0xff]  ;;  %v491_v4 = vld [vmem:[%s931_s7 + $0x28] sm:$0xff]  ;;  %v490_v5 = vld [vmem:[%s931_s7 + $0x20] sm:$0xff]  ;;  %s829_s14 = sshll.u32 %s937_s18, 3  ;;  %v735_v20 = vmov 1   ;;  %v736_v33 = vmov 0  }
   0xd   : > { %v489_v6 = vld [vmem:[%s931_s7 + $0x18] sm:$0xff]  ;;  %v488_v7 = vld [vmem:[%s931_s7 + $0x10] sm:$0xff]  ;;  %v487_v8 = vld [vmem:[%s931_s7 + $0x8] sm:$0xff]  ;;  %s411_s23 = scalar_lea.vmem %s926_s2, %s829_s14  ;;  %716 = vset.pattern.permute.xlu1 %v735_v20  ;;  %718 = vset.pattern.permute.xlu0 %v735_v20  ;;  %s403_s29 = scalar_lea.vmem %s924_s0, %s829_s14  ;;  %vm462_vm6 = vcmask 326656   ;;  %vm429_vm7 = vcmask 392192   ;;  %vm605_vm8 = vcmask 261120  }
   0xe   : > { %511 = vmatpush.msra.mxu2 %v494_v1  ;;  %v486_v9 = vld [vmem:[%s931_s7] sm:$0xff]  ;;  %v568_v35 = vld [vmem:[%s933_s9 + $0x18] sm:$0xff]  ;;  %v567_v36 = vld [vmem:[%s933_s9 + $0x10] sm:$0xff]  ;;  %vm607_vm9 = vcmask 523264   ;;  %s415_s18 = scalar_lea.vmem %s935_s11, %s829_s14  ;;  %vm609_vm10 = vcmask 785408  }
   0xf   : > { %v844_v10 = vld [vmem:[%s411_s23] sm:$0xff]  ;;  %v566_v37 = vld [vmem:[%s933_s9 + $0x8] sm:$0xff]  ;;  %v456_v42 = vld [vmem:[%s929_s5 + $0x18] sm:$0xff] }
  0x10   : > { %512 = vmatpush.msra.mxu2 %v493_v2  ;;  %v719_v11 = vld [vmem:[%s932_s8] ss:$0 sm:$0xff]  ;;  %v455_v43 = vld [vmem:[%s929_s5 + $0x10] sm:$0xff]  ;;  %v424_v44 = vld [vmem:[%s927_s3 + $0x28] sm:$0xff] }
  0x11   : > { %v569_v34 = vld [vmem:[%s933_s9 + $0x20] sm:$0xff]  ;;  %443 = vmatpush.msra.mxu0 %v424_v44  ;;  %v454_v46 = vld [vmem:[%s929_s5 + $0x8] sm:$0xff]  ;;  %v422_v47 = vld [vmem:[%s927_s3 + $0x18] sm:$0xff] }
  0x12   : > { %513 = vmatpush.msra.mxu2 %v492_v3  ;;  %588 = vmatpush.msra.mxu3 %v569_v34  ;;  %v565_v40 = vld [vmem:[%s933_s9] sm:$0xff]  ;;  %v421_v49 = vld [vmem:[%s927_s3 + $0x10] sm:$0xff]  ;;  %v420_v51 = vld [vmem:[%s927_s3 + $0x8] sm:$0xff] }
  0x13   : > { %v457_v41 = vld [vmem:[%s929_s5 + $0x20] sm:$0xff] }
  0x14   : > { %514 = vmatpush.msra.mxu2 %v491_v4  ;;  %589 = vmatpush.msra.mxu3 %v568_v35  ;;  %v423_v45 = vld [vmem:[%s927_s3 + $0x20] sm:$0xff] }
  0x15   : > { %477 = vmatpush.msra.mxu1 %v457_v41  ;;  %444 = vmatpush.msra.mxu0 %v423_v45  ;;  %v453_v48 = vld [vmem:[%s929_s5] sm:$0xff] }
  0x16   : > { %515 = vmatpush.msra.mxu2 %v490_v5  ;;  %590 = vmatpush.msra.mxu3 %v567_v36  ;;  %v419_v52 = vld [vmem:[%s927_s3] sm:$0xff] }
  0x17   : > { %478 = vmatpush.msra.mxu1 %v456_v42  ;;  %445 = vmatpush.msra.mxu0 %v422_v47  ;;  %v416_v53 = vld [vmem:[%s403_s29] sm:$0xff] }
  0x18   : > { %516 = vmatpush.msra.mxu2 %v489_v6  ;;  %591 = vmatpush.msra.mxu3 %v566_v37  ;;  %v721_v58 = vld [vmem:[%s930_s6] ss:$0 sm:$0xff] }
  0x19   : > { %479 = vmatpush.msra.mxu1 %v455_v43  ;;  %446 = vmatpush.msra.mxu0 %v421_v49  ;;  %v720_v61 = vld [vmem:[%s934_s10] ss:$0 sm:$0xff] }
  0x1a   : > { %517 = vmatpush.msra.mxu2 %v488_v7  ;;  %592 = vmatpush.msra.mxu3 %v565_v40  ;;  %v722_v0 = vld [vmem:[%s928_s4] ss:$0 sm:$0xff] }
  0x1b   : > { %480 = vmatpush.msra.mxu1 %v454_v46  ;;  %447 = vmatpush.msra.mxu0 %v420_v51 }
  0x1c   : > { %518 = vmatpush.msra.mxu2 %v487_v8 }
  0x1d   : > { %481 = vmatpush.msra.mxu1 %v453_v48  ;;  %448 = vmatpush.msra.mxu0 %v419_v52 }
  0x1e   : > { %519 = vmatpush.msra.mxu2 %v486_v9  ;;  %697 = vmatmul.msk.f32.vlgmr.msra.gmra.mxu0 %vm429_vm7, %v416_v53 }
  0x1f   : > { %699 = vmatmul.msk.f32.vlgmr.msra.gmra.mxu2 %vm500_vm0, %v844_v10 }
  0x9b   : > { %v450_v1 = vpop.f32.mrf.mxu0 }
  0x9c   : > { %v451_v2 = vadd.f32 %v722_v0, %v450_v1 }
  0xa2   : > { %v521_v12 = vpop.f32.mrf.mxu2 }
  0xa3   : > { %v522_v13 = vadd.f32 %v719_v11, %v521_v12 }
  0xa5   : > { %v525_v14 = vsel %vm524_vm1, %v522_v13, -inf }
  0xa6   : > { %526 = vmax.xlane.f32.xlu0 %v525_v14 }
 0x119   : > { %v527_v15 = vpop.xlane.xlu0 %526 }
 0x11a   : > { %v528_v16 = vsub.f32 %v522_v13, %v527_v15 }
 0x11c   : > { %v529_v17 = vmul.f32 1.442695, %v528_v16 }
 0x11e   : > { %723 = vpow2.f32 %v529_v17 }
 0x124   : > { %v724_v18 = vpop.eup %723 }
 0x125   : > { %v531_v19 = vsel %vm524_vm1, %v724_v18, 0.0 }
 0x126   : > { %532 = vadd.xlane.f32.xlu0 %v531_v19 }
 0x199   : > { %v533_v21 = vpop.xlane.xlu0 %532 }
 0x19a   : > { %725 = vrcp.f32 %v533_v21  ;;  %v545_v25 = vand.u32 2147483648, %v533_v21  ;;  %v543_v27 = vand.u32 2147483647, %v533_v21  ;;  %vm539_vm3 = vweird.f32 %v533_v21 }
 0x19c   : > { %v546_v29 = vor.u32 1.1754944e-38, %v545_v25  ;;  %vm544_vm5 = vcmp.eq.f32.partialorder %v543_v27, 8.507059e+37 }
 0x1a0   : > { %v726_v22 = vpop.eup %725 }
 0x1a1   : > { %v535_v23 = vmul.f32 %v726_v22, %v533_v21  ;;  %vm540_vm2 = vweird.f32 %v726_v22 }
 0x1a2   : > { %vm541_vm4 = vmor %vm539_vm3, %vm540_vm2 }
 0x1a3   : > { %v536_v24 = vsub.f32 1.0, %v535_v23 }
 0x1a5   : > { %v537_v26 = vmul.f32 %v726_v22, %v536_v24 }
 0x1a7   : > { %v538_v28 = vadd.f32 %v726_v22, %v537_v26 }
 0x1a9   : > { %v542_v30 = vsel %vm541_vm4, %v726_v22, %v538_v28 }
 0x1aa   : > { %v547_v31 = vsel %vm544_vm5, %v546_v29, %v542_v30 }
 0x1ab   : > { %v548_v32 = vmul.f32 %v724_v18, %v547_v31 }
 0x1ad   : > { %556 = vperm.xlu1 %716, %v548_v32  }
 0x1b5   : > { %717 = vset.pattern.permute.xlu1 %v736_v33 }
 0x1b6   : > { %551 = vperm.xlu1 %717, %v548_v32  }
 0x21f   : > { %v557_v38 = vpop.permute.xlu1 %556 }
 0x220   : > { %v559_v39 = vmul.f32 %v557_v38, %v844_v10 }
 0x222   : > { %561 = vrot.lane.b32.xlu2 %v559_v39, %s737_s19  ;;  %s407_s19 = scalar_lea.vmem %s925_s1, %s829_s14 }
 0x223   : > { %v417_v50 = vld [vmem:[%s407_s19] sm:$0xff] }
 0x224   : > { %698 = vmatmul.msk.f32.vlgmr.msra.gmra.mxu1 %vm462_vm6, %v417_v50 }
 0x228   : > { %v552_v54 = vpop.permute.xlu1 %551 }
 0x229   : > { %v554_v55 = vmul.f32 %v552_v54, %v844_v10 }
 0x27c   : > { %v562_v56 = vpop.permute.xlu2 %561 }
 0x27d   : > { %v564_v57 = vadd.f32 %v562_v56, %v554_v55 }
 0x27f   : > { %700 = vmatmul.msk.f32.vlgmr.msra.gmra.mxu3 %vm462_vm6, %v564_v57 }
 0x2a1   : > { %v483_v59 = vpop.f32.mrf.mxu1 }
 0x2a2   : > { %v484_v60 = vadd.f32 %v721_v58, %v483_v59 }
 0x2a4   : > { %598 = vrot.lane.b32.xlu2 %v484_v60, %s738_s16 }
 0x2fe   : > { %v599_v3 = vpop.permute.xlu2 %598 }
 0x2ff   : > { %v606_v4 = vsel %vm605_vm8, %v451_v2, %v599_v3 }
 0x302   : > { %v594_v62 = vpop.f32.mrf.mxu3 }
 0x303   : > { %v595_v63 = vadd.f32 %v720_v61, %v594_v62 }
 0x305   : > { %602 = vrot.lane.b32.xlu0 %v595_v63, %s739_s21 }
 0x377   : > { %v603_v5 = vpop.permute.xlu0 %602 }
 0x378   : > { %v608_v6 = vsel %vm607_vm9, %v606_v4, %v603_v5 }
 0x379   : > { %610 = vst.msk [vmem:[%s415_s18] sm:$0xff] %vm609_vm10, %v608_v6 }
 0x37a PF: > { %s21_s17 = sadd.s32 1, %s733_s17  }
 0x37b   : > { %p18_p4 = scmp.ge.s32.totalorder %s21_s17, 4  }
 0x37d   :  { %20 = sbr.rel (!%p18_p4) target bundleno = 1 (0x1), region = 100 }

// kernel: mtstrec_forward.5
= control target key start
LH: loop header
LB: loop body
LE: loop exit
PB: predicated region body
PF: predicated region fallthrough
CT: control target
= control target key end

     0   :  { %s1917_s29 = smov 0   ;;  %s2258_s0 = inlined_call_operand.vmem [shape: f32[5,2,9,32], index: 0, kind: input, shape index: {}]   ;;  %s2259_s1 = inlined_call_operand.vmem [shape: f32[2,1,9], index: 1, kind: input, shape index: {}]   ;;  %s2260_s2 = inlined_call_operand.vmem [shape: bf16[5,32,96], index: 2, kind: input, shape index: {}]   ;;  %s2261_s3 = inlined_call_operand.vmem [shape: f32[5,1,96], index: 3, kind: input, shape index: {}]   ;;  %s2262_s4 = inlined_call_operand.vmem [shape: bf16[5,32,32], index: 4, kind: input, shape index: {}]   ;;  %s2263_s5 = inlined_call_operand.vmem [shape: f32[5,1,32], index: 5, kind: input, shape index: {}]   ;;  %s2264_s6 = inlined_call_operand.vmem [shape: f32[5,1,32], index: 6, kind: input, shape index: {}]   ;;  %s2265_s7 = inlined_call_operand.vmem [shape: f32[5,1,32], index: 7, kind: input, shape index: {}]   ;;  %s2266_s8 = inlined_call_operand.vmem [shape: bf16[5,32,64], index: 8, kind: input, shape index: {}]   ;;  %s2267_s9 = inlined_call_operand.vmem [shape: f32[5,1,64], index: 9, kind: input, shape index: {}]   ;;  %s2268_s10 = inlined_call_operand.vmem [shape: bf16[5,64,32], index: 10, kind: input, shape index: {}]   ;;  %s2269_s11 = inlined_call_operand.vmem [shape: f32[5,1,32], index: 11, kind: input, shape index: {}]   ;;  %s2270_s12 = inlined_call_operand.vmem [shape: f32[5,1,32], index: 12, kind: input, shape index: {}]   ;;  %s2271_s13 = inlined_call_operand.vmem [shape: f32[5,1,32], index: 13, kind: input, shape index: {}]   ;;  %s2272_s14 = inlined_call_operand.vmem [shape: f32[5,2,9,32], index: 14, kind: output, shape index: {}]  }
   0x1 LB: > { %s1644_s30 = sadd.s32 4294967295, %s1832_s29   ;;  %p1648_p0 = scmp.ge.s32.totalorder %s1832_s29, 1  ;;  %s1832_s29 = sphi %s1917_s29, %s24_s29  }
   0x2   : > { %p516_p1 = scmp.lt.s32.totalorder %s1832_s29, 6 }
   0x4   : > { %p517_p2 = pnand %p1648_p0, %p516_p1 }
   0x5   : > { %p606_p3 = scmp.lt.s32.totalorder (!%p517_p2), %s1644_s30, 4  ;;  %s1834_s26 = smov (!%p517_p2), 112  }
   0x6   : > { %520 = sbr.rel (%p517_p2) target bundleno = 3186 (0xc72), region = 76  ;;  %s1835_s27 = smov (!%p517_p2), 96  }
   0x7   : > { %s1836_s28 = smov (!%p517_p2), 80   ;;  %s1838_s20 = smov (!%p517_p2), 64  }
   0xb   : > { %s2276_s30 = smov (!%p606_p3, %s1644_s30), 4  ;;  %vm708_vm0 = vcmask 261120   ;;  %vm730_vm1 = vcmask 130048   ;;  %v1767_v16 = vld [vmem:[%s2259_s1] ss:$0 sm:$0xff]  ;;  %vm758_vm2 = vcmask 72704  }
   0xc   : > { %s1928_s15 = sshll.u32 %s2276_s30, 4  ;;  %s1931_s16 = sshll.u32 %s2276_s30, 5  ;;  %vm762_vm3 = vcmask 65536   ;;  %vm788_vm4 = vcmask 1043456   ;;  %vm789_vm5 = vcmask 1044480   ;;  %v1839_v55 = vmov 65535  }
   0xd   : > { %s615_s19 = scalar_lea.vmem %s2260_s2, %s1928_s15  ;;  %s1941_s22 = scalar_lea.vmem %s2258_s0, %s1931_s16  ;;  %v790_v56 = vsel %vm788_vm4, 4294967295, %v1839_v55  ;;  %vm930_vm6 = vcmask 253952   ;;  %vm1052_vm14 = vcmask 523264  }
   0xe   : > { %v1943_v0 = vld [vmem:[%s615_s19 + $0x8] sm:$0xff]  ;;  %v1945_v1 = vld [vmem:[%s615_s19] sm:$0xff]  ;;  %s618_s25 = scalar_lea.vmem %s2261_s3, %s2276_s30  ;;  %s2273_s19 = smov 48   ;;  %v1994_v59 = vsel %vm789_vm5, %v790_v56, 0 }
   0xf   : > { %718 = vmatpush.bf16.msra.mxu0 %v1943_v0  ;;  %v1953_v2 = vld [vmem:[%s1941_s22] sm:$0xff]  ;;  %v1956_v3 = vld [vmem:[%s1941_s22 + $0x8] sm:$0x1]  ;;  %s623_s24 = scalar_lea.vmem %s2262_s4, %s1928_s15  ;;  %s626_s18 = scalar_lea.vmem %s2263_s5, %s2276_s30 }
  0x10   : > { %v692_v4 = vpack.c.bf16 %v1956_v3, %v1953_v2  ;;  %v1962_v6 = vld [vmem:[%s618_s25] ss:$0 sm:$0xff]  ;;  %s637_s21 = scalar_lea.vmem %s2266_s8, %s1928_s15  ;;  %s645_s23 = scalar_lea.vmem %s2268_s10, %s1931_s16 }
  0x11   : > { %s648_s25 = scalar_lea.vmem %s2269_s11, %s2276_s30 }
  0x13   : > { %719 = vmatpush.bf16.msra.mxu0 %v1945_v1 }
  0x16   : > { %1669 = vmatmul.msk.bf16.vlgmr.msra.gmra.mxu0 %vm708_vm0, %v692_v4 }
  0x93   : > { %v721_v5 = vpop.f32.mrf.mxu0 }
  0x94   : > { %v722_v8 = vadd.f32 %v1962_v6, %v721_v5 }
  0x9b   : > { %v723_v7 = vpop.f32.mrf.mxu0 }
  0x9c   : > { %v724_v9 = vadd.f32 %v1962_v6, %v723_v7 }
  0x9e   : > { %v1966_v10 = vpack.c.bf16 %v724_v9, %v722_v8 }
  0xa0   : > { %809 = vrot.lane.b32.xlu1 %v1966_v10, %s1834_s26  ;;  %728 = vrot.lane.b32.xlu0 %v1966_v10, %s1835_s27 }
  0xa8   : > { %811 = vrot.lane.b32.xlu0 %v1966_v10, %s1836_s28 }
 0x112   : > { %v729_v11 = vpop.permute.xlu0 %728  ;;  %v810_v15 = vpop.permute.xlu1 %809 }
 0x113   : > { %v735_v12 = vsel %vm730_vm1, %v729_v11, 0 }
 0x114   : > { %744 = vmatpush.bf16.xpose.msra.mxu1 %v735_v12 }
 0x11a   : > { %v812_v13 = vpop.permute.xlu0 %811 }
 0x11b   : > { %1670 = vmatmul.msk.bf16.vlgmr.msra.gmra.mxu1 %vm730_vm1, %v1966_v10  ;;  %v817_v14 = vsel %vm730_vm1, %v812_v13, 0 }
 0x11c   : > { %826 = vmatpush.bf16.xpose.msra.mxu3 %v817_v14 }
 0x123   : > { %1672 = vmatmul.msk.bf16.vlgmr.msra.gmra.mxu3 %vm730_vm1, %v810_v15 }
 0x198   : > { %v746_v17 = vpop.f32.mrf.mxu1 }
 0x199   : > { %v751_v18 = vmul.f32 0.25, %v746_v17 }
 0x19b   : > { %v756_v19 = vadd.f32 %v1767_v16, %v751_v18 }
 0x19d   : > { %v759_v20 = vsel %vm758_vm2, %v756_v19, -inf }
 0x19e   : > { %760 = vmax.xlane.f32.xlu1 %v759_v20  ;;  %v2015_v20 = vld [vmem:[%s1941_s22 + $0x10] sm:$0xff] }
 0x1a0   : > { %v748_v23 = vpop.f32.mrf.mxu1 }
 0x1a1   : > { %v752_v25 = vmul.f32 0.25, %v748_v23 }
 0x1a3   : > { %v757_v29 = vadd.f32 %v1767_v16, %v752_v25 }
 0x1a5   : > { %v763_v31 = vsel %vm762_vm3, %v757_v29, -inf }
 0x1a6   : > { %v828_v21 = vpop.f32.mrf.mxu3 }
 0x1a7   : > { %v833_v22 = vmul.f32 0.25, %v828_v21  ;;  %v2018_v21 = vld [vmem:[%s1941_s22 + $0x18] sm:$0x1] }
 0x1a9   : > { %v835_v24 = vadd.f32 %v1767_v16, %v833_v22  ;;  %v1133_v22 = vpack.c.bf16 %v2018_v21, %v2015_v20 }
 0x1ab   : > { %v837_v26 = vsel %vm758_vm2, %v835_v24, -inf }
 0x1ac   : > { %838 = vmax.xlane.f32.xlu2 %v837_v26 }
 0x1ae   : > { %v830_v27 = vpop.f32.mrf.mxu3 }
 0x1af   : > { %v834_v28 = vmul.f32 0.25, %v830_v27 }
 0x1b1   : > { %v836_v30 = vadd.f32 %v1767_v16, %v834_v28 }
 0x1b3   : > { %v840_v32 = vsel %vm762_vm3, %v836_v30, -inf }
 0x1b4   : > { %764 = vmax.xlane.f32.xlu2 %v763_v31  ;;  %841 = vmax.xlane.f32.xlu0 %v840_v32 }
 0x1c8   : > { %860 = vrot.lane.b32.xlu0 %v1966_v10, %s2273_s19  ;;  %s1840_s19 = smov 16  }
 0x211   : > { %v761_v33 = vpop.xlane.xlu1 %760 }
 0x212   : > { %v766_v34 = vsub.f32 %v756_v19, %v761_v33  ;;  %v1732_v19 = vld [vmem:[%s623_s24] sm:$0xff] }
 0x214   : > { %v768_v35 = vmul.f32 1.442695, %v766_v34 }
 0x216   : > { %1776 = vpow2.f32 %v768_v35 }
 0x21c   : > { %v1777_v36 = vpop.eup %1776 }
 0x21d   : > { %v772_v37 = vsel %vm758_vm2, %v1777_v36, 0.0 }
 0x21e   : > { %773 = vadd.xlane.f32.xlu2 %v772_v37 }
 0x21f   : > { %v839_v38 = vpop.xlane.xlu2 %838 }
 0x220   : > { %v843_v39 = vsub.f32 %v835_v24, %v839_v38 }
 0x222   : > { %v845_v40 = vmul.f32 1.442695, %v843_v39 }
 0x224   : > { %1778 = vpow2.f32 %v845_v40 }
 0x227   : > { %v765_v41 = vpop.xlane.xlu2 %764  ;;  %v842_v48 = vpop.xlane.xlu0 %841 }
 0x228   : > { %v767_v42 = vsub.f32 %v757_v29, %v765_v41  ;;  %v844_v49 = vsub.f32 %v836_v30, %v842_v48  ;;  %v2026_v29 = vld [vmem:[%s626_s18] ss:$0 sm:$0xff]  ;;  %s640_s18 = scalar_lea.vmem %s2267_s9, %s2276_s30 }
 0x22a   : > { %v1779_v43 = vpop.eup %1778  ;;  %v770_v44 = vmul.f32 1.442695, %v767_v42  ;;  %v847_v50 = vmul.f32 1.442695, %v844_v49 }
 0x22b   : > { %v849_v45 = vsel %vm758_vm2, %v1779_v43, 0.0 }
 0x22c   : > { %1780 = vpow2.f32 %v770_v44  ;;  %850 = vadd.xlane.f32.xlu1 %v849_v45 }
 0x22d   : > { %1782 = vpow2.f32 %v847_v50 }
 0x232   : > { %v1781_v46 = vpop.eup %1780 }
 0x233   : > { %v775_v47 = vsel %vm762_vm3, %v1781_v46, 0.0  ;;  %v1783_v51 = vpop.eup %1782 }
 0x234   : > { %776 = vadd.xlane.f32.xlu2 %v775_v47  ;;  %v852_v52 = vsel %vm762_vm3, %v1783_v51, 0.0 }
 0x23a   : > { %v861_v60 = vpop.permute.xlu0 %860 }
 0x23b   : > { %v866_v4 = vand.u32 %v861_v60, %v1994_v59  ;;  %v2070_v60 = vld [vmem:[%s637_s21 + $0x8] sm:$0xff] }
 0x23c   : > { %1014 = vmatpush.bf16.msrb.mxu1 %v2070_v60 }
 0x24c   : > { %783 = vrot.lane.b32.xlu2 %v1966_v10, %s1838_s20 }
 0x275   : > { %853 = vadd.xlane.f32.xlu2 %v852_v52 }
 0x291   : > { %v774_v53 = vpop.xlane.xlu2 %773 }
 0x292   : > { %1784 = vrcp.f32 %v774_v53 }
 0x298   : > { %v1785_v57 = vpop.eup %1784 }
 0x299   : > { %v780_v5 = vmul.f32 %v1785_v57, %v1777_v36 }
 0x29f   : > { %v851_v8 = vpop.xlane.xlu1 %850 }
 0x2a7   : > { %v777_v54 = vpop.xlane.xlu2 %776 }
 0x2a8   : > { %1786 = vrcp.f32 %v777_v54 }
 0x2a9   : > { %1788 = vrcp.f32 %v851_v8 }
 0x2ae   : > { %v1787_v58 = vpop.eup %1786 }
 0x2af   : > { %v784_v61 = vpop.permute.xlu2 %783  ;;  %v781_v62 = vmul.f32 %v1787_v58, %v1781_v46  ;;  %v1789_v10 = vpop.eup %1788 }
 0x2b0   : > { %v793_v63 = vand.u32 %v1994_v59, %v784_v61  ;;  %v857_v12 = vmul.f32 %v1789_v10, %v1779_v43 }
 0x2b1   : > { %v782_v7 = vpack.c.bf16 %v781_v62, %v780_v5 }
 0x2b2   : > { %802 = vmatpush.bf16.msra.mxu2 %v793_v63  ;;  %v2074_v63 = vld [vmem:[%s637_s21] sm:$0xff]  ;;  %s654_s21 = scalar_lea.vmem %s2271_s13, %s2276_s30 }
 0x2b3   : > { %1015 = vmatpush.bf16.msrb.mxu1 %v2074_v63 }
 0x2b5   : > { %1671 = vmatmul.msk.bf16.vlgmr.msra.gmra.mxu2 %vm758_vm2, %v782_v7 }
 0x2b6   : > { %875 = vmatpush.bf16.msrb.mxu2 %v866_v4 }
 0x2ba   : > { %1143 = vmatpush.bf16.msra.mxu2 %v1943_v0  ;;  %v2006_v0 = vld [vmem:[%s623_s24 + $0x8] sm:$0xff]  ;;  %s632_s24 = scalar_lea.vmem %s2265_s7, %s2276_s30 }
 0x2bb   : > { %917 = vmatpush.bf16.msrb.mxu0 %v2006_v0 }
 0x2be   : > { %1144 = vmatpush.bf16.msra.mxu2 %v1945_v1 }
 0x2bf   : > { %918 = vmatpush.bf16.msrb.mxu0 %v1732_v19 }
 0x2e8   : > { %v854_v9 = vpop.xlane.xlu2 %853 }
 0x2e9   : > { %1790 = vrcp.f32 %v854_v9 }
 0x2ef   : > { %v1791_v11 = vpop.eup %1790 }
 0x2f0   : > { %v858_v13 = vmul.f32 %v1791_v11, %v1783_v51 }
 0x2f2   : > { %v859_v14 = vpack.c.bf16 %v858_v13, %v857_v12  ;;  %v1739_v13 = vld [vmem:[%s645_s23 + $0x18] sm:$0xff] }
 0x2f3   : > { %1060 = vmatpush.bf16.msrb.mxu3 %v1739_v13 }
 0x2f4   : > { %1673 = vmatmul.msk.bf16.vlgmr.msrb.gmra.mxu2 %vm758_vm2, %v859_v14 }
 0x304   : > { %1712 = vmatmul.msk.bf16.vlgmr.msra.gmra.mxu2 %vm708_vm0, %v1133_v22 }
 0x338   : > { %v804_v1 = vpop.f32.mrf.mxu2 }
 0x340   : > { %v806_v15 = vpop.f32.mrf.mxu2 }
 0x377   : > { %v877_v16 = vpop.f32.mrf.mxu2 }
 0x37f   : > { %v879_v17 = vpop.f32.mrf.mxu2 }
 0x380   : > { %v1756_v18 = vpack.i.bf16 %v879_v17, %v877_v16 }
 0x382   : > { %1757 = vrot.lane.b32.xlu1 %v1756_v18, %s1840_s19  ;;  %v1737_v18 = vld [vmem:[%s645_s23 + $0x8] sm:$0xff] }
 0x387   : > { %v1146_v34 = vpop.f32.mrf.mxu2 }
 0x388   : > { %v1147_v40 = vadd.f32 %v1962_v6, %v1146_v34  ;;  %v2096_v34 = vld [vmem:[%s632_s24] ss:$0 sm:$0xff] }
 0x38f   : > { %v1148_v39 = vpop.f32.mrf.mxu2 }
 0x390   : > { %v1149_v41 = vadd.f32 %v1962_v6, %v1148_v39  ;;  %v1771_v39 = vld [vmem:[%s2259_s1 + $0x1] ss:$0 sm:$0xff] }
 0x392   : > { %v2036_v42 = vpack.c.bf16 %v1149_v41, %v1147_v40 }
 0x3f4   : > { %v1758_v23 = vpop.permute.xlu1 %1757 }
 0x3f5   : > { %v1760_v24 = vunpack.i.h.bf16 %v1758_v23  ;;  %v1759_v25 = vunpack.i.l.bf16 %v1758_v23 }
 0x3f7   : > { %v891_v26 = vsel %vm730_vm1, %v806_v15, %v1760_v24  ;;  %v890_v27 = vsel %vm730_vm1, %v804_v1, %v1759_v25  ;;  %v1738_v1 = vld [vmem:[%s645_s23 + $0x10] sm:$0xff] }
 0x3f8   : > { %v892_v28 = vpack.c.bf16 %v891_v26, %v890_v27  ;;  %1061 = vmatpush.bf16.msrb.mxu3 %v1738_v1  ;;  %v1736_v27 = vld [vmem:[%s645_s23] sm:$0xff] }
 0x3fa   : > { %1682 = vmatmul.msk.bf16.vlgmr.msrb.gmra.mxu0 %vm708_vm0, %v892_v28 }
 0x3fc   : > { %1062 = vmatpush.bf16.msrb.mxu3 %v1737_v18 }
 0x400   : > { %1063 = vmatpush.bf16.msrb.mxu3 %v1736_v27 }
 0x477   : > { %v920_v30 = vpop.f32.mrf.mxu0 }
 0x478   : > { %v921_v31 = vadd.f32 %v2026_v29, %v920_v30 }
 0x47a   : > { %v925_v32 = vadd.f32 %v921_v31, %v1953_v2  ;;  %v1841_v2 = vmov 32.0  }
 0x47b   : > { %1792 = vrcp.f32 %v1841_v2 }
 0x47c   : > { %v927_v33 = vsel %vm708_vm0, %v925_v32, 0.0 }
 0x47d   : > { %928 = vadd.xlane.f32.xlu0 %v927_v33 }
 0x47f   : > { %v922_v35 = vpop.f32.mrf.mxu0 }
 0x480   : > { %v923_v36 = vadd.f32 %v2026_v29, %v922_v35 }
 0x481   : > { %v1793_v43 = vpop.eup %1792 }
 0x482   : > { %v926_v37 = vadd.f32 %v923_v36, %v1956_v3  ;;  %v935_v3 = vmul.f32 32.0, %v1793_v43  ;;  %vm939_vm7 = vweird.f32 %v1793_v43 }
 0x484   : > { %v931_v38 = vsel %vm930_vm6, %v926_v37, 0.0  ;;  %v936_v44 = vsub.f32 1.0, %v935_v3 }
 0x485   : > { %932 = vadd.xlane.f32.xlu1 %v931_v38 }
 0x486   : > { %v937_v45 = vmul.f32 %v1793_v43, %v936_v44 }
 0x488   : > { %v938_v46 = vadd.f32 %v1793_v43, %v937_v45 }
 0x48a   : > { %v2042_v47 = vsel %vm939_vm7, %v1793_v43, %v938_v46  ;;  %v2117_v46 = vld [vmem:[%s640_s18] ss:$0 sm:$0xff]  ;;  %s2221_s18 = scalar_lea.vmem %s2272_s14, %s1931_s16 }
 0x491   : > { %1227 = vrot.lane.b32.xlu0 %v2036_v42, %s1834_s26  ;;  %s651_s26 = scalar_lea.vmem %s2270_s12, %s2276_s30 }
 0x49e   : > { %1153 = vrot.lane.b32.xlu1 %v2036_v42, %s1835_s27  ;;  %s629_s27 = scalar_lea.vmem %s2264_s6, %s2276_s30 }
 0x49f   : > { %v2087_v26 = vld [vmem:[%s629_s27] ss:$0 sm:$0xff] }
 0x4f0   : > { %v929_v6 = vpop.xlane.xlu0 %928 }
 0x4f1   : > { %v941_v48 = vmul.f32 %v2042_v47, %v929_v6 }
 0x4f3   : > { %v943_v49 = vsub.f32 %v925_v32, %v941_v48 }
 0x4f5   : > { %v945_v50 = vmul.f32 %v943_v49, %v943_v49 }
 0x4f7   : > { %v947_v51 = vsel %vm708_vm0, %v945_v50, 0.0 }
 0x4f8   : > { %v933_v52 = vpop.xlane.xlu1 %932  ;;  %948 = vadd.xlane.f32.xlu2 %v947_v51 }
 0x4f9   : > { %v942_v53 = vmul.f32 %v2042_v47, %v933_v52 }
 0x4fb   : > { %v944_v54 = vsub.f32 %v926_v37, %v942_v53 }
 0x4fd   : > { %v946_v55 = vmul.f32 %v944_v54, %v944_v54 }
 0x4ff   : > { %v950_v56 = vsel %vm930_vm6, %v946_v55, 0.0 }
 0x500   : > { %951 = vadd.xlane.f32.xlu2 %v950_v56 }
 0x503   : > { %v1228_v56 = vpop.permute.xlu0 %1227 }
 0x510   : > { %v1154_v57 = vpop.permute.xlu1 %1153 }
 0x511   : > { %v1159_v58 = vsel %vm730_vm1, %v1154_v57, 0 }
 0x512   : > { %1168 = vmatpush.bf16.xpose.msra.mxu0 %v1159_v58 }
 0x518   : > { %1229 = vrot.lane.b32.xlu2 %v2036_v42, %s1836_s28 }
 0x519   : > { %1713 = vmatmul.msk.bf16.vlgmr.msra.gmra.mxu0 %vm730_vm1, %v2036_v42 }
 0x51a   : > { %1320 = vmatpush.bf16.msrb.mxu0 %v2006_v0 }
 0x51e   : > { %1321 = vmatpush.bf16.msrb.mxu0 %v1732_v19 }
 0x56b   : > { %v949_v61 = vpop.xlane.xlu2 %948 }
 0x56c   : > { %v953_v62 = vmul.f32 %v949_v61, %v2042_v47 }
 0x56e   : > { %v955_v4 = vadd.f32 1e-05, %v953_v62 }
 0x570   : > { %1794 = vrsqrt.f32 %v955_v4  ;;  %vm963_vm9 = vweird.f32 %v955_v4 }
 0x573   : > { %v952_v5 = vpop.xlane.xlu2 %951 }
 0x574   : > { %v954_v7 = vmul.f32 %v952_v5, %v2042_v47 }
 0x576   : > { %v1795_v8 = vpop.eup %1794  ;;  %v956_v9 = vadd.f32 1e-05, %v954_v7 }
 0x577   : > { %v958_v10 = vmul.f32 %v1795_v8, %v955_v4  ;;  %vm964_vm8 = vweird.f32 %v1795_v8 }
 0x578   : > { %1796 = vrsqrt.f32 %v956_v9  ;;  %vm965_vm10 = vmor %vm963_vm9, %vm964_vm8  ;;  %vm973_vm12 = vweird.f32 %v956_v9 }
 0x579   : > { %v959_v11 = vmul.f32 %v1795_v8, %v958_v10 }
 0x57b   : > { %v960_v12 = vmul.f32 0.5, %v959_v11  ;;  %v1230_v24 = vpop.permute.xlu2 %1229 }
 0x57c   : > { %v1235_v30 = vsel %vm730_vm1, %v1230_v24, 0 }
 0x57d   : > { %v961_v14 = vsub.f32 1.5, %v960_v12  ;;  %1244 = vmatpush.bf16.xpose.msra.mxu3 %v1235_v30 }
 0x57e   : > { %v1797_v0 = vpop.eup %1796 }
 0x57f   : > { %v962_v15 = vmul.f32 %v1795_v8, %v961_v14  ;;  %v968_v16 = vmul.f32 %v1797_v0, %v956_v9  ;;  %vm974_vm11 = vweird.f32 %v1797_v0 }
 0x580   : > { %vm975_vm13 = vmor %vm973_vm12, %vm974_vm11 }
 0x581   : > { %v969_v17 = vmul.f32 %v1797_v0, %v968_v16  ;;  %v966_v19 = vsel %vm965_vm10, %v1795_v8, %v962_v15 }
 0x582   : > { %v977_v25 = vmul.f32 %v966_v19, %v943_v49 }
 0x583   : > { %v970_v22 = vmul.f32 0.5, %v969_v17 }
 0x584   : > { %v982_v33 = vmul.f32 %v2087_v26, %v977_v25 }
 0x585   : > { %v971_v23 = vsub.f32 1.5, %v970_v22 }
 0x586   : > { %v2100_v36 = vadd.f32 %v2096_v34, %v982_v33 }
 0x587   : > { %v972_v28 = vmul.f32 %v1797_v0, %v971_v23 }
 0x589   : > { %v976_v31 = vsel %vm975_vm13, %v1797_v0, %v972_v28 }
 0x58a   : > { %v978_v32 = vmul.f32 %v976_v31, %v944_v54 }
 0x58c   : > { %v983_v35 = vmul.f32 %v2087_v26, %v978_v32 }
 0x58e   : > { %v2103_v37 = vadd.f32 %v2096_v34, %v983_v35 }
 0x590   : > { %v989_v38 = vpack.c.bf16 %v2103_v37, %v2100_v36 }
 0x592   : > { %1691 = vmatmul.msk.bf16.vlgmr.msrb.gmra.mxu1 %vm708_vm0, %v989_v38 }
 0x596   : > { %v1170_v40 = vpop.f32.mrf.mxu0 }
 0x597   : > { %v1175_v41 = vmul.f32 0.25, %v1170_v40 }
 0x599   : > { %v1180_v2 = vadd.f32 %v1771_v39, %v1175_v41 }
 0x59b   : > { %v1182_v43 = vsel %vm758_vm2, %v1180_v2, -inf }
 0x59c   : > { %1183 = vmax.xlane.f32.xlu1 %v1182_v43 }
 0x59e   : > { %v1172_v8 = vpop.f32.mrf.mxu0 }
 0x59f   : > { %v1176_v10 = vmul.f32 0.25, %v1172_v8 }
 0x5a1   : > { %v1181_v14 = vadd.f32 %v1771_v39, %v1176_v10 }
 0x60f   : > { %v1017_v3 = vpop.f32.mrf.mxu1  ;;  %v1184_v44 = vpop.xlane.xlu1 %1183 }
 0x610   : > { %v1188_v45 = vsub.f32 %v1180_v2, %v1184_v44  ;;  %v1018_v48 = vadd.f32 %v2117_v46, %v1017_v3 }
 0x612   : > { %v1190_v6 = vmul.f32 1.442695, %v1188_v45  ;;  %v1022_v52 = vmax.f32 %v1018_v48, 0.0 }
 0x614   : > { %1798 = vpow2.f32 %v1190_v6 }
 0x617   : > { %v1019_v49 = vpop.f32.mrf.mxu1 }
 0x618   : > { %v1020_v50 = vadd.f32 %v2117_v46, %v1019_v49 }
 0x61a   : > { %v2125_v51 = vpop.eup %1798  ;;  %v1023_v53 = vmax.f32 %v1020_v50, 0.0 }
 0x61b   : > { %v1194_v54 = vsel %vm758_vm2, %v2125_v51, 0.0 }
 0x61c   : > { %v1024_v55 = vpack.c.bf16 %v1023_v53, %v1022_v52  ;;  %1195 = vadd.xlane.f32.xlu1 %v1194_v54 }
 0x61e   : > { %1708 = vmatmul.msk.bf16.vlgmr.msrb.gmra.mxu3 %vm1052_vm14, %v1024_v55 }
 0x61f   : > { %1406 = vmatpush.bf16.msrb.mxu3 %v1739_v13 }
 0x623   : > { %1407 = vmatpush.bf16.msrb.mxu3 %v1738_v1  ;;  %v1185_v1 = vsel %vm762_vm3, %v1181_v14, -inf }
 0x627   : > { %1408 = vmatpush.bf16.msrb.mxu3 %v1737_v18 }
 0x62b   : > { %1409 = vmatpush.bf16.msrb.mxu3 %v1736_v27 }
 0x62e   : > { %1715 = vmatmul.msk.bf16.vlgmr.msra.gmra.mxu3 %vm730_vm1, %v1228_v56 }
 0x635   : > { %1205 = vrot.lane.b32.xlu1 %v2036_v42, %s1838_s20  ;;  %s2274_s20 = smov 48  }
 0x68f   : > { %v1196_v57 = vpop.xlane.xlu1 %1195 }
 0x6a1   : > { %v2133_v58 = vpop.f32.mrf.mxu3 }
 0x6a7   : > { %v1206_v61 = vpop.permute.xlu1 %1205 }
 0x6a8   : > { %v1211_v62 = vand.u32 %v1206_v61, %v1994_v59 }
 0x6a9   : > { %v2136_v4 = vpop.f32.mrf.mxu3 }
 0x6aa   : > { %1220 = vmatpush.bf16.msra.mxu1 %v1211_v62 }
 0x6ae   : > { %1388 = vmatpush.bf16.msrb.mxu1 %v2070_v60 }
 0x6b1   : > { %v1246_v5 = vpop.f32.mrf.mxu3 }
 0x6b2   : > { %1389 = vmatpush.bf16.msrb.mxu1 %v2074_v63  ;;  %v1251_v7 = vmul.f32 0.25, %v1246_v5 }
 0x6b4   : > { %v1253_v9 = vadd.f32 %v1771_v39, %v1251_v7 }
 0x6b6   : > { %v1255_v11 = vsel %vm758_vm2, %v1253_v9, -inf }
 0x6b7   : > { %1256 = vmax.xlane.f32.xlu2 %v1255_v11 }
 0x6b9   : > { %v1248_v12 = vpop.f32.mrf.mxu3 }
 0x6ba   : > { %v1252_v13 = vmul.f32 0.25, %v1248_v12  ;;  %v2165_v12 = vld [vmem:[%s648_s25] ss:$0 sm:$0xff] }
 0x6bc   : > { %v1254_v0 = vadd.f32 %v1771_v39, %v1252_v13 }
 0x6be   : > { %v1258_v15 = vsel %vm762_vm3, %v1254_v0, -inf }
 0x6bf   : > { %1186 = vmax.xlane.f32.xlu2 %v1185_v1  ;;  %1259 = vmax.xlane.f32.xlu0 %v1258_v15 }
 0x72a   : > { %v1257_v60 = vpop.xlane.xlu2 %1256 }
 0x72b   : > { %v1261_v63 = vsub.f32 %v1253_v9, %v1257_v60 }
 0x72d   : > { %v1263_v16 = vmul.f32 1.442695, %v1261_v63 }
 0x72f   : > { %1800 = vpow2.f32 %v1263_v16 }
 0x732   : > { %v1260_v17 = vpop.xlane.xlu0 %1259  ;;  %v1187_v18 = vpop.xlane.xlu2 %1186 }
 0x733   : > { %v1262_v19 = vsub.f32 %v1254_v0, %v1260_v17  ;;  %v1189_v24 = vsub.f32 %v1181_v14, %v1187_v18  ;;  %v1068_v14 = vadd.f32 %v2165_v12, %v2136_v4  ;;  %v1066_v18 = vadd.f32 %v2165_v12, %v2133_v58 }
 0x735   : > { %v1801_v22 = vpop.eup %1800  ;;  %v1265_v23 = vmul.f32 1.442695, %v1262_v19  ;;  %v1192_v27 = vmul.f32 1.442695, %v1189_v24 }
 0x736   : > { %v1267_v25 = vsel %vm758_vm2, %v1801_v22, 0.0 }
 0x737   : > { %1268 = vadd.xlane.f32.xlu0 %v1267_v25  ;;  %1802 = vpow2.f32 %v1265_v23 }
 0x738   : > { %1804 = vpow2.f32 %v1192_v27 }
 0x73d   : > { %v1803_v28 = vpop.eup %1802 }
 0x73e   : > { %v1270_v30 = vsel %vm762_vm3, %v1803_v28, 0.0  ;;  %v1805_v31 = vpop.eup %1804 }
 0x73f   : > { %1271 = vadd.xlane.f32.xlu2 %v1270_v30  ;;  %v1197_v32 = vsel %vm762_vm3, %v1805_v31, 0.0 }
 0x747   : > { %1198 = vadd.xlane.f32.xlu2 %v1197_v32 }
 0x74b   : > { %1278 = vrot.lane.b32.xlu0 %v2036_v42, %s2274_s20 }
 0x7aa   : > { %v1269_v33 = vpop.xlane.xlu0 %1268 }
 0x7b2   : > { %v1272_v35 = vpop.xlane.xlu2 %1271 }
 0x7b3   : > { %1806 = vrcp.f32 %v1272_v35 }
 0x7b4   : > { %1808 = vrcp.f32 %v1269_v33 }
 0x7b5   : > { %1810 = vrcp.f32 %v1196_v57 }
 0x7b9   : > { %v1807_v38 = vpop.eup %1806 }
 0x7ba   : > { %v1199_v39 = vpop.xlane.xlu2 %1198  ;;  %v1809_v40 = vpop.eup %1808  ;;  %v1276_v41 = vmul.f32 %v1807_v38, %v1803_v28 }
 0x7bb   : > { %1812 = vrcp.f32 %v1199_v39  ;;  %v1275_v3 = vmul.f32 %v1809_v40, %v1801_v22  ;;  %v1811_v44 = vpop.eup %1810  ;;  %v1070_v22 = vadd.f32 %v1066_v18, %v2100_v36 }
 0x7bc   : > { %v1202_v42 = vmul.f32 %v1811_v44, %v2125_v51 }
 0x7bd   : > { %v1279_v2 = vpop.permute.xlu0 %1278  ;;  %v1277_v45 = vpack.c.bf16 %v1276_v41, %v1275_v3  ;;  %v1072_v23 = vsel %vm708_vm0, %v1070_v22, 0.0 }
 0x7be   : > { %v1284_v43 = vand.u32 %v1279_v2, %v1994_v59 }
 0x7c0   : > { %1293 = vmatpush.bf16.msrb.mxu2 %v1284_v43 }
 0x7c1   : > { %v1813_v6 = vpop.eup %1812 }
 0x7c2   : > { %v1203_v48 = vmul.f32 %v1813_v6, %v1805_v31 }
 0x7c3   : > { %1716 = vmatmul.msk.bf16.vlgmr.msrb.gmra.mxu2 %vm758_vm2, %v1277_v45 }
 0x7c4   : > { %v1204_v49 = vpack.c.bf16 %v1203_v48, %v1202_v42 }
 0x7c6   : > { %1714 = vmatmul.msk.bf16.vlgmr.msra.gmra.mxu1 %vm758_vm2, %v1204_v49 }
 0x843   : > { %v1222_v54 = vpop.f32.mrf.mxu1 }
 0x846   : > { %v1295_v50 = vpop.f32.mrf.mxu2 }
 0x84b   : > { %v1224_v57 = vpop.f32.mrf.mxu1 }
 0x84e   : > { %v1297_v52 = vpop.f32.mrf.mxu2 }
 0x84f   : > { %v1761_v53 = vpack.i.bf16 %v1297_v52, %v1295_v50 }
 0x851   : > { %1762 = vrot.lane.b32.xlu2 %v1761_v53, %s1840_s19 }
 0x8ab   : > { %v1763_v59 = vpop.permute.xlu2 %1762 }
 0x8ac   : > { %v1765_v55 = vunpack.i.h.bf16 %v1763_v59  ;;  %v1764_v56 = vunpack.i.l.bf16 %v1763_v59 }
 0x8ae   : > { %v1309_v61 = vsel %vm730_vm1, %v1224_v57, %v1765_v55  ;;  %v1308_v51 = vsel %vm730_vm1, %v1222_v54, %v1764_v56 }
 0x8af   : > { %v1310_v62 = vpack.c.bf16 %v1309_v61, %v1308_v51 }
 0x8b1   : > { %1717 = vmatmul.msk.bf16.vlgmr.msrb.gmra.mxu0 %vm708_vm0, %v1310_v62 }
 0x92e   : > { %v1323_v5 = vpop.f32.mrf.mxu0 }
 0x92f   : > { %v1324_v7 = vadd.f32 %v2026_v29, %v1323_v5 }
 0x931   : > { %v1328_v8 = vadd.f32 %v2015_v20, %v1324_v7  ;;  %v2172_v20 = vadd.f32 %v1068_v14, %v2103_v37  ;;  %v2214_v14 = vld [vmem:[%s654_s21] ss:$0 sm:$0xff] }
 0x933   : > { %v1330_v9 = vsel %vm708_vm0, %v1328_v8, 0.0 }
 0x934   : > { %1331 = vadd.xlane.f32.xlu0 %v1330_v9 }
 0x936   : > { %v1325_v10 = vpop.f32.mrf.mxu0 }
 0x937   : > { %v1326_v11 = vadd.f32 %v2026_v29, %v1325_v10  ;;  %v1075_v29 = vsel %vm930_vm6, %v2172_v20, 0.0 }
 0x939   : > { %v1329_v13 = vadd.f32 %v2018_v21, %v1326_v11 }
 0x93b   : > { %v1333_v0 = vsel %vm930_vm6, %v1329_v13, 0.0 }
 0x93c   : > { %1334 = vadd.xlane.f32.xlu1 %v1333_v0 }
 0x944   : > { %1076 = vadd.xlane.f32.xlu1 %v1075_v29 }
 0x9a7   : > { %v1332_v1 = vpop.xlane.xlu0 %1331 }
 0x9a8   : > { %v1336_v15 = vmul.f32 %v1332_v1, %v2042_v47 }
 0x9aa   : > { %v1338_v60 = vsub.f32 %v1328_v8, %v1336_v15 }
 0x9ac   : > { %v1340_v21 = vmul.f32 %v1338_v60, %v1338_v60 }
 0x9ae   : > { %v1342_v63 = vsel %vm708_vm0, %v1340_v21, 0.0 }
 0x9af   : > { %v1335_v4 = vpop.xlane.xlu1 %1334  ;;  %1343 = vadd.xlane.f32.xlu2 %v1342_v63 }
 0x9b0   : > { %v1337_v16 = vmul.f32 %v1335_v4, %v2042_v47 }
 0x9b2   : > { %v1339_v17 = vsub.f32 %v1329_v13, %v1337_v16 }
 0x9b4   : > { %v1341_v37 = vmul.f32 %v1339_v17, %v1339_v17 }
 0x9b6   : > { %v1345_v19 = vsel %vm930_vm6, %v1341_v37, 0.0 }
 0x9b7   : > { %1346 = vadd.xlane.f32.xlu0 %v1345_v19  ;;  %v1077_v61 = vpop.xlane.xlu1 %1076 }
 0x9b8   : > { %v1079_v18 = vmul.f32 %v1077_v61, %v2042_v47 }
 0x9bf   : > { %1073 = vadd.xlane.f32.xlu0 %v1072_v23  ;;  %v1081_v23 = vsub.f32 %v2172_v20, %v1079_v18 }
 0xa22   : > { %v1344_v24 = vpop.xlane.xlu2 %1343 }
 0xa23   : > { %v1348_v25 = vmul.f32 %v1344_v24, %v2042_v47 }
 0xa25   : > { %v1350_v58 = vadd.f32 1e-05, %v1348_v25 }
 0xa27   : > { %1814 = vrsqrt.f32 %v1350_v58  ;;  %vm1358_vm1 = vweird.f32 %v1350_v58 }
 0xa2a   : > { %v1347_v27 = vpop.xlane.xlu0 %1346 }
 0xa2b   : > { %v1349_v28 = vmul.f32 %v1347_v27, %v2042_v47 }
 0xa2d   : > { %v1815_v36 = vpop.eup %1814  ;;  %v1351_v30 = vadd.f32 1e-05, %v1349_v28 }
 0xa2e   : > { %v1353_v31 = vmul.f32 %v1815_v36, %v1350_v58  ;;  %vm1359_vm15 = vweird.f32 %v1815_v36 }
 0xa2f   : > { %1816 = vrsqrt.f32 %v1351_v30  ;;  %vm1360_vm2 = vmor %vm1358_vm1, %vm1359_vm15  ;;  %vm1368_vm4 = vweird.f32 %v1351_v30 }
 0xa30   : > { %v1354_v32 = vmul.f32 %v1815_v36, %v1353_v31 }
 0xa32   : > { %v1355_v33 = vmul.f32 0.5, %v1354_v32  ;;  %v1074_v35 = vpop.xlane.xlu0 %1073 }
 0xa33   : > { %v1078_v38 = vmul.f32 %v1074_v35, %v2042_v47 }
 0xa34   : > { %v1356_v39 = vsub.f32 1.5, %v1355_v33 }
 0xa35   : > { %v1817_v40 = vpop.eup %1816  ;;  %v1080_v41 = vsub.f32 %v1070_v22, %v1078_v38 }
 0xa36   : > { %v1357_v2 = vmul.f32 %v1815_v36, %v1356_v39  ;;  %v1363_v43 = vmul.f32 %v1817_v40, %v1351_v30  ;;  %vm1369_vm3 = vweird.f32 %v1817_v40 }
 0xa37   : > { %v1082_v3 = vmul.f32 %v1080_v41, %v1080_v41  ;;  %vm1370_vm5 = vmor %vm1368_vm4, %vm1369_vm3 }
 0xa38   : > { %v1364_v44 = vmul.f32 %v1817_v40, %v1363_v43  ;;  %v1361_v6 = vsel %vm1360_vm2, %v1815_v36, %v1357_v2 }
 0xa39   : > { %v1084_v45 = vsel %vm708_vm0, %v1082_v3, 0.0  ;;  %v1372_v49 = vmul.f32 %v1361_v6, %v1338_v60 }
 0xa3a   : > { %v1365_v42 = vmul.f32 0.5, %v1364_v44  ;;  %1085 = vadd.xlane.f32.xlu1 %v1084_v45 }
 0xa3b   : > { %v1374_v53 = vmul.f32 %v2087_v26, %v1372_v49 }
 0xa3c   : > { %v1366_v48 = vsub.f32 1.5, %v1365_v42 }
 0xa3d   : > { %v1376_v55 = vadd.f32 %v2096_v34, %v1374_v53 }
 0xa3e   : > { %v1367_v50 = vmul.f32 %v1817_v40, %v1366_v48 }
 0xa40   : > { %v1371_v52 = vsel %vm1370_vm5, %v1817_v40, %v1367_v50 }
 0xa41   : > { %v1373_v54 = vmul.f32 %v1371_v52, %v1339_v17 }
 0xa43   : > { %v1375_v59 = vmul.f32 %v2087_v26, %v1373_v54 }
 0xa45   : > { %v1377_v56 = vadd.f32 %v2096_v34, %v1375_v59  ;;  %v2207_v34 = vld [vmem:[%s651_s26] ss:$0 sm:$0xff] }
 0xa47   : > { %v1378_v57 = vpack.c.bf16 %v1377_v56, %v1376_v55 }
 0xa49   : > { %1718 = vmatmul.msk.bf16.vlgmr.msrb.gmra.mxu1 %vm708_vm0, %v1378_v57 }
 0xaad   : > { %v1086_v51 = vpop.xlane.xlu1 %1085 }
 0xaae   : > { %v1090_v62 = vmul.f32 %v1086_v51, %v2042_v47 }
 0xab0   : > { %v1092_v5 = vadd.f32 1e-05, %v1090_v62 }
 0xab2   : > { %1818 = vrsqrt.f32 %v1092_v5  ;;  %vm1100_vm8 = vweird.f32 %v1092_v5 }
 0xab8   : > { %v1819_v7 = vpop.eup %1818 }
 0xab9   : > { %v1095_v8 = vmul.f32 %v1819_v7, %v1092_v5  ;;  %vm1101_vm7 = vweird.f32 %v1819_v7 }
 0xaba   : > { %vm1102_vm9 = vmor %vm1100_vm8, %vm1101_vm7 }
 0xabb   : > { %v1096_v9 = vmul.f32 %v1819_v7, %v1095_v8 }
 0xabd   : > { %v1097_v26 = vmul.f32 0.5, %v1096_v9 }
 0xabf   : > { %v1098_v10 = vsub.f32 1.5, %v1097_v26 }
 0xac1   : > { %v1099_v11 = vmul.f32 %v1819_v7, %v1098_v10 }
 0xac3   : > { %v1103_v13 = vsel %vm1102_vm9, %v1819_v7, %v1099_v11 }
 0xac4   : > { %v1114_v0 = vmul.f32 %v1103_v13, %v1080_v41 }
 0xac6   : > { %v1119_v29 = vmul.f32 %v2207_v34, %v1114_v0  ;;  %v1391_v1 = vpop.f32.mrf.mxu1 }
 0xac7   : > { %v1392_v60 = vadd.f32 %v2117_v46, %v1391_v1 }
 0xac8   : > { %v1124_v15 = vadd.f32 %v2214_v14, %v1119_v29 }
 0xac9   : > { %v1396_v4 = vmax.f32 %v1392_v60, 0.0 }
 0xaca   : > { %1126 = vst.msk [vmem:[%s2221_s18] sm:$0xff] %vm708_vm0, %v1124_v15 }
 0xace   : > { %v1393_v21 = vpop.f32.mrf.mxu1 }
 0xacf   : > { %v1394_v63 = vadd.f32 %v2117_v46, %v1393_v21  ;;  %v1083_v46 = vmul.f32 %v1081_v23, %v1081_v23 }
 0xad1   : > { %v1397_v16 = vmax.f32 %v1394_v63, 0.0  ;;  %v1087_v36 = vsel %vm930_vm6, %v1083_v46, 0.0 }
 0xad3   : > { %v1398_v17 = vpack.c.bf16 %v1397_v16, %v1396_v4 }
 0xad5   : > { %1719 = vmatmul.msk.bf16.vlgmr.msrb.gmra.mxu3 %vm1052_vm14, %v1398_v17 }
 0xb58   : > { %v1411_v37 = vpop.f32.mrf.mxu3 }
 0xb59   : > { %v1412_v19 = vadd.f32 %v2165_v12, %v1411_v37 }
 0xb5b   : > { %v1416_v22 = vadd.f32 %v1412_v19, %v1376_v55 }
 0xb5d   : > { %v1418_v24 = vsel %vm708_vm0, %v1416_v22, 0.0 }
 0xb5e   : > { %1419 = vadd.xlane.f32.xlu2 %v1418_v24 }
 0xb60   : > { %v1413_v25 = vpop.f32.mrf.mxu3 }
 0xb61   : > { %v1414_v58 = vadd.f32 %v2165_v12, %v1413_v25 }
 0xb63   : > { %v1417_v27 = vadd.f32 %v1414_v58, %v1377_v56 }
 0xb65   : > { %v1421_v28 = vsel %vm930_vm6, %v1417_v27, 0.0 }
 0xb66   : > { %1422 = vadd.xlane.f32.xlu0 %v1421_v28  ;;  %1088 = vadd.xlane.f32.xlu2 %v1087_v36 }
 0xbd1   : > { %v1420_v30 = vpop.xlane.xlu2 %1419 }
 0xbd2   : > { %v1424_v31 = vmul.f32 %v1420_v30, %v2042_v47 }
 0xbd4   : > { %v1426_v32 = vsub.f32 %v1416_v22, %v1424_v31 }
 0xbd6   : > { %v1428_v33 = vmul.f32 %v1426_v32, %v1426_v32 }
 0xbd8   : > { %v1430_v20 = vsel %vm708_vm0, %v1428_v33, 0.0 }
 0xbd9   : > { %1431 = vadd.xlane.f32.xlu0 %v1430_v20  ;;  %v1089_v35 = vpop.xlane.xlu2 %1088  ;;  %v1423_v38 = vpop.xlane.xlu0 %1422 }
 0xbda   : > { %v1091_v12 = vmul.f32 %v1089_v35, %v2042_v47  ;;  %v1425_v39 = vmul.f32 %v1423_v38, %v2042_v47 }
 0xbdc   : > { %v1093_v40 = vadd.f32 1e-05, %v1091_v12  ;;  %v1427_v41 = vsub.f32 %v1417_v27, %v1425_v39 }
 0xbde   : > { %1820 = vrsqrt.f32 %v1093_v40  ;;  %v1429_v2 = vmul.f32 %v1427_v41, %v1427_v41  ;;  %vm1110_vm11 = vweird.f32 %v1093_v40 }
 0xbe0   : > { %v1433_v43 = vsel %vm930_vm6, %v1429_v2, 0.0 }
 0xbe1   : > { %1434 = vadd.xlane.f32.xlu1 %v1433_v43 }
 0xbe4   : > { %v1821_v3 = vpop.eup %1820 }
 0xbe5   : > { %v1105_v44 = vmul.f32 %v1821_v3, %v1093_v40  ;;  %vm1111_vm10 = vweird.f32 %v1821_v3 }
 0xbe6   : > { %vm1112_vm12 = vmor %vm1110_vm11, %vm1111_vm10 }
 0xbe7   : > { %v1106_v45 = vmul.f32 %v1821_v3, %v1105_v44 }
 0xbe9   : > { %v1107_v6 = vmul.f32 0.5, %v1106_v45 }
 0xbeb   : > { %v1108_v42 = vsub.f32 1.5, %v1107_v6 }
 0xbed   : > { %v1109_v48 = vmul.f32 %v1821_v3, %v1108_v42 }
 0xbef   : > { %v1113_v49 = vsel %vm1112_vm12, %v1821_v3, %v1109_v48 }
 0xbf0   : > { %v1115_v50 = vmul.f32 %v1113_v49, %v1081_v23 }
 0xbf2   : > { %v1120_v52 = vmul.f32 %v2207_v34, %v1115_v50 }
 0xbf4   : > { %v1125_v53 = vadd.f32 %v2214_v14, %v1120_v52 }
 0xbf6   : > { %1127 = vst.msk [vmem:[%s2221_s18 + $0x8] sm:$0x1] %vm930_vm6, %v1125_v53 }
 0xc4c   : > { %v1432_v54 = vpop.xlane.xlu0 %1431 }
 0xc4d   : > { %v1436_v59 = vmul.f32 %v1432_v54, %v2042_v47 }
 0xc4f   : > { %v1438_v55 = vadd.f32 1e-05, %v1436_v59 }
 0xc51   : > { %1822 = vrsqrt.f32 %v1438_v55  ;;  %vm1446_vm14 = vweird.f32 %v1438_v55 }
 0xc54   : > { %v1435_v56 = vpop.xlane.xlu1 %1434 }
 0xc55   : > { %v1437_v57 = vmul.f32 %v1435_v56, %v2042_v47 }
 0xc57   : > { %v1823_v61 = vpop.eup %1822  ;;  %v1439_v51 = vadd.f32 1e-05, %v1437_v57 }
 0xc58   : > { %v1441_v62 = vmul.f32 %v1823_v61, %v1438_v55  ;;  %vm1447_vm13 = vweird.f32 %v1823_v61 }
 0xc59   : > { %1824 = vrsqrt.f32 %v1439_v51  ;;  %vm1448_vm15 = vmor %vm1446_vm14, %vm1447_vm13  ;;  %vm1456_vm2 = vweird.f32 %v1439_v51 }
 0xc5a   : > { %v1442_v5 = vmul.f32 %v1823_v61, %v1441_v62 }
 0xc5c   : > { %v1443_v7 = vmul.f32 0.5, %v1442_v5 }
 0xc5e   : > { %v1444_v8 = vsub.f32 1.5, %v1443_v7 }
 0xc5f   : > { %v1825_v9 = vpop.eup %1824 }
 0xc60   : > { %v1445_v26 = vmul.f32 %v1823_v61, %v1444_v8  ;;  %v1451_v10 = vmul.f32 %v1825_v9, %v1439_v51  ;;  %vm1457_vm1 = vweird.f32 %v1825_v9 }
 0xc61   : > { %vm1458_vm3 = vmor %vm1456_vm2, %vm1457_vm1 }
 0xc62   : > { %v1449_v11 = vsel %vm1448_vm15, %v1823_v61, %v1445_v26  ;;  %v1452_v13 = vmul.f32 %v1825_v9, %v1451_v10 }
 0xc63   : > { %v1460_v0 = vmul.f32 %v1449_v11, %v1426_v32 }
 0xc64   : > { %v1453_v29 = vmul.f32 0.5, %v1452_v13 }
 0xc65   : > { %v1462_v47 = vmul.f32 %v2207_v34, %v1460_v0 }
 0xc66   : > { %v1454_v1 = vsub.f32 1.5, %v1453_v29 }
 0xc67   : > { %v1464_v15 = vadd.f32 %v2214_v14, %v1462_v47 }
 0xc68   : > { %v1455_v60 = vmul.f32 %v1825_v9, %v1454_v1 }
 0xc69   : > { %1720 = vst.msk [vmem:[%s2221_s18 + $0x10] sm:$0xff] %vm708_vm0, %v1464_v15 }
 0xc6a   : > { %v1459_v21 = vsel %vm1458_vm3, %v1825_v9, %v1455_v60 }
 0xc6b   : > { %v1461_v63 = vmul.f32 %v1459_v21, %v1427_v41 }
 0xc6d   : > { %v1463_v4 = vmul.f32 %v2207_v34, %v1461_v63 }
 0xc6f   : > { %v1465_v16 = vadd.f32 %v2214_v14, %v1463_v4 }
 0xc71   : > { %1721 = vst.msk [vmem:[%s2221_s18 + $0x18] sm:$0x1] %vm930_vm6, %v1465_v16 }
 0xc72 PF: > { %s24_s29 = sadd.s32 1, %s1832_s29  }
 0xc73   : > { %p21_p4 = scmp.ge.s32.totalorder %s24_s29, 7  }
 0xc75   :  { %23 = sbr.rel (!%p21_p4) target bundleno = 1 (0x1), region = 145 }

// kernel: mtstrec_forward.6
= control target key start
LH: loop header
LB: loop body
LE: loop exit
PB: predicated region body
PF: predicated region fallthrough
CT: control target
= control target key end

     0   :  { %s2000_s29 = smov 0   ;;  %s2562_s0 = inlined_call_operand.vmem [shape: f32[2,1,54,32], index: 0, kind: input, shape index: {}]   ;;  %s2563_s1 = inlined_call_operand.vmem [shape: f32[2,1,54], index: 1, kind: input, shape index: {}]   ;;  %s2564_s2 = inlined_call_operand.vmem [shape: bf16[1,32,96], index: 2, kind: input, shape index: {}]   ;;  %s2565_s3 = inlined_call_operand.vmem [shape: f32[1,1,96], index: 3, kind: input, shape index: {}]   ;;  %s2566_s4 = inlined_call_operand.vmem [shape: bf16[1,32,32], index: 4, kind: input, shape index: {}]   ;;  %s2567_s5 = inlined_call_operand.vmem [shape: f32[1,1,32], index: 5, kind: input, shape index: {}]   ;;  %s2568_s6 = inlined_call_operand.vmem [shape: f32[1,1,32], index: 6, kind: input, shape index: {}]   ;;  %s2569_s7 = inlined_call_operand.vmem [shape: f32[1,1,32], index: 7, kind: input, shape index: {}]   ;;  %s2570_s8 = inlined_call_operand.vmem [shape: bf16[1,32,64], index: 8, kind: input, shape index: {}]   ;;  %s2571_s9 = inlined_call_operand.vmem [shape: f32[1,1,64], index: 9, kind: input, shape index: {}]   ;;  %s2572_s10 = inlined_call_operand.vmem [shape: bf16[1,64,32], index: 10, kind: input, shape index: {}]   ;;  %s2573_s11 = inlined_call_operand.vmem [shape: f32[1,1,32], index: 11, kind: input, shape index: {}]   ;;  %s2574_s12 = inlined_call_operand.vmem [shape: f32[1,1,32], index: 12, kind: input, shape index: {}]   ;;  %s2575_s13 = inlined_call_operand.vmem [shape: f32[1,1,32], index: 13, kind: input, shape index: {}]   ;;  %s2576_s14 = inlined_call_operand.vmem [shape: f32[2,1,54,32], index: 14, kind: output, shape index: {}]  }
   0x1 LB: > { %s1693_s30 = sadd.s32 4294967295, %s1916_s29   ;;  %p1697_p0 = scmp.ge.s32.totalorder %s1916_s29, 1  ;;  %s1916_s29 = sphi %s2000_s29, %s24_s29  }
   0x2   : > { %p420_p1 = scmp.lt.s32.totalorder %s1916_s29, 3 }
   0x4   : > { %p421_p2 = pnand %p1697_p0, %p420_p1 }
   0x5   : > { %p469_p3 = scmp.lt.s32.totalorder (!%p421_p2), %s1693_s30, 1  ;;  %s1918_s28 = smov (!%p421_p2), 112  }
   0x6   : > { %424 = sbr.rel (%p421_p2) target bundleno = 2051 (0x803), region = 76  ;;  %s1919_s15 = smov (!%p421_p2), 80  }
   0x7   : > { %s1920_s16 = smov (!%p421_p2), 96   ;;  %s1921_s17 = smov (!%p421_p2), 48  }
   0x8   : > { %s1922_s18 = smov (!%p421_p2), 64  }
   0xb   : > { %v1775_v0 = vld [vmem:[%s2564_s2 + $0x8] sm:$0xff]  ;;  %v1774_v1 = vld [vmem:[%s2564_s2] sm:$0xff]  ;;  %s2578_s30 = smov (!%p469_p3, %s1693_s30), 1  ;;  %vm538_vm0 = vcmask 261120   ;;  %vm595_vm1 = vcmask 130048   ;;  %vm771_vm2 = vcmask 1042432  }
   0xc   : > { %557 = vmatpush.bf16.msra.mxu0 %v1775_v0  ;;  %s1784_s19 = smul.u32 56, %s2578_s30  ;;  %s476_s22 = scalar_lea.vmem %s2563_s1, %s2578_s30  ;;  %v1816_v14 = vld [vmem:[%s2565_s3] ss:$0 sm:$0xff]  ;;  %vm665_vm3 = vcmask 441344   ;;  %vm684_vm4 = vcmask 439296   ;;  %vm1139_vm5 = vcmask 259072  }
   0xd   : > { %v2108_v60 = vld [vmem:[%s476_s22] ss:$0 sm:$0xff]  ;;  %s1923_s22 = smov 16  }
   0xe   : > { %s473_s25 = scalar_lea.vmem %s2562_s0, %s1784_s19 }
   0xf   : > { %v2026_v2 = vld [vmem:[%s473_s25] sm:$0xff]  ;;  %v2028_v3 = vld [vmem:[%s473_s25 + $0x8] sm:$0xff]  ;;  %v2033_v5 = vld [vmem:[%s473_s25 + $0x10] sm:$0xff] }
  0x10   : > { %558 = vmatpush.bf16.msra.mxu0 %v1774_v1  ;;  %v519_v4 = vpack.c.bf16 %v2028_v3, %v2026_v2  ;;  %v2035_v6 = vld [vmem:[%s473_s25 + $0x18] sm:$0xff]  ;;  %v2040_v8 = vld [vmem:[%s473_s25 + $0x20] sm:$0xff]  ;;  %v2042_v9 = vld [vmem:[%s473_s25 + $0x28] sm:$0xff] }
  0x11   : > { %v520_v7 = vpack.c.bf16 %v2035_v6, %v2033_v5  ;;  %v521_v10 = vpack.c.bf16 %v2042_v9, %v2040_v8  ;;  %v2047_v11 = vld [vmem:[%s473_s25 + $0x30] sm:$0x3f] }
  0x12   : > { %v522_v12 = vpack.c.bf16 %v2047_v11, %v2047_v11 }
  0x13   : > { %1708 = vmatmul.msk.bf16.vlgmr.msra.gmra.mxu0 %vm538_vm0, %v519_v4 }
  0x23   : > { %1709 = vmatmul.msk.bf16.gmra.mxu0 %vm538_vm0, %v520_v7 }
  0x33   : > { %1710 = vmatmul.msk.bf16.gmra.mxu0 %vm538_vm0, %v521_v10 }
  0x43   : > { %1711 = vmatmul.msk.bf16.gmra.mxu0 %vm538_vm0, %v522_v12 }
  0x90   : > { %v560_v13 = vpop.f32.mrf.mxu0 }
  0x91   : > { %v561_v16 = vadd.f32 %v1816_v14, %v560_v13 }
  0x98   : > { %v562_v15 = vpop.f32.mrf.mxu0 }
  0x99   : > { %v563_v17 = vadd.f32 %v1816_v14, %v562_v15 }
  0x9b   : > { %v2055_v18 = vpack.c.bf16 %v563_v17, %v561_v16 }
  0x9d   : > { %803 = vrot.lane.b32.xlu2 %v2055_v18, %s1918_s28 }
  0xa0   : > { %v565_v19 = vpop.f32.mrf.mxu0 }
  0xa1   : > { %v566_v21 = vadd.f32 %v1816_v14, %v565_v19 }
  0xa8   : > { %v567_v20 = vpop.f32.mrf.mxu0 }
  0xa9   : > { %v568_v22 = vadd.f32 %v1816_v14, %v567_v20 }
  0xab   : > { %v2058_v23 = vpack.c.bf16 %v568_v22, %v566_v21 }
  0xad   : > { %813 = vrot.lane.b32.xlu1 %v2058_v23, %s1919_s15 }
  0xb0   : > { %v570_v24 = vpop.f32.mrf.mxu0 }
  0xb1   : > { %v571_v29 = vadd.f32 %v1816_v14, %v570_v24 }
  0xb5   : > { %811 = vrot.lane.b32.xlu1 %v2055_v18, %s1919_s15 }
  0xb8   : > { %v572_v25 = vpop.f32.mrf.mxu0 }
  0xb9   : > { %v573_v26 = vadd.f32 %v1816_v14, %v572_v25 }
  0xbb   : > { %v2065_v31 = vpack.c.bf16 %v573_v26, %v571_v29 }
  0xbd   : > { %805 = vrot.lane.b32.xlu1 %v2058_v23, %s1918_s28 }
  0xc0   : > { %v575_v27 = vpop.f32.mrf.mxu0 }
  0xc1   : > { %v576_v28 = vadd.f32 %v1816_v14, %v575_v27 }
  0xc3   : > { %v2063_v30 = vpack.c.bf16 %v576_v28, %v576_v28 }
  0xc5   : > { %817 = vrot.lane.b32.xlu0 %v2063_v30, %s1919_s15  ;;  %593 = vrot.lane.b32.xlu2 %v2063_v30, %s1920_s16 }
  0xc6   : > { %807 = vrot.lane.b32.xlu1 %v2065_v31, %s1918_s28 }
  0xc8   : > { %v577_v32 = vpop.f32.mrf.mxu0 }
  0xcd   : > { %815 = vrot.lane.b32.xlu0 %v2065_v31, %s1919_s15  ;;  %589 = vrot.lane.b32.xlu2 %v2058_v23, %s1920_s16  ;;  %s2521_s15 = scalar_lea.vmem %s2576_s14, %s1784_s19 }
  0xce   : > { %966 = vrot.lane.b32.xlu1 %v2055_v18, %s1921_s17 }
  0xd5   : > { %591 = vrot.lane.b32.xlu0 %v2065_v31, %s1920_s16  ;;  %809 = vrot.lane.b32.xlu2 %v2063_v30, %s1918_s28 }
  0xd6   : > { %972 = vrot.lane.b32.xlu1 %v2063_v30, %s1921_s17 }
  0xdd   : > { %587 = vrot.lane.b32.xlu0 %v2055_v18, %s1920_s16  ;;  %970 = vrot.lane.b32.xlu2 %v2065_v31, %s1921_s17 }
  0xe5   : > { %968 = vrot.lane.b32.xlu0 %v2058_v23, %s1921_s17 }
  0xed   : > { %754 = vrot.lane.b32.xlu0 %v2063_v30, %s1922_s18 }
  0xf7   : > { %v804_v33 = vpop.permute.xlu2 %803 }
 0x11f   : > { %v814_v34 = vpop.permute.xlu1 %813  ;;  %v594_v35 = vpop.permute.xlu2 %593 }
 0x120   : > { %v618_v36 = vsel %vm595_vm1, %v594_v35, 0  ;;  %v835_v50 = vsel %vm595_vm1, %v814_v34, 0 }
 0x121   : > { %624 = vmatpush.bf16.xpose.msra.mxu1 %v618_v36 }
 0x127   : > { %v812_v37 = vpop.permute.xlu1 %811  ;;  %v590_v42 = vpop.permute.xlu2 %589 }
 0x128   : > { %v612_v54 = vsel %vm595_vm1, %v590_v42, 0  ;;  %v832_v55 = vsel %vm595_vm1, %v812_v37, 0 }
 0x12f   : > { %v806_v38 = vpop.permute.xlu1 %805  ;;  %v810_v46 = vpop.permute.xlu2 %809 }
 0x137   : > { %v818_v39 = vpop.permute.xlu0 %817  ;;  %v971_v52 = vpop.permute.xlu2 %970 }
 0x138   : > { %v808_v40 = vpop.permute.xlu1 %807  ;;  %v841_v41 = vsel %vm595_vm1, %v818_v39, 0 }
 0x139   : > { %847 = vmatpush.bf16.xpose.msra.mxu3 %v841_v41 }
 0x13f   : > { %v816_v43 = vpop.permute.xlu0 %815 }
 0x140   : > { %v967_v44 = vpop.permute.xlu1 %966  ;;  %v838_v45 = vsel %vm595_vm1, %v816_v43, 0 }
 0x141   : > { %848 = vmatpush.bf16.xpose.msra.mxu3 %v838_v45 }
 0x147   : > { %v592_v47 = vpop.permute.xlu0 %591 }
 0x148   : > { %v973_v48 = vpop.permute.xlu1 %972  ;;  %v615_v49 = vsel %vm595_vm1, %v592_v47, 0 }
 0x149   : > { %625 = vmatpush.bf16.xpose.msra.mxu1 %v615_v49  ;;  %849 = vmatpush.bf16.xpose.msra.mxu3 %v835_v50  ;;  %v990_v51 = vsel %vm771_vm2, %v973_v48, 0 }
 0x14a   : > { %996 = vmatpush.bf16.msrb.mxu0 %v990_v51 }
 0x14e   : > { %997 = vmatpush.bf16.msrb.mxu0 %v971_v52 }
 0x14f   : > { %v588_v53 = vpop.permute.xlu0 %587 }
 0x150   : > { %v609_v57 = vsel %vm595_vm1, %v588_v53, 0 }
 0x151   : > { %626 = vmatpush.bf16.xpose.msra.mxu1 %v612_v54  ;;  %850 = vmatpush.bf16.xpose.msra.mxu3 %v832_v55 }
 0x157   : > { %v969_v56 = vpop.permute.xlu0 %968 }
 0x158   : > { %1720 = vmatmul.msk.bf16.vlgmr.msra.gmra.mxu3 %vm595_vm1, %v804_v33  ;;  %998 = vmatpush.bf16.msrb.mxu0 %v969_v56 }
 0x159   : > { %627 = vmatpush.bf16.xpose.msra.mxu1 %v609_v57 }
 0x15c   : > { %999 = vmatpush.bf16.msrb.mxu0 %v967_v44 }
 0x15f   : > { %v755_v58 = vpop.permute.xlu0 %754 }
 0x160   : > { %1712 = vmatmul.msk.bf16.vlgmr.msra.gmra.mxu1 %vm595_vm1, %v2055_v18  ;;  %v773_v59 = vsel %vm771_vm2, %v755_v58, 0 }
 0x161   : > { %779 = vmatpush.bf16.msra.mxu2 %v773_v59 }
 0x168   : > { %1721 = vmatmul.msk.bf16.gmra.mxu3 %vm595_vm1, %v806_v38 }
 0x170   : > { %1713 = vmatmul.msk.bf16.gmra.mxu1 %vm595_vm1, %v2058_v23 }
 0x178   : > { %1722 = vmatmul.msk.bf16.gmra.mxu3 %vm595_vm1, %v808_v40 }
 0x180   : > { %1714 = vmatmul.msk.bf16.gmra.mxu1 %vm595_vm1, %v2065_v31 }
 0x188   : > { %1723 = vmatmul.msk.bf16.gmra.mxu3 %vm595_vm1, %v810_v46 }
 0x190   : > { %1715 = vmatmul.msk.bf16.gmra.mxu1 %vm595_vm1, %v2063_v30 }
 0x1db   : > { %v852_v61 = vpop.f32.mrf.mxu3 }
 0x1dc   : > { %v871_v62 = vmul.f32 0.25, %v852_v61 }
 0x1dd   : > { %v629_v63 = vpop.f32.mrf.mxu1 }
 0x1de   : > { %v648_v0 = vmul.f32 0.25, %v629_v63  ;;  %v2111_v1 = vadd.f32 %v2108_v60, %v871_v62 }
 0x1e0   : > { %v885_v4 = vsel %vm665_vm3, %v2111_v1, -inf  ;;  %v2116_v7 = vadd.f32 %v2108_v60, %v648_v0 }
 0x1e1   : > { %886 = vmax.xlane.f32.xlu0 %v885_v4 }
 0x1e2   : > { %v666_v10 = vsel %vm665_vm3, %v2116_v7, -inf }
 0x1e3   : > { %667 = vmax.xlane.f32.xlu2 %v666_v10  ;;  %v854_v12 = vpop.f32.mrf.mxu3 }
 0x1e4   : > { %v872_v13 = vmul.f32 0.25, %v854_v12 }
 0x1e5   : > { %v631_v14 = vpop.f32.mrf.mxu1 }
 0x1e6   : > { %v649_v15 = vmul.f32 0.25, %v631_v14  ;;  %v2121_v16 = vadd.f32 %v2108_v60, %v872_v13 }
 0x1e8   : > { %v888_v17 = vsel %vm665_vm3, %v2121_v16, -inf  ;;  %v2126_v19 = vadd.f32 %v2108_v60, %v649_v15 }
 0x1e9   : > { %889 = vmax.xlane.f32.xlu1 %v888_v17 }
 0x1ea   : > { %v669_v20 = vsel %vm665_vm3, %v2126_v19, -inf }
 0x1eb   : > { %670 = vmax.xlane.f32.xlu0 %v669_v20  ;;  %v857_v21 = vpop.f32.mrf.mxu3 }
 0x1ec   : > { %v873_v26 = vmul.f32 0.25, %v857_v21 }
 0x1ed   : > { %v634_v22 = vpop.f32.mrf.mxu1 }
 0x1ee   : > { %v650_v24 = vmul.f32 0.25, %v634_v22  ;;  %v2136_v32 = vadd.f32 %v2108_v60, %v873_v26 }
 0x1f0   : > { %v2131_v25 = vadd.f32 %v2108_v60, %v650_v24  ;;  %v891_v36 = vsel %vm665_vm3, %v2136_v32, -inf }
 0x1f2   : > { %v672_v27 = vsel %vm665_vm3, %v2131_v25, -inf }
 0x1f3   : > { %673 = vmax.xlane.f32.xlu2 %v672_v27  ;;  %v859_v28 = vpop.f32.mrf.mxu3 }
 0x1f4   : > { %v874_v34 = vmul.f32 0.25, %v859_v28 }
 0x1f5   : > { %v636_v29 = vpop.f32.mrf.mxu1 }
 0x1f6   : > { %v651_v30 = vmul.f32 0.25, %v636_v29  ;;  %v2146_v41 = vadd.f32 %v2108_v60, %v874_v34 }
 0x1f8   : > { %v2139_v33 = vadd.f32 %v2108_v60, %v651_v30  ;;  %v894_v45 = vsel %vm665_vm3, %v2146_v41, -inf }
 0x1fa   : > { %v675_v35 = vsel %vm665_vm3, %v2139_v33, -inf }
 0x1fb   : > { %676 = vmax.xlane.f32.xlu0 %v675_v35  ;;  %892 = vmax.xlane.f32.xlu2 %v891_v36  ;;  %v862_v37 = vpop.f32.mrf.mxu3 }
 0x1fc   : > { %v875_v38 = vmul.f32 0.25, %v862_v37 }
 0x1fd   : > { %v639_v39 = vpop.f32.mrf.mxu1 }
 0x1fe   : > { %v652_v40 = vmul.f32 0.25, %v639_v39  ;;  %v2149_v42 = vadd.f32 %v2108_v60, %v875_v38 }
 0x200   : > { %v2152_v43 = vadd.f32 %v2108_v60, %v652_v40  ;;  %v897_v46 = vsel %vm665_vm3, %v2149_v42, -inf }
 0x202   : > { %v678_v44 = vsel %vm665_vm3, %v2152_v43, -inf }
 0x203   : > { %679 = vmax.xlane.f32.xlu1 %v678_v44  ;;  %895 = vmax.xlane.f32.xlu2 %v894_v45  ;;  %v864_v47 = vpop.f32.mrf.mxu3 }
 0x204   : > { %898 = vmax.xlane.f32.xlu0 %v897_v46  ;;  %v876_v48 = vmul.f32 0.25, %v864_v47 }
 0x205   : > { %v641_v49 = vpop.f32.mrf.mxu1 }
 0x206   : > { %v653_v50 = vmul.f32 0.25, %v641_v49  ;;  %v2161_v51 = vadd.f32 %v2108_v60, %v876_v48 }
 0x208   : > { %v2164_v52 = vadd.f32 %v2108_v60, %v653_v50  ;;  %v900_v54 = vsel %vm665_vm3, %v2161_v51, -inf }
 0x20a   : > { %v681_v53 = vsel %vm665_vm3, %v2164_v52, -inf }
 0x20b   : > { %901 = vmax.xlane.f32.xlu1 %v900_v54  ;;  %v867_v55 = vpop.f32.mrf.mxu3 }
 0x20c   : > { %682 = vmax.xlane.f32.xlu0 %v681_v53  ;;  %v877_v56 = vmul.f32 0.25, %v867_v55 }
 0x20d   : > { %v644_v57 = vpop.f32.mrf.mxu1 }
 0x20e   : > { %v654_v58 = vmul.f32 0.25, %v644_v57  ;;  %v2171_v59 = vadd.f32 %v2108_v60, %v877_v56 }
 0x210   : > { %v2174_v61 = vadd.f32 %v2108_v60, %v654_v58  ;;  %v903_v62 = vsel %vm684_vm4, %v2171_v59, -inf }
 0x213   : > { %904 = vmax.xlane.f32.xlu1 %v903_v62  ;;  %v869_v63 = vpop.f32.mrf.mxu3 }
 0x215   : > { %v646_v0 = vpop.f32.mrf.mxu1 }
 0x254   : > { %v887_v4 = vpop.xlane.xlu0 %886 }
 0x255   : > { %v906_v13 = vsub.f32 %v2111_v1, %v887_v4 }
 0x256   : > { %v668_v10 = vpop.xlane.xlu2 %667 }
 0x257   : > { %v688_v12 = vsub.f32 %v2116_v7, %v668_v10  ;;  %v913_v15 = vmul.f32 1.442695, %v906_v13 }
 0x259   : > { %v695_v14 = vmul.f32 1.442695, %v688_v12 }
 0x25b   : > { %1824 = vpow2.f32 %v695_v14 }
 0x25c   : > { %v890_v17 = vpop.xlane.xlu1 %889  ;;  %1826 = vpow2.f32 %v913_v15 }
 0x25d   : > { %v907_v20 = vsub.f32 %v2121_v16, %v890_v17 }
 0x25e   : > { %v671_v60 = vpop.xlane.xlu0 %670 }
 0x25f   : > { %v915_v21 = vmul.f32 1.442695, %v907_v20  ;;  %v689_v22 = vsub.f32 %v2126_v19, %v671_v60 }
 0x261   : > { %v2182_v24 = vpop.eup %1824  ;;  %1828 = vpow2.f32 %v915_v21  ;;  %v697_v26 = vmul.f32 1.442695, %v689_v22  ;;  %v685_v22 = vsel %vm684_vm4, %v2174_v61, -inf }
 0x262   : > { %v709_v7 = vsel %vm665_vm3, %v2182_v24, 0.0  ;;  %v2186_v1 = vpop.eup %1826 }
 0x263   : > { %1830 = vpow2.f32 %v697_v26  ;;  %710 = vadd.xlane.f32.xlu2 %v709_v7  ;;  %v927_v19 = vsel %vm665_vm3, %v2186_v1, 0.0 }
 0x266   : > { %v674_v27 = vpop.xlane.xlu2 %673 }
 0x267   : > { %v2188_v28 = vpop.eup %1828 }
 0x268   : > { %v930_v16 = vsel %vm665_vm3, %v2188_v28, 0.0 }
 0x269   : > { %v2192_v29 = vpop.eup %1830  ;;  %931 = vadd.xlane.f32.xlu0 %v930_v16 }
 0x26a   : > { %v712_v30 = vsel %vm665_vm3, %v2192_v29, 0.0 }
 0x26b   : > { %928 = vadd.xlane.f32.xlu2 %v927_v19  ;;  %713 = vadd.xlane.f32.xlu1 %v712_v30 }
 0x26e   : > { %v677_v34 = vpop.xlane.xlu0 %676  ;;  %v893_v35 = vpop.xlane.xlu2 %892 }
 0x26f   : > { %v908_v36 = vsub.f32 %v2136_v32, %v893_v35  ;;  %v691_v13 = vsub.f32 %v2139_v33, %v677_v34 }
 0x271   : > { %v917_v37 = vmul.f32 1.442695, %v908_v36 }
 0x273   : > { %1832 = vpow2.f32 %v917_v37 }
 0x276   : > { %v896_v38 = vpop.xlane.xlu2 %895  ;;  %v680_v39 = vpop.xlane.xlu1 %679 }
 0x277   : > { %v909_v40 = vsub.f32 %v2146_v41, %v896_v38  ;;  %v899_v44 = vpop.xlane.xlu0 %898  ;;  %v692_v58 = vsub.f32 %v2152_v43, %v680_v39 }
 0x278   : > { %v910_v45 = vsub.f32 %v2149_v42, %v899_v44 }
 0x279   : > { %v919_v46 = vmul.f32 1.442695, %v909_v40  ;;  %v2201_v47 = vpop.eup %1832  ;;  %v703_v62 = vmul.f32 1.442695, %v692_v58 }
 0x27a   : > { %v921_v48 = vmul.f32 1.442695, %v910_v45  ;;  %v933_v49 = vsel %vm665_vm3, %v2201_v47, 0.0 }
 0x27b   : > { %1834 = vpow2.f32 %v919_v46  ;;  %934 = vadd.xlane.f32.xlu2 %v933_v49 }
 0x27c   : > { %1836 = vpow2.f32 %v921_v48 }
 0x27d   : > { %750 = vrot.lane.b32.xlu0 %v2058_v23, %s1922_s18 }
 0x27e   : > { %v902_v32 = vpop.xlane.xlu1 %901 }
 0x27f   : > { %v911_v50 = vsub.f32 %v2161_v51, %v902_v32  ;;  %v690_v51 = vsub.f32 %v2131_v25, %v674_v27  ;;  %v683_v63 = vpop.xlane.xlu0 %682 }
 0x280   : > { %v693_v4 = vsub.f32 %v2164_v52, %v683_v63  ;;  %v701_v52 = vmul.f32 1.442695, %v691_v13 }
 0x281   : > { %v2208_v41 = vpop.eup %1834  ;;  %v923_v53 = vmul.f32 1.442695, %v911_v50  ;;  %v699_v57 = vmul.f32 1.442695, %v690_v51 }
 0x282   : > { %v2210_v42 = vpop.eup %1836  ;;  %v936_v54 = vsel %vm665_vm3, %v2208_v41, 0.0  ;;  %v705_v10 = vmul.f32 1.442695, %v693_v4 }
 0x283   : > { %1838 = vpow2.f32 %v923_v53  ;;  %v939_v55 = vsel %vm665_vm3, %v2210_v42, 0.0  ;;  %937 = vadd.xlane.f32.xlu1 %v936_v54 }
 0x284   : > { %940 = vadd.xlane.f32.xlu2 %v939_v55  ;;  %1840 = vpow2.f32 %v699_v57 }
 0x285   : > { %1842 = vpow2.f32 %v703_v62 }
 0x286   : > { %1844 = vpow2.f32 %v705_v10  ;;  %v905_v14 = vpop.xlane.xlu1 %904 }
 0x287   : > { %1846 = vpow2.f32 %v701_v52  ;;  %v912_v15 = vsub.f32 %v2171_v59, %v905_v14 }
 0x289   : > { %v2216_v56 = vpop.eup %1838  ;;  %v925_v17 = vmul.f32 1.442695, %v912_v15 }
 0x28a   : > { %v942_v23 = vsel %vm665_vm3, %v2216_v56, 0.0  ;;  %v2224_v0 = vpop.eup %1840 }
 0x28b   : > { %943 = vadd.xlane.f32.xlu1 %v942_v23  ;;  %v715_v25 = vsel %vm665_vm3, %v2224_v0, 0.0  ;;  %v2231_v12 = vpop.eup %1842  ;;  %1848 = vpow2.f32 %v925_v17 }
 0x28c   : > { %v2235_v43 = vpop.eup %1844 }
 0x28d   : > { %v2241_v20 = vpop.eup %1846 }
 0x28e   : > { %v718_v60 = vsel %vm665_vm3, %v2241_v20, 0.0 }
 0x291   : > { %v2245_v21 = vpop.eup %1848 }
 0x292   : > { %v945_v33 = vsel %vm684_vm4, %v2245_v21, 0.0 }
 0x29c   : > { %752 = vrot.lane.b32.xlu2 %v2065_v31, %s1922_s18  ;;  %v721_v31 = vsel %vm665_vm3, %v2231_v12, 0.0 }
 0x2a4   : > { %748 = vrot.lane.b32.xlu1 %v2055_v18, %s1922_s18  ;;  %v724_v18 = vsel %vm665_vm3, %v2235_v43, 0.0 }
 0x2a7   : > { %716 = vadd.xlane.f32.xlu0 %v715_v25 }
 0x2af   : > { %722 = vadd.xlane.f32.xlu0 %v721_v31 }
 0x2b7   : > { %725 = vadd.xlane.f32.xlu0 %v724_v18 }
 0x2c5   : > { %719 = vadd.xlane.f32.xlu2 %v718_v60 }
 0x2cd   : > { %946 = vadd.xlane.f32.xlu2 %v945_v33 }
 0x2ce   : > { %686 = vmax.xlane.f32.xlu1 %v685_v22 }
 0x2d6   : > { %v711_v26 = vpop.xlane.xlu2 %710 }
 0x2dc   : > { %v932_v59 = vpop.xlane.xlu0 %931 }
 0x2dd   : > { %1850 = vrcp.f32 %v932_v59 }
 0x2de   : > { %v929_v7 = vpop.xlane.xlu2 %928  ;;  %v714_v35 = vpop.xlane.xlu1 %713 }
 0x2df   : > { %1852 = vrcp.f32 %v929_v7 }
 0x2e3   : > { %v1851_v27 = vpop.eup %1850 }
 0x2e4   : > { %v956_v19 = vmul.f32 %v1851_v27, %v2188_v28 }
 0x2e5   : > { %v1853_v16 = vpop.eup %1852 }
 0x2e6   : > { %v955_v30 = vmul.f32 %v1853_v16, %v2186_v1 }
 0x2e8   : > { %v962_v34 = vpack.c.bf16 %v956_v19, %v955_v30 }
 0x2ea   : > { %1724 = vmatmul.msk.bf16.vlgmr.msrb.gmra.mxu0 %vm665_vm3, %v962_v34 }
 0x2ee   : > { %v935_v36 = vpop.xlane.xlu2 %934 }
 0x2ef   : > { %1854 = vrcp.f32 %v935_v36  ;;  %v751_v1 = vpop.permute.xlu0 %750 }
 0x2f5   : > { %v1855_v39 = vpop.eup %1854 }
 0x2f6   : > { %v938_v37 = vpop.xlane.xlu1 %937  ;;  %v957_v44 = vmul.f32 %v1855_v39, %v2201_v47 }
 0x2f7   : > { %v941_v38 = vpop.xlane.xlu2 %940  ;;  %1856 = vrcp.f32 %v938_v37 }
 0x2fd   : > { %v1857_v40 = vpop.eup %1856 }
 0x2fe   : > { %v958_v45 = vmul.f32 %v1857_v40, %v2208_v41  ;;  %v944_v48 = vpop.xlane.xlu1 %943 }
 0x2ff   : > { %v753_v46 = vpop.permute.xlu2 %752  ;;  %1858 = vrcp.f32 %v944_v48 }
 0x300   : > { %780 = vmatpush.bf16.msra.mxu2 %v753_v46  ;;  %v963_v28 = vpack.c.bf16 %v958_v45, %v957_v44  ;;  %1860 = vrcp.f32 %v941_v38 }
 0x301   : > { %1862 = vrcp.f32 %v714_v35  ;;  %v1776_v35 = vld [vmem:[%s2566_s4] sm:$0xff] }
 0x302   : > { %1725 = vmatmul.msk.bf16.gmra.mxu0 %vm665_vm3, %v963_v28  ;;  %1864 = vrcp.f32 %v711_v26 }
 0x304   : > { %781 = vmatpush.bf16.msra.mxu2 %v751_v1 }
 0x305   : > { %v1859_v49 = vpop.eup %1858 }
 0x306   : > { %v1861_v32 = vpop.eup %1860  ;;  %v960_v50 = vmul.f32 %v1859_v49, %v2216_v56 }
 0x307   : > { %v959_v47 = vmul.f32 %v1861_v32, %v2210_v42  ;;  %v1863_v41 = vpop.eup %1862 }
 0x308   : > { %v1865_v54 = vpop.eup %1864  ;;  %v738_v55 = vmul.f32 %v1863_v41, %v2192_v29 }
 0x309   : > { %v964_v53 = vpack.c.bf16 %v960_v50, %v959_v47  ;;  %v737_v51 = vmul.f32 %v1865_v54, %v2182_v24 }
 0x30b   : > { %v744_v57 = vpack.c.bf16 %v738_v55, %v737_v51 }
 0x312   : > { %1726 = vmatmul.msk.bf16.gmra.mxu0 %vm665_vm3, %v964_v53 }
 0x316   : > { %v749_v23 = vpop.permute.xlu1 %748 }
 0x317   : > { %782 = vmatpush.bf16.msra.mxu2 %v749_v23 }
 0x31a   : > { %1716 = vmatmul.msk.bf16.vlgmr.msra.gmra.mxu2 %vm665_vm3, %v744_v57  ;;  %v717_v58 = vpop.xlane.xlu0 %716 }
 0x31b   : > { %1866 = vrcp.f32 %v717_v58 }
 0x321   : > { %v1867_v42 = vpop.eup %1866 }
 0x322   : > { %v723_v56 = vpop.xlane.xlu0 %722  ;;  %v739_v25 = vmul.f32 %v1867_v42, %v2224_v0 }
 0x32a   : > { %v726_v31 = vpop.xlane.xlu0 %725 }
 0x338   : > { %v720_v62 = vpop.xlane.xlu2 %719 }
 0x339   : > { %1868 = vrcp.f32 %v720_v62 }
 0x33f   : > { %v1869_v63 = vpop.eup %1868 }
 0x340   : > { %v947_v4 = vpop.xlane.xlu2 %946  ;;  %v740_v10 = vmul.f32 %v1869_v63, %v2241_v20 }
 0x341   : > { %1870 = vrcp.f32 %v947_v4  ;;  %v687_v29 = vpop.xlane.xlu1 %686 }
 0x342   : > { %v694_v24 = vsub.f32 %v2174_v61, %v687_v29  ;;  %v745_v13 = vpack.c.bf16 %v740_v10, %v739_v25  ;;  %1872 = vrcp.f32 %v726_v31 }
 0x344   : > { %v707_v18 = vmul.f32 1.442695, %v694_v24  ;;  %1717 = vmatmul.msk.bf16.gmra.mxu2 %vm665_vm3, %v745_v13 }
 0x346   : > { %1874 = vpow2.f32 %v707_v18  ;;  %v1817_v18 = vld [vmem:[%s2567_s5] ss:$0 sm:$0xff] }
 0x347   : > { %v1871_v52 = vpop.eup %1870  ;;  %1876 = vrcp.f32 %v723_v56 }
 0x348   : > { %v961_v14 = vmul.f32 %v1871_v52, %v2245_v21  ;;  %v1873_v17 = vpop.eup %1872 }
 0x349   : > { %v742_v61 = vmul.f32 %v1873_v17, %v2235_v43 }
 0x34a   : > { %v965_v15 = vpack.c.bf16 %v961_v14, %v961_v14 }
 0x34c   : > { %v1875_v0 = vpop.eup %1874  ;;  %1727 = vmatmul.msk.bf16.gmra.mxu0 %vm665_vm3, %v965_v15 }
 0x34d   : > { %v1877_v20 = vpop.eup %1876  ;;  %v727_v60 = vsel %vm684_vm4, %v1875_v0, 0.0 }
 0x34e   : > { %728 = vadd.xlane.f32.xlu0 %v727_v60  ;;  %v741_v33 = vmul.f32 %v1877_v20, %v2231_v12  ;;  %v1777_v12 = vld [vmem:[%s2566_s4 + $0x8] sm:$0xff] }
 0x34f   : > { %1092 = vmatpush.bf16.msrb.mxu2 %v1777_v12 }
 0x350   : > { %v746_v22 = vpack.c.bf16 %v742_v61, %v741_v33 }
 0x353   : > { %1093 = vmatpush.bf16.msrb.mxu2 %v1776_v35  ;;  %v1924_v35 = vmov 32.0  }
 0x354   : > { %1718 = vmatmul.msk.bf16.gmra.mxu2 %vm665_vm3, %v746_v22 }
 0x367   : > { %v1001_v26 = vpop.f32.mrf.mxu0 }
 0x36f   : > { %v1003_v59 = vpop.f32.mrf.mxu0 }
 0x370   : > { %v1800_v7 = vpack.i.bf16 %v1003_v59, %v1001_v26 }
 0x372   : > { %1801 = vrot.lane.b32.xlu1 %v1800_v7, %s1923_s22 }
 0x37f   : > { %v1006_v21 = vpop.f32.mrf.mxu0 }
 0x387   : > { %v1008_v27 = vpop.f32.mrf.mxu0 }
 0x388   : > { %v1805_v16 = vpack.i.bf16 %v1008_v27, %v1006_v21 }
 0x38a   : > { %1806 = vrot.lane.b32.xlu2 %v1805_v16, %s1923_s22 }
 0x38f   : > { %v1011_v19 = vpop.f32.mrf.mxu0 }
 0x397   : > { %v1013_v30 = vpop.f32.mrf.mxu0 }
 0x398   : > { %v1810_v34 = vpack.i.bf16 %v1013_v30, %v1011_v19 }
 0x39a   : > { %1811 = vrot.lane.b32.xlu0 %v1810_v34, %s1923_s22 }
 0x39d   : > { %v784_v44 = vpop.f32.mrf.mxu2 }
 0x3a5   : > { %v786_v45 = vpop.f32.mrf.mxu2 }
 0x3c1   : > { %v729_v43 = vpop.xlane.xlu0 %728 }
 0x3c2   : > { %1878 = vrcp.f32 %v729_v43 }
 0x3c3   : > { %1880 = vrcp.f32 %v1924_v35 }
 0x3c7   : > { %v789_v50 = vpop.f32.mrf.mxu2 }
 0x3c8   : > { %v1879_v36 = vpop.eup %1878 }
 0x3c9   : > { %v1016_v37 = vpop.f32.mrf.mxu0  ;;  %v743_v38 = vmul.f32 %v1879_v36, %v1875_v0 }
 0x3ca   : > { %1039 = vrot.lane.b32.xlu1 %v1016_v37, %s1923_s22 }
 0x3cb   : > { %v747_v39 = vpack.c.bf16 %v743_v38, %v743_v38 }
 0x3cd   : > { %1719 = vmatmul.msk.bf16.gmra.mxu2 %vm665_vm3, %v747_v39 }
 0x3cf   : > { %v791_v54 = vpop.f32.mrf.mxu2 }
 0x3d1   : > { %v1018_v40 = vpop.f32.mrf.mxu0 }
 0x3d7   : > { %v794_v57 = vpop.f32.mrf.mxu2 }
 0x3df   : > { %v796_v42 = vpop.f32.mrf.mxu2 }
 0x3e4   : > { %v1802_v46 = vpop.permute.xlu1 %1801  ;;  %v1807_v47 = vpop.permute.xlu2 %1806 }
 0x3e5   : > { %v1804_v48 = vunpack.i.h.bf16 %v1802_v46  ;;  %v1803_v28 = vunpack.i.l.bf16 %v1802_v46  ;;  %v1809_v53 = vunpack.i.h.bf16 %v1807_v47  ;;  %v1808_v41 = vunpack.i.l.bf16 %v1807_v47 }
 0x3e7   : > { %v1049_v1 = vsel %vm595_vm1, %v786_v45, %v1804_v48  ;;  %v1048_v49 = vsel %vm595_vm1, %v784_v44, %v1803_v28  ;;  %v1050_v55 = vsel %vm595_vm1, %v789_v50, %v1808_v41  ;;  %v1051_v23 = vsel %vm595_vm1, %v791_v54, %v1809_v53 }
 0x3e8   : > { %v1055_v32 = vpack.c.bf16 %v1049_v1, %v1048_v49  ;;  %v1056_v51 = vpack.c.bf16 %v1051_v23, %v1050_v55 }
 0x3ea   : > { %1736 = vmatmul.msk.bf16.vlgmr.msrb.gmra.mxu2 %vm538_vm0, %v1055_v32 }
 0x3fa   : > { %1737 = vmatmul.msk.bf16.gmra.mxu2 %vm538_vm0, %v1056_v51 }
 0x40c   : > { %v1812_v58 = vpop.permute.xlu0 %1811 }
 0x40d   : > { %v1814_v56 = vunpack.i.h.bf16 %v1812_v58  ;;  %v1813_v62 = vunpack.i.l.bf16 %v1812_v58 }
 0x40f   : > { %v1052_v63 = vsel %vm595_vm1, %v794_v57, %v1813_v62  ;;  %v1053_v4 = vsel %vm595_vm1, %v796_v42, %v1814_v56 }
 0x410   : > { %v1057_v25 = vpack.c.bf16 %v1053_v4, %v1052_v63 }
 0x412   : > { %1738 = vmatmul.msk.bf16.gmra.mxu2 %vm538_vm0, %v1057_v25 }
 0x43c   : > { %v1040_v10 = vpop.permute.xlu1 %1039 }
 0x450   : > { %v799_v29 = vpop.f32.mrf.mxu2 }
 0x451   : > { %v1054_v31 = vsel %vm595_vm1, %v799_v29, %v1040_v10 }
 0x452   : > { %v1058_v24 = vpack.c.bf16 %v1054_v31, %v1054_v31 }
 0x454   : > { %1739 = vmatmul.msk.bf16.gmra.mxu2 %vm538_vm0, %v1058_v24 }
 0x458   : > { %v801_v13 = vpop.f32.mrf.mxu2 }
 0x46d   : > { %v1095_v52 = vpop.f32.mrf.mxu2 }
 0x46e   : > { %v1096_v14 = vadd.f32 %v1817_v18, %v1095_v52 }
 0x470   : > { %v1114_v15 = vadd.f32 %v1096_v14, %v2026_v2 }
 0x472   : > { %v1121_v17 = vsel %vm538_vm0, %v1114_v15, 0.0 }
 0x473   : > { %1122 = vadd.xlane.f32.xlu0 %v1121_v17 }
 0x475   : > { %v1097_v0 = vpop.f32.mrf.mxu2 }
 0x476   : > { %v1098_v20 = vadd.f32 %v1817_v18, %v1097_v0 }
 0x478   : > { %v1115_v60 = vadd.f32 %v1098_v20, %v2028_v3 }
 0x47a   : > { %v1124_v61 = vsel %vm538_vm0, %v1115_v60, 0.0 }
 0x47b   : > { %1125 = vadd.xlane.f32.xlu2 %v1124_v61 }
 0x47d   : > { %v1100_v33 = vpop.f32.mrf.mxu2 }
 0x47e   : > { %v1101_v22 = vadd.f32 %v1817_v18, %v1100_v33  ;;  %v1779_v33 = vld [vmem:[%s2570_s8 + $0x8] sm:$0xff] }
 0x47f   : > { %1340 = vmatpush.bf16.msrb.mxu1 %v1779_v33 }
 0x480   : > { %v1116_v26 = vadd.f32 %v1101_v22, %v2033_v5 }
 0x482   : > { %v1127_v59 = vsel %vm538_vm0, %v1116_v26, 0.0 }
 0x483   : > { %1128 = vadd.xlane.f32.xlu1 %v1127_v59  ;;  %v1778_v59 = vld [vmem:[%s2570_s8] sm:$0xff] }
 0x484   : > { %1341 = vmatpush.bf16.msrb.mxu1 %v1778_v59 }
 0x485   : > { %v1102_v7 = vpop.f32.mrf.mxu2 }
 0x486   : > { %v1103_v21 = vadd.f32 %v1817_v18, %v1102_v7 }
 0x488   : > { %v1117_v2 = vadd.f32 %v1103_v21, %v2035_v6  ;;  %v1881_v6 = vpop.eup %1880 }
 0x489   : > { %v1144_v36 = vmul.f32 32.0, %v1881_v6  ;;  %vm1148_vm6 = vweird.f32 %v1881_v6 }
 0x48a   : > { %v1130_v27 = vsel %vm538_vm0, %v1117_v2, 0.0 }
 0x48b   : > { %1131 = vadd.xlane.f32.xlu0 %v1130_v27  ;;  %v1145_v39 = vsub.f32 1.0, %v1144_v36 }
 0x48d   : > { %v1146_v44 = vmul.f32 %v1881_v6, %v1145_v39 }
 0x48f   : > { %v1147_v46 = vadd.f32 %v1881_v6, %v1146_v44 }
 0x495   : > { %v1105_v16 = vpop.f32.mrf.mxu2 }
 0x496   : > { %v1106_v19 = vadd.f32 %v1817_v18, %v1105_v16 }
 0x498   : > { %v1118_v3 = vadd.f32 %v1106_v19, %v2040_v8 }
 0x49a   : > { %v1133_v30 = vsel %vm538_vm0, %v1118_v3, 0.0 }
 0x49b   : > { %1134 = vadd.xlane.f32.xlu2 %v1133_v30 }
 0x49d   : > { %v1107_v34 = vpop.f32.mrf.mxu2 }
 0x49e   : > { %v1108_v12 = vadd.f32 %v1817_v18, %v1107_v34 }
 0x4a0   : > { %v1119_v5 = vadd.f32 %v1108_v12, %v2042_v9  ;;  %v2308_v9 = vsel %vm1148_vm6, %v1881_v6, %v1147_v46 }
 0x4a2   : > { %v1136_v43 = vsel %vm538_vm0, %v1119_v5, 0.0 }
 0x4a3   : > { %1137 = vadd.xlane.f32.xlu1 %v1136_v43 }
 0x4d7   : > { %v1110_v37 = vpop.f32.mrf.mxu2 }
 0x4d8   : > { %v1111_v38 = vadd.f32 %v1817_v18, %v1110_v37 }
 0x4da   : > { %v1120_v8 = vadd.f32 %v1111_v38, %v2047_v11 }
 0x4dc   : > { %v1140_v40 = vsel %vm1139_vm5, %v1120_v8, 0.0 }
 0x4dd   : > { %1141 = vadd.xlane.f32.xlu1 %v1140_v40 }
 0x4df   : > { %v1112_v45 = vpop.f32.mrf.mxu2 }
 0x4e6   : > { %v1123_v48 = vpop.xlane.xlu0 %1122 }
 0x4e7   : > { %v1150_v28 = vmul.f32 %v2308_v9, %v1123_v48  ;;  %v2366_v48 = vld [vmem:[%s2568_s6] ss:$0 sm:$0xff] }
 0x4e9   : > { %v2311_v1 = vsub.f32 %v1114_v15, %v1150_v28 }
 0x4eb   : > { %v1164_v49 = vmul.f32 %v2311_v1, %v2311_v1 }
 0x4ed   : > { %v1171_v32 = vsel %vm538_vm0, %v1164_v49, 0.0 }
 0x4ee   : > { %v1126_v11 = vpop.xlane.xlu2 %1125  ;;  %1172 = vadd.xlane.f32.xlu0 %v1171_v32 }
 0x4ef   : > { %v1151_v50 = vmul.f32 %v2308_v9, %v1126_v11 }
 0x4f1   : > { %v2317_v47 = vsub.f32 %v1115_v60, %v1151_v50 }
 0x4f3   : > { %v1165_v53 = vmul.f32 %v2317_v47, %v2317_v47 }
 0x4f5   : > { %v1174_v41 = vsel %vm538_vm0, %v1165_v53, 0.0 }
 0x4f6   : > { %v1129_v54 = vpop.xlane.xlu1 %1128  ;;  %1175 = vadd.xlane.f32.xlu2 %v1174_v41 }
 0x4f7   : > { %v1152_v55 = vmul.f32 %v2308_v9, %v1129_v54 }
 0x4f9   : > { %v2323_v23 = vsub.f32 %v1116_v26, %v1152_v55 }
 0x4fb   : > { %v1166_v51 = vmul.f32 %v2323_v23, %v2323_v23 }
 0x4fd   : > { %v1177_v57 = vsel %vm538_vm0, %v1166_v51, 0.0 }
 0x4fe   : > { %1178 = vadd.xlane.f32.xlu0 %v1177_v57  ;;  %v1132_v58 = vpop.xlane.xlu0 %1131 }
 0x4ff   : > { %v1153_v56 = vmul.f32 %v2308_v9, %v1132_v58 }
 0x501   : > { %v2329_v62 = vsub.f32 %v1117_v2, %v1153_v56 }
 0x503   : > { %v1167_v42 = vmul.f32 %v2329_v62, %v2329_v62 }
 0x505   : > { %v1180_v63 = vsel %vm538_vm0, %v1167_v42, 0.0 }
 0x506   : > { %1181 = vadd.xlane.f32.xlu2 %v1180_v63 }
 0x50e   : > { %v1135_v4 = vpop.xlane.xlu2 %1134 }
 0x50f   : > { %v1154_v25 = vmul.f32 %v2308_v9, %v1135_v4 }
 0x511   : > { %v2335_v10 = vsub.f32 %v1118_v3, %v1154_v25 }
 0x513   : > { %v1168_v29 = vmul.f32 %v2335_v10, %v2335_v10 }
 0x515   : > { %v1183_v31 = vsel %vm538_vm0, %v1168_v29, 0.0 }
 0x516   : > { %v1138_v24 = vpop.xlane.xlu1 %1137  ;;  %1184 = vadd.xlane.f32.xlu1 %v1183_v31 }
 0x517   : > { %v1155_v13 = vmul.f32 %v2308_v9, %v1138_v24 }
 0x519   : > { %v2341_v18 = vsub.f32 %v1119_v5, %v1155_v13 }
 0x51b   : > { %v1169_v52 = vmul.f32 %v2341_v18, %v2341_v18 }
 0x51d   : > { %v1186_v14 = vsel %vm538_vm0, %v1169_v52, 0.0 }
 0x51e   : > { %1187 = vadd.xlane.f32.xlu0 %v1186_v14 }
 0x550   : > { %v1142_v15 = vpop.xlane.xlu1 %1141 }
 0x551   : > { %v1156_v17 = vmul.f32 %v2308_v9, %v1142_v15 }
 0x553   : > { %v2347_v0 = vsub.f32 %v1120_v8, %v1156_v17 }
 0x555   : > { %v1170_v20 = vmul.f32 %v2347_v0, %v2347_v0 }
 0x557   : > { %v1189_v60 = vsel %vm1139_vm5, %v1170_v20, 0.0 }
 0x558   : > { %1190 = vadd.xlane.f32.xlu2 %v1189_v60 }
 0x561   : > { %v1173_v61 = vpop.xlane.xlu0 %1172 }
 0x562   : > { %v1192_v22 = vmul.f32 %v1173_v61, %v2308_v9 }
 0x564   : > { %v1199_v26 = vadd.f32 1e-05, %v1192_v22 }
 0x566   : > { %1882 = vrsqrt.f32 %v1199_v26  ;;  %vm1212_vm8 = vweird.f32 %v1199_v26 }
 0x569   : > { %v1176_v7 = vpop.xlane.xlu2 %1175 }
 0x56a   : > { %v1193_v21 = vmul.f32 %v1176_v7, %v2308_v9 }
 0x56c   : > { %v1883_v2 = vpop.eup %1882  ;;  %v1200_v27 = vadd.f32 1e-05, %v1193_v21 }
 0x56d   : > { %v1207_v16 = vmul.f32 %v1883_v2, %v1199_v26  ;;  %vm1213_vm7 = vweird.f32 %v1883_v2 }
 0x56e   : > { %1884 = vrsqrt.f32 %v1200_v27  ;;  %vm1214_vm9 = vmor %vm1212_vm8, %vm1213_vm7  ;;  %vm1222_vm11 = vweird.f32 %v1200_v27 }
 0x56f   : > { %v1208_v19 = vmul.f32 %v1883_v2, %v1207_v16 }
 0x571   : > { %v1209_v3 = vmul.f32 0.5, %v1208_v19  ;;  %v1179_v30 = vpop.xlane.xlu0 %1178 }
 0x572   : > { %v1194_v34 = vmul.f32 %v1179_v30, %v2308_v9 }
 0x573   : > { %v1210_v12 = vsub.f32 1.5, %v1209_v3 }
 0x574   : > { %v1885_v5 = vpop.eup %1884  ;;  %v1201_v43 = vadd.f32 1e-05, %v1194_v34 }
 0x575   : > { %v1211_v35 = vmul.f32 %v1883_v2, %v1210_v12  ;;  %v1217_v6 = vmul.f32 %v1885_v5, %v1200_v27  ;;  %vm1223_vm10 = vweird.f32 %v1885_v5 }
 0x576   : > { %1886 = vrsqrt.f32 %v1201_v43  ;;  %vm1224_vm12 = vmor %vm1222_vm11, %vm1223_vm10  ;;  %vm1232_vm14 = vweird.f32 %v1201_v43 }
 0x577   : > { %v1218_v36 = vmul.f32 %v1885_v5, %v1217_v6  ;;  %v1215_v37 = vsel %vm1214_vm9, %v1883_v2, %v1211_v35 }
 0x578   : > { %v1276_v45 = vmul.f32 %v1215_v37, %v2311_v1  ;;  %v2373_v1 = vld [vmem:[%s2569_s7] ss:$0 sm:$0xff] }
 0x579   : > { %v1219_v38 = vmul.f32 0.5, %v1218_v36  ;;  %v1182_v39 = vpop.xlane.xlu2 %1181 }
 0x57a   : > { %v1195_v8 = vmul.f32 %v1182_v39, %v2308_v9  ;;  %v1286_v53 = vmul.f32 %v2366_v48, %v1276_v45 }
 0x57b   : > { %v1220_v40 = vsub.f32 1.5, %v1219_v38 }
 0x57c   : > { %v1887_v44 = vpop.eup %1886  ;;  %v1202_v46 = vadd.f32 1e-05, %v1195_v8  ;;  %v2377_v57 = vadd.f32 %v2373_v1, %v1286_v53 }
 0x57d   : > { %v1221_v28 = vmul.f32 %v1885_v5, %v1220_v40  ;;  %v1227_v49 = vmul.f32 %v1887_v44, %v1201_v43  ;;  %vm1233_vm13 = vweird.f32 %v1887_v44 }
 0x57e   : > { %1888 = vrsqrt.f32 %v1202_v46  ;;  %vm1234_vm15 = vmor %vm1232_vm14, %vm1233_vm13  ;;  %vm1242_vm2 = vweird.f32 %v1202_v46  ;;  %vm1400_vm14 = vcmask 523264  }
 0x57f   : > { %v1225_v32 = vsel %vm1224_vm12, %v1885_v5, %v1221_v28  ;;  %v1228_v11 = vmul.f32 %v1887_v44, %v1227_v49 }
 0x580   : > { %v1277_v50 = vmul.f32 %v1225_v32, %v2317_v47 }
 0x581   : > { %v1229_v41 = vmul.f32 0.5, %v1228_v11 }
 0x582   : > { %v1287_v54 = vmul.f32 %v2366_v48, %v1277_v50 }
 0x583   : > { %v1230_v55 = vsub.f32 1.5, %v1229_v41 }
 0x584   : > { %v1889_v51 = vpop.eup %1888  ;;  %v2380_v58 = vadd.f32 %v2373_v1, %v1287_v54 }
 0x585   : > { %v1231_v56 = vmul.f32 %v1887_v44, %v1230_v55  ;;  %v1237_v47 = vmul.f32 %v1889_v51, %v1202_v46  ;;  %vm1243_vm1 = vweird.f32 %v1889_v51 }
 0x586   : > { %v1303_v42 = vpack.c.bf16 %v2380_v58, %v2377_v57  ;;  %vm1244_vm3 = vmor %vm1242_vm2, %vm1243_vm1 }
 0x587   : > { %v1238_v63 = vmul.f32 %v1889_v51, %v1237_v47  ;;  %v1235_v4 = vsel %vm1234_vm15, %v1887_v44, %v1231_v56  ;;  %v1782_v56 = vld [vmem:[%s2572_s10 + $0x10] sm:$0xff]  ;;  %v1781_v47 = vld [vmem:[%s2572_s10 + $0x8] sm:$0xff] }
 0x588   : > { %1748 = vmatmul.msk.bf16.vlgmr.msrb.gmra.mxu1 %vm538_vm0, %v1303_v42  ;;  %v1278_v13 = vmul.f32 %v1235_v4, %v2323_v23 }
 0x589   : > { %v1239_v25 = vmul.f32 0.5, %v1238_v63  ;;  %v1185_v29 = vpop.xlane.xlu1 %1184 }
 0x58a   : > { %v1196_v31 = vmul.f32 %v1185_v29, %v2308_v9  ;;  %v1288_v20 = vmul.f32 %v2366_v48, %v1278_v13 }
 0x58b   : > { %v1240_v24 = vsub.f32 1.5, %v1239_v25 }
 0x58c   : > { %v1203_v52 = vadd.f32 1e-05, %v1196_v31  ;;  %v2392_v59 = vadd.f32 %v2373_v1, %v1288_v20 }
 0x58d   : > { %v1241_v14 = vmul.f32 %v1889_v51, %v1240_v24 }
 0x58e   : > { %1890 = vrsqrt.f32 %v1203_v52  ;;  %vm1252_vm6 = vweird.f32 %v1203_v52 }
 0x58f   : > { %v1245_v15 = vsel %vm1244_vm3, %v1889_v51, %v1241_v14 }
 0x590   : > { %v1279_v17 = vmul.f32 %v1245_v15, %v2329_v62 }
 0x591   : > { %v1188_v60 = vpop.xlane.xlu0 %1187 }
 0x592   : > { %v1197_v61 = vmul.f32 %v1188_v60, %v2308_v9  ;;  %v1289_v33 = vmul.f32 %v2366_v48, %v1279_v17 }
 0x594   : > { %v1891_v22 = vpop.eup %1890  ;;  %v1204_v26 = vadd.f32 1e-05, %v1197_v61  ;;  %v2395_v23 = vadd.f32 %v2373_v1, %v1289_v33 }
 0x595   : > { %v1247_v7 = vmul.f32 %v1891_v22, %v1203_v52  ;;  %vm1253_vm4 = vweird.f32 %v1891_v22 }
 0x596   : > { %1892 = vrsqrt.f32 %v1204_v26  ;;  %v1304_v62 = vpack.c.bf16 %v2395_v23, %v2392_v59  ;;  %vm1254_vm7 = vmor %vm1252_vm6, %vm1253_vm4  ;;  %vm1262_vm9 = vweird.f32 %v1204_v26 }
 0x597   : > { %v1248_v21 = vmul.f32 %v1891_v22, %v1247_v7 }
 0x598   : > { %1749 = vmatmul.msk.bf16.gmra.mxu1 %vm538_vm0, %v1304_v62 }
 0x599   : > { %v1249_v2 = vmul.f32 0.5, %v1248_v21 }
 0x59b   : > { %v1250_v27 = vsub.f32 1.5, %v1249_v2 }
 0x59c   : > { %v1893_v16 = vpop.eup %1892 }
 0x59d   : > { %v1251_v19 = vmul.f32 %v1891_v22, %v1250_v27  ;;  %v1257_v3 = vmul.f32 %v1893_v16, %v1204_v26  ;;  %vm1263_vm8 = vweird.f32 %v1893_v16 }
 0x59e   : > { %vm1264_vm10 = vmor %vm1262_vm9, %vm1263_vm8 }
 0x59f   : > { %v1258_v30 = vmul.f32 %v1893_v16, %v1257_v3  ;;  %v1255_v34 = vsel %vm1254_vm7, %v1891_v22, %v1251_v19  ;;  %v1821_v3 = vld [vmem:[%s2573_s11] ss:$0 sm:$0xff] }
 0x5a0   : > { %v1280_v43 = vmul.f32 %v1255_v34, %v2335_v10  ;;  %v1783_v10 = vld [vmem:[%s2572_s10 + $0x18] sm:$0xff] }
 0x5a1   : > { %v1259_v12 = vmul.f32 0.5, %v1258_v30  ;;  %1417 = vmatpush.bf16.msrb.mxu3 %v1783_v10 }
 0x5a2   : > { %v1290_v37 = vmul.f32 %v2366_v48, %v1280_v43 }
 0x5a3   : > { %v1260_v5 = vsub.f32 1.5, %v1259_v12 }
 0x5a4   : > { %v2405_v39 = vadd.f32 %v2373_v1, %v1290_v37 }
 0x5a5   : > { %v1261_v35 = vmul.f32 %v1893_v16, %v1260_v5  ;;  %1418 = vmatpush.bf16.msrb.mxu3 %v1782_v56 }
 0x5a7   : > { %v1265_v6 = vsel %vm1264_vm10, %v1893_v16, %v1261_v35 }
 0x5a8   : > { %v1281_v36 = vmul.f32 %v1265_v6, %v2341_v18 }
 0x5a9   : > { %1419 = vmatpush.bf16.msrb.mxu3 %v1781_v47 }
 0x5aa   : > { %v1291_v38 = vmul.f32 %v2366_v48, %v1281_v36 }
 0x5ac   : > { %v2408_v8 = vadd.f32 %v2373_v1, %v1291_v38 }
 0x5ae   : > { %v1305_v40 = vpack.c.bf16 %v2408_v8, %v2405_v39 }
 0x5b0   : > { %1750 = vmatmul.msk.bf16.gmra.mxu1 %vm538_vm0, %v1305_v40 }
 0x5cb   : > { %v1191_v18 = vpop.xlane.xlu2 %1190 }
 0x5cc   : > { %v1198_v44 = vmul.f32 %v1191_v18, %v2308_v9 }
 0x5ce   : > { %v1205_v45 = vadd.f32 1e-05, %v1198_v44 }
 0x5d0   : > { %1894 = vrsqrt.f32 %v1205_v45  ;;  %vm1272_vm12 = vweird.f32 %v1205_v45 }
 0x5d6   : > { %v1895_v46 = vpop.eup %1894 }
 0x5d7   : > { %v1267_v28 = vmul.f32 %v1895_v46, %v1205_v45  ;;  %vm1273_vm11 = vweird.f32 %v1895_v46 }
 0x5d8   : > { %vm1274_vm13 = vmor %vm1272_vm12, %vm1273_vm11 }
 0x5d9   : > { %v1268_v49 = vmul.f32 %v1895_v46, %v1267_v28 }
 0x5db   : > { %v1269_v32 = vmul.f32 0.5, %v1268_v49 }
 0x5dd   : > { %v1270_v11 = vsub.f32 1.5, %v1269_v32 }
 0x5df   : > { %v1271_v50 = vmul.f32 %v1895_v46, %v1270_v11 }
 0x5e1   : > { %v1275_v53 = vsel %vm1274_vm13, %v1895_v46, %v1271_v50 }
 0x5e2   : > { %v1282_v41 = vmul.f32 %v1275_v53, %v2347_v0  ;;  %v1780_v0 = vld [vmem:[%s2572_s10] sm:$0xff] }
 0x5e3   : > { %1420 = vmatpush.bf16.msrb.mxu3 %v1780_v0 }
 0x5e4   : > { %v1292_v54 = vmul.f32 %v2366_v48, %v1282_v41 }
 0x5e6   : > { %v2420_v55 = vadd.f32 %v2373_v1, %v1292_v54  ;;  %v1820_v1 = vld [vmem:[%s2571_s9] ss:$0 sm:$0xff] }
 0x5e8   : > { %v1306_v51 = vpack.c.bf16 %v2420_v55, %v2420_v55 }
 0x5ea   : > { %1751 = vmatmul.msk.bf16.gmra.mxu1 %vm538_vm0, %v1306_v51 }
 0x605   : > { %v1343_v48 = vpop.f32.mrf.mxu1 }
 0x606   : > { %v1344_v42 = vadd.f32 %v1820_v1, %v1343_v48 }
 0x608   : > { %v1362_v25 = vmax.f32 %v1344_v42, 0.0 }
 0x60d   : > { %v1345_v63 = vpop.f32.mrf.mxu1 }
 0x60e   : > { %v1346_v4 = vadd.f32 %v1820_v1, %v1345_v63 }
 0x610   : > { %v1363_v29 = vmax.f32 %v1346_v4, 0.0 }
 0x612   : > { %v1369_v31 = vpack.c.bf16 %v1363_v29, %v1362_v25 }
 0x614   : > { %1768 = vmatmul.msk.bf16.vlgmr.msrb.gmra.mxu3 %vm1400_vm14, %v1369_v31 }
 0x615   : > { %v1348_v24 = vpop.f32.mrf.mxu1 }
 0x616   : > { %v1349_v13 = vadd.f32 %v1820_v1, %v1348_v24 }
 0x618   : > { %v1364_v15 = vmax.f32 %v1349_v13, 0.0 }
 0x61d   : > { %v1350_v52 = vpop.f32.mrf.mxu1 }
 0x61e   : > { %v1351_v14 = vadd.f32 %v1820_v1, %v1350_v52 }
 0x620   : > { %v1365_v17 = vmax.f32 %v1351_v14, 0.0 }
 0x622   : > { %v1370_v20 = vpack.c.bf16 %v1365_v17, %v1364_v15 }
 0x624   : > { %1769 = vmatmul.msk.bf16.gmra.mxu3 %vm1400_vm14, %v1370_v20 }
 0x62d   : > { %v1353_v60 = vpop.f32.mrf.mxu1 }
 0x62e   : > { %v1354_v61 = vadd.f32 %v1820_v1, %v1353_v60 }
 0x630   : > { %v1366_v26 = vmax.f32 %v1354_v61, 0.0 }
 0x635   : > { %v1355_v33 = vpop.f32.mrf.mxu1 }
 0x636   : > { %v1356_v22 = vadd.f32 %v1820_v1, %v1355_v33 }
 0x638   : > { %v1367_v7 = vmax.f32 %v1356_v22, 0.0 }
 0x63a   : > { %v1371_v62 = vpack.c.bf16 %v1367_v7, %v1366_v26 }
 0x63c   : > { %1770 = vmatmul.msk.bf16.gmra.mxu3 %vm1400_vm14, %v1371_v62 }
 0x667   : > { %v1358_v21 = vpop.f32.mrf.mxu1 }
 0x668   : > { %v1359_v2 = vadd.f32 %v1820_v1, %v1358_v21 }
 0x66a   : > { %v1368_v27 = vmax.f32 %v1359_v2, 0.0 }
 0x66c   : > { %v1372_v16 = vpack.c.bf16 %v1368_v27, %v1368_v27 }
 0x66e   : > { %1771 = vmatmul.msk.bf16.gmra.mxu3 %vm1400_vm14, %v1372_v16 }
 0x66f   : > { %v1360_v19 = vpop.f32.mrf.mxu1 }
 0x697   : > { %v1422_v30 = vpop.f32.mrf.mxu3 }
 0x698   : > { %v1423_v34 = vadd.f32 %v1821_v3, %v1422_v30 }
 0x69a   : > { %v1441_v12 = vadd.f32 %v1423_v34, %v2377_v57 }
 0x69c   : > { %v1448_v5 = vsel %vm538_vm0, %v1441_v12, 0.0 }
 0x69d   : > { %1449 = vadd.xlane.f32.xlu1 %v1448_v5 }
 0x69f   : > { %v1424_v43 = vpop.f32.mrf.mxu3 }
 0x6a0   : > { %v1425_v35 = vadd.f32 %v1821_v3, %v1424_v43 }
 0x6a2   : > { %v1442_v6 = vadd.f32 %v1425_v35, %v2380_v58 }
 0x6a4   : > { %v1451_v36 = vsel %vm538_vm0, %v1442_v6, 0.0 }
 0x6a5   : > { %1452 = vadd.xlane.f32.xlu0 %v1451_v36 }
 0x6a7   : > { %v1427_v37 = vpop.f32.mrf.mxu3 }
 0x6a8   : > { %v1428_v38 = vadd.f32 %v1821_v3, %v1427_v37 }
 0x6aa   : > { %v1443_v40 = vadd.f32 %v1428_v38, %v2392_v59 }
 0x6ac   : > { %v1454_v10 = vsel %vm538_vm0, %v1443_v40, 0.0 }
 0x6ad   : > { %1455 = vadd.xlane.f32.xlu2 %v1454_v10 }
 0x6af   : > { %v1429_v18 = vpop.f32.mrf.mxu3 }
 0x6b0   : > { %v1430_v44 = vadd.f32 %v1821_v3, %v1429_v18 }
 0x6b2   : > { %v1444_v57 = vadd.f32 %v1430_v44, %v2395_v23 }
 0x6b4   : > { %v1457_v45 = vsel %vm538_vm0, %v1444_v57, 0.0 }
 0x6b5   : > { %1458 = vadd.xlane.f32.xlu1 %v1457_v45 }
 0x6bf   : > { %v1432_v46 = vpop.f32.mrf.mxu3 }
 0x6c0   : > { %v1433_v28 = vadd.f32 %v1821_v3, %v1432_v46 }
 0x6c2   : > { %v1445_v58 = vadd.f32 %v1433_v28, %v2405_v39 }
 0x6c4   : > { %v1460_v49 = vsel %vm538_vm0, %v1445_v58, 0.0 }
 0x6c5   : > { %1461 = vadd.xlane.f32.xlu0 %v1460_v49 }
 0x6c7   : > { %v1434_v32 = vpop.f32.mrf.mxu3 }
 0x6c8   : > { %v1435_v11 = vadd.f32 %v1821_v3, %v1434_v32 }
 0x6ca   : > { %v1446_v59 = vadd.f32 %v1435_v11, %v2408_v8  ;;  %v2511_v11 = vld [vmem:[%s2575_s13] ss:$0 sm:$0xff] }
 0x6cc   : > { %v1463_v50 = vsel %vm538_vm0, %v1446_v59, 0.0 }
 0x6cd   : > { %1464 = vadd.xlane.f32.xlu2 %v1463_v50 }
 0x6f1   : > { %v1437_v53 = vpop.f32.mrf.mxu3 }
 0x6f2   : > { %v1438_v41 = vadd.f32 %v1821_v3, %v1437_v53 }
 0x6f4   : > { %v1447_v23 = vadd.f32 %v1438_v41, %v2420_v55 }
 0x6f6   : > { %v1466_v54 = vsel %vm1139_vm5, %v1447_v23, 0.0 }
 0x6f7   : > { %1467 = vadd.xlane.f32.xlu1 %v1466_v54 }
 0x6f9   : > { %v1439_v51 = vpop.f32.mrf.mxu3 }
 0x710   : > { %v1450_v56 = vpop.xlane.xlu1 %1449 }
 0x711   : > { %v1469_v39 = vmul.f32 %v1450_v56, %v2308_v9 }
 0x713   : > { %v2459_v47 = vsub.f32 %v1441_v12, %v1469_v39 }
 0x715   : > { %v1483_v0 = vmul.f32 %v2459_v47, %v2459_v47 }
 0x717   : > { %v1490_v8 = vsel %vm538_vm0, %v1483_v0, 0.0 }
 0x718   : > { %1491 = vadd.xlane.f32.xlu0 %v1490_v8  ;;  %v1453_v48 = vpop.xlane.xlu0 %1452 }
 0x719   : > { %v1470_v1 = vmul.f32 %v1453_v48, %v2308_v9 }
 0x71b   : > { %v2465_v42 = vsub.f32 %v1442_v6, %v1470_v1 }
 0x71d   : > { %v1484_v55 = vmul.f32 %v2465_v42, %v2465_v42 }
 0x71f   : > { %v1493_v63 = vsel %vm538_vm0, %v1484_v55, 0.0 }
 0x720   : > { %v1456_v4 = vpop.xlane.xlu2 %1455  ;;  %1494 = vadd.xlane.f32.xlu2 %v1493_v63 }
 0x721   : > { %v1471_v25 = vmul.f32 %v1456_v4, %v2308_v9 }
 0x723   : > { %v2471_v29 = vsub.f32 %v1443_v40, %v1471_v25 }
 0x725   : > { %v1485_v31 = vmul.f32 %v2471_v29, %v2471_v29 }
 0x727   : > { %v1496_v24 = vsel %vm538_vm0, %v1485_v31, 0.0 }
 0x728   : > { %v1459_v13 = vpop.xlane.xlu1 %1458  ;;  %1497 = vadd.xlane.f32.xlu1 %v1496_v24 }
 0x729   : > { %v1472_v52 = vmul.f32 %v1459_v13, %v2308_v9 }
 0x72b   : > { %v2477_v14 = vsub.f32 %v1444_v57, %v1472_v52 }
 0x72d   : > { %v1486_v15 = vmul.f32 %v2477_v14, %v2477_v14 }
 0x72f   : > { %v1499_v17 = vsel %vm538_vm0, %v1486_v15, 0.0 }
 0x730   : > { %1500 = vadd.xlane.f32.xlu0 %v1499_v17 }
 0x738   : > { %v1462_v20 = vpop.xlane.xlu0 %1461 }
 0x739   : > { %v1473_v60 = vmul.f32 %v1462_v20, %v2308_v9 }
 0x73b   : > { %v2483_v61 = vsub.f32 %v1445_v58, %v1473_v60  ;;  %v2506_v58 = vld [vmem:[%s2574_s12] ss:$0 sm:$0xff] }
 0x73d   : > { %v1487_v33 = vmul.f32 %v2483_v61, %v2483_v61 }
 0x73f   : > { %v1502_v22 = vsel %vm538_vm0, %v1487_v33, 0.0 }
 0x740   : > { %v1465_v26 = vpop.xlane.xlu2 %1464  ;;  %1503 = vadd.xlane.f32.xlu2 %v1502_v22 }
 0x741   : > { %v1474_v7 = vmul.f32 %v1465_v26, %v2308_v9 }
 0x743   : > { %v2489_v62 = vsub.f32 %v1446_v59, %v1474_v7 }
 0x745   : > { %v1488_v21 = vmul.f32 %v2489_v62, %v2489_v62 }
 0x747   : > { %v1505_v2 = vsel %vm538_vm0, %v1488_v21, 0.0 }
 0x748   : > { %1506 = vadd.xlane.f32.xlu1 %v1505_v2 }
 0x76a   : > { %v1468_v27 = vpop.xlane.xlu1 %1467 }
 0x76b   : > { %v1475_v16 = vmul.f32 %v1468_v27, %v2308_v9 }
 0x76d   : > { %v2495_v19 = vsub.f32 %v1447_v23, %v1475_v16 }
 0x76f   : > { %v1489_v3 = vmul.f32 %v2495_v19, %v2495_v19 }
 0x771   : > { %v1508_v30 = vsel %vm1139_vm5, %v1489_v3, 0.0 }
 0x772   : > { %1509 = vadd.xlane.f32.xlu0 %v1508_v30 }
 0x78b   : > { %v1492_v34 = vpop.xlane.xlu0 %1491 }
 0x78c   : > { %v1511_v12 = vmul.f32 %v1492_v34, %v2308_v9 }
 0x78e   : > { %v1518_v5 = vadd.f32 1e-05, %v1511_v12 }
 0x790   : > { %1896 = vrsqrt.f32 %v1518_v5  ;;  %vm1531_vm1 = vweird.f32 %v1518_v5 }
 0x793   : > { %v1495_v43 = vpop.xlane.xlu2 %1494 }
 0x794   : > { %v1512_v35 = vmul.f32 %v1495_v43, %v2308_v9 }
 0x796   : > { %v1897_v6 = vpop.eup %1896  ;;  %v1519_v36 = vadd.f32 1e-05, %v1512_v35 }
 0x797   : > { %v1526_v37 = vmul.f32 %v1897_v6, %v1518_v5  ;;  %vm1532_vm15 = vweird.f32 %v1897_v6 }
 0x798   : > { %1898 = vrsqrt.f32 %v1519_v36  ;;  %vm1533_vm2 = vmor %vm1531_vm1, %vm1532_vm15  ;;  %vm1541_vm4 = vweird.f32 %v1519_v36 }
 0x799   : > { %v1527_v38 = vmul.f32 %v1897_v6, %v1526_v37 }
 0x79b   : > { %v1528_v40 = vmul.f32 0.5, %v1527_v38  ;;  %v1498_v10 = vpop.xlane.xlu1 %1497 }
 0x79c   : > { %v1513_v18 = vmul.f32 %v1498_v10, %v2308_v9 }
 0x79d   : > { %v1529_v44 = vsub.f32 1.5, %v1528_v40 }
 0x79e   : > { %v1899_v57 = vpop.eup %1898  ;;  %v1520_v45 = vadd.f32 1e-05, %v1513_v18 }
 0x79f   : > { %v1530_v46 = vmul.f32 %v1897_v6, %v1529_v44  ;;  %v1536_v28 = vmul.f32 %v1899_v57, %v1519_v36  ;;  %vm1542_vm3 = vweird.f32 %v1899_v57 }
 0x7a0   : > { %1900 = vrsqrt.f32 %v1520_v45  ;;  %vm1543_vm6 = vmor %vm1541_vm4, %vm1542_vm3  ;;  %vm1551_vm8 = vweird.f32 %v1520_v45 }
 0x7a1   : > { %v1534_v49 = vsel %vm1533_vm2, %v1897_v6, %v1530_v46  ;;  %v1537_v32 = vmul.f32 %v1899_v57, %v1536_v28 }
 0x7a2   : > { %v1595_v59 = vmul.f32 %v1534_v49, %v2459_v47 }
 0x7a3   : > { %v1538_v50 = vmul.f32 0.5, %v1537_v32  ;;  %v1501_v53 = vpop.xlane.xlu0 %1500 }
 0x7a4   : > { %v1605_v41 = vmul.f32 %v2506_v58, %v1595_v59  ;;  %v1514_v23 = vmul.f32 %v1501_v53, %v2308_v9 }
 0x7a5   : > { %v1539_v54 = vsub.f32 1.5, %v1538_v50 }
 0x7a6   : > { %v1901_v51 = vpop.eup %1900  ;;  %v1615_v56 = vadd.f32 %v2511_v11, %v1605_v41  ;;  %v1521_v39 = vadd.f32 1e-05, %v1514_v23 }
 0x7a7   : > { %v1540_v47 = vmul.f32 %v1899_v57, %v1539_v54  ;;  %v1546_v0 = vmul.f32 %v1901_v51, %v1520_v45  ;;  %vm1552_vm7 = vweird.f32 %v1901_v51 }
 0x7a8   : > { %1622 = vst.msk [vmem:[%s2521_s15] sm:$0xff] %vm538_vm0, %v1615_v56  ;;  %1902 = vrsqrt.f32 %v1521_v39  ;;  %vm1553_vm9 = vmor %vm1551_vm8, %vm1552_vm7  ;;  %vm1561_vm11 = vweird.f32 %v1521_v39 }
 0x7a9   : > { %v1544_v8 = vsel %vm1543_vm6, %v1899_v57, %v1540_v47  ;;  %v1547_v48 = vmul.f32 %v1901_v51, %v1546_v0 }
 0x7aa   : > { %v1596_v1 = vmul.f32 %v1544_v8, %v2465_v42 }
 0x7ab   : > { %v1548_v55 = vmul.f32 0.5, %v1547_v48 }
 0x7ac   : > { %v1606_v63 = vmul.f32 %v2506_v58, %v1596_v1 }
 0x7ad   : > { %v1549_v4 = vsub.f32 1.5, %v1548_v55 }
 0x7ae   : > { %v1903_v25 = vpop.eup %1902  ;;  %v1616_v31 = vadd.f32 %v2511_v11, %v1606_v63 }
 0x7af   : > { %v1550_v24 = vmul.f32 %v1901_v51, %v1549_v4  ;;  %v1556_v13 = vmul.f32 %v1903_v25, %v1521_v39  ;;  %vm1562_vm10 = vweird.f32 %v1903_v25 }
 0x7b0   : > { %1623 = vst.msk [vmem:[%s2521_s15 + $0x8] sm:$0xff] %vm538_vm0, %v1616_v31  ;;  %vm1563_vm12 = vmor %vm1561_vm11, %vm1562_vm10 }
 0x7b1   : > { %v1554_v52 = vsel %vm1553_vm9, %v1901_v51, %v1550_v24  ;;  %v1557_v15 = vmul.f32 %v1903_v25, %v1556_v13 }
 0x7b2   : > { %v1597_v17 = vmul.f32 %v1554_v52, %v2471_v29 }
 0x7b3   : > { %v1558_v42 = vmul.f32 0.5, %v1557_v15  ;;  %v1504_v20 = vpop.xlane.xlu2 %1503 }
 0x7b4   : > { %v1607_v60 = vmul.f32 %v2506_v58, %v1597_v17  ;;  %v1515_v33 = vmul.f32 %v1504_v20, %v2308_v9 }
 0x7b5   : > { %v1559_v22 = vsub.f32 1.5, %v1558_v42 }
 0x7b6   : > { %v1617_v26 = vadd.f32 %v2511_v11, %v1607_v60  ;;  %v1522_v7 = vadd.f32 1e-05, %v1515_v33 }
 0x7b7   : > { %v1560_v21 = vmul.f32 %v1903_v25, %v1559_v22 }
 0x7b8   : > { %1624 = vst.msk [vmem:[%s2521_s15 + $0x10] sm:$0xff] %vm538_vm0, %v1617_v26  ;;  %1904 = vrsqrt.f32 %v1522_v7  ;;  %vm1571_vm14 = vweird.f32 %v1522_v7 }
 0x7b9   : > { %v1564_v2 = vsel %vm1563_vm12, %v1903_v25, %v1560_v21 }
 0x7ba   : > { %v1598_v29 = vmul.f32 %v1564_v2, %v2477_v14 }
 0x7bb   : > { %v1507_v27 = vpop.xlane.xlu1 %1506 }
 0x7bc   : > { %v1608_v16 = vmul.f32 %v2506_v58, %v1598_v29  ;;  %v1516_v3 = vmul.f32 %v1507_v27, %v2308_v9 }
 0x7be   : > { %v1905_v30 = vpop.eup %1904  ;;  %v1618_v34 = vadd.f32 %v2511_v11, %v1608_v16  ;;  %v1523_v12 = vadd.f32 1e-05, %v1516_v3 }
 0x7bf   : > { %v1566_v5 = vmul.f32 %v1905_v30, %v1522_v7  ;;  %vm1572_vm13 = vweird.f32 %v1905_v30 }
 0x7c0   : > { %1625 = vst.msk [vmem:[%s2521_s15 + $0x18] sm:$0xff] %vm538_vm0, %v1618_v34  ;;  %1906 = vrsqrt.f32 %v1523_v12  ;;  %vm1573_vm15 = vmor %vm1571_vm14, %vm1572_vm13  ;;  %vm1581_vm2 = vweird.f32 %v1523_v12 }
 0x7c1   : > { %v1567_v43 = vmul.f32 %v1905_v30, %v1566_v5 }
 0x7c3   : > { %v1568_v35 = vmul.f32 0.5, %v1567_v43 }
 0x7c5   : > { %v1569_v6 = vsub.f32 1.5, %v1568_v35 }
 0x7c6   : > { %v1907_v36 = vpop.eup %1906 }
 0x7c7   : > { %v1570_v14 = vmul.f32 %v1905_v30, %v1569_v6  ;;  %v1576_v37 = vmul.f32 %v1907_v36, %v1523_v12  ;;  %vm1582_vm1 = vweird.f32 %v1907_v36 }
 0x7c8   : > { %vm1583_vm3 = vmor %vm1581_vm2, %vm1582_vm1 }
 0x7c9   : > { %v1574_v38 = vsel %vm1573_vm15, %v1905_v30, %v1570_v14  ;;  %v1577_v40 = vmul.f32 %v1907_v36, %v1576_v37 }
 0x7ca   : > { %v1599_v10 = vmul.f32 %v1574_v38, %v2483_v61 }
 0x7cb   : > { %v1578_v18 = vmul.f32 0.5, %v1577_v40 }
 0x7cc   : > { %v1609_v44 = vmul.f32 %v2506_v58, %v1599_v10 }
 0x7cd   : > { %v1579_v57 = vsub.f32 1.5, %v1578_v18 }
 0x7ce   : > { %v1619_v45 = vadd.f32 %v2511_v11, %v1609_v44 }
 0x7cf   : > { %v1580_v46 = vmul.f32 %v1907_v36, %v1579_v57 }
 0x7d0   : > { %1626 = vst.msk [vmem:[%s2521_s15 + $0x20] sm:$0xff] %vm538_vm0, %v1619_v45 }
 0x7d1   : > { %v1584_v28 = vsel %vm1583_vm3, %v1907_v36, %v1580_v46 }
 0x7d2   : > { %v1600_v49 = vmul.f32 %v1584_v28, %v2489_v62 }
 0x7d4   : > { %v1610_v32 = vmul.f32 %v2506_v58, %v1600_v49 }
 0x7d6   : > { %v1620_v59 = vadd.f32 %v2511_v11, %v1610_v32 }
 0x7d8   : > { %1627 = vst.msk [vmem:[%s2521_s15 + $0x28] sm:$0xff] %vm538_vm0, %v1620_v59 }
 0x7e5   : > { %v1510_v61 = vpop.xlane.xlu0 %1509 }
 0x7e6   : > { %v1517_v50 = vmul.f32 %v1510_v61, %v2308_v9 }
 0x7e8   : > { %v1524_v53 = vadd.f32 1e-05, %v1517_v50 }
 0x7ea   : > { %1908 = vrsqrt.f32 %v1524_v53  ;;  %vm1591_vm6 = vweird.f32 %v1524_v53 }
 0x7f0   : > { %v1909_v41 = vpop.eup %1908 }
 0x7f1   : > { %v1586_v23 = vmul.f32 %v1909_v41, %v1524_v53  ;;  %vm1592_vm4 = vweird.f32 %v1909_v41 }
 0x7f2   : > { %vm1593_vm7 = vmor %vm1591_vm6, %vm1592_vm4 }
 0x7f3   : > { %v1587_v54 = vmul.f32 %v1909_v41, %v1586_v23 }
 0x7f5   : > { %v1588_v51 = vmul.f32 0.5, %v1587_v54 }
 0x7f7   : > { %v1589_v56 = vsub.f32 1.5, %v1588_v51 }
 0x7f9   : > { %v1590_v39 = vmul.f32 %v1909_v41, %v1589_v56 }
 0x7fb   : > { %v1594_v62 = vsel %vm1593_vm7, %v1909_v41, %v1590_v39 }
 0x7fc   : > { %v1601_v47 = vmul.f32 %v1594_v62, %v2495_v19 }
 0x7fe   : > { %v1611_v0 = vmul.f32 %v2506_v58, %v1601_v47 }
 0x800   : > { %v1621_v8 = vadd.f32 %v2511_v11, %v1611_v0 }
 0x802   : > { %1628 = vst.msk [vmem:[%s2521_s15 + $0x30] sm:$0x3f] %vm1139_vm5, %v1621_v8 }
 0x803 PF: > { %s24_s29 = sadd.s32 1, %s1916_s29  }
 0x804   : > { %p21_p4 = scmp.ge.s32.totalorder %s24_s29, 4  }
 0x806   :  { %23 = sbr.rel (!%p21_p4) target bundleno = 1 (0x1), region = 109 }

// kernel: mtstrec_forward.7
= control target key start
LH: loop header
LB: loop body
LE: loop exit
PB: predicated region body
PF: predicated region fallthrough
CT: control target
= control target key end

     0   :  { %vm23_vm0 = vcmask 261120   ;;  %vm47_vm1 = vcmask 123904   ;;  %s374_s1 = inlined_call_operand.vmem [shape: f32[5,32,16], index: 1, kind: input, shape index: {}]   ;;  %s375_s0 = inlined_call_operand.vmem [shape: f32[5,2,32], index: 0, kind: input, shape index: {}]   ;;  %s376_s2 = inlined_call_operand.vmem [shape: f32[5,1,16], index: 2, kind: input, shape index: {}]   ;;  %s377_s3 = inlined_call_operand.vmem [shape: f32[5,2,16], index: 3, kind: output, shape index: {}]  }
   0x1   :  { %v18_v0 = vld [vmem:[%s374_s1 + $0x18] sm:$0xff]  ;;  %v17_v1 = vld [vmem:[%s374_s1 + $0x10] sm:$0xff]  ;;  %v16_v5 = vld [vmem:[%s374_s1 + $0x8] sm:$0xff] }
   0x2   :  { %v214_v2 = vld [vmem:[%s374_s1 + $0x58] sm:$0xff]  ;;  %39 = vmatpush.msra.mxu0 %v18_v0  ;;  %v213_v4 = vld [vmem:[%s374_s1 + $0x50] sm:$0xff]  ;;  %v212_v7 = vld [vmem:[%s374_s1 + $0x48] sm:$0xff] }
   0x3   :  { %113 = vmatpush.msra.mxu2 %v214_v2  ;;  %v222_v3 = vld [vmem:[%s374_s1 + $0x78] sm:$0xff]  ;;  %v221_v6 = vld [vmem:[%s374_s1 + $0x70] sm:$0xff]  ;;  %v220_v8 = vld [vmem:[%s374_s1 + $0x68] sm:$0xff] }
   0x4   :  { %150 = vmatpush.msra.mxu3 %v222_v3  ;;  %40 = vmatpush.msra.mxu0 %v17_v1  ;;  %v15_v9 = vld [vmem:[%s374_s1] sm:$0xff]  ;;  %v206_v10 = vld [vmem:[%s374_s1 + $0x38] sm:$0xff]  ;;  %v205_v17 = vld [vmem:[%s374_s1 + $0x30] sm:$0xff] }
   0x5   :  { %114 = vmatpush.msra.mxu2 %v213_v4  ;;  %v211_v11 = vld [vmem:[%s374_s1 + $0x40] sm:$0xff]  ;;  %v230_v14 = vld [vmem:[%s374_s1 + $0x98] sm:$0xff]  ;;  %76 = vmatpush.msra.mxu1 %v206_v10  ;;  %v229_v18 = vld [vmem:[%s374_s1 + $0x90] sm:$0xff] }
   0x6   :  { %151 = vmatpush.msra.mxu3 %v221_v6  ;;  %41 = vmatpush.msra.mxu0 %v16_v5  ;;  %v14_v12 = vld [vmem:[%s375_s0] sm:$0x3]  ;;  %v210_v15 = vld [vmem:[%s375_s0 + $0x4] sm:$0x3]  ;;  %v218_v16 = vld [vmem:[%s375_s0 + $0x6] sm:$0x3] }
   0x7   :  { %115 = vmatpush.msra.mxu2 %v212_v7  ;;  %v219_v13 = vld [vmem:[%s374_s1 + $0x60] sm:$0xff]  ;;  %v204_v19 = vld [vmem:[%s374_s1 + $0x28] sm:$0xff]  ;;  %77 = vmatpush.msra.mxu1 %v205_v17 }
   0x8   :  { %152 = vmatpush.msra.mxu3 %v220_v8  ;;  %42 = vmatpush.msra.mxu0 %v15_v9  ;;  %v228_v20 = vld [vmem:[%s374_s1 + $0x88] sm:$0xff]  ;;  %v203_v21 = vld [vmem:[%s374_s1 + $0x20] sm:$0xff] }
   0x9   :  { %116 = vmatpush.msra.mxu2 %v211_v11  ;;  %201 = vmatmul.msk.f32.vlgmr.msra.gmra.mxu0 %vm23_vm0, %v14_v12  ;;  %v227_v22 = vld [vmem:[%s374_s1 + $0x80] sm:$0xff]  ;;  %v226_v24 = vld [vmem:[%s375_s0 + $0x8] sm:$0x3] }
   0xa   :  { %153 = vmatpush.msra.mxu3 %v219_v13  ;;  %187 = vmatpush.msrb.mxu0 %v230_v14  ;;  %v202_v23 = vld [vmem:[%s375_s0 + $0x2] sm:$0x3]  ;;  %v234_v25 = vld [vmem:[%s376_s2] ss:$0 sm:$0xff]  ;;  %v235_v28 = vld [vmem:[%s376_s2 + $0x1] ss:$0 sm:$0xff] }
   0xb   :  { %216 = vmatmul.msk.f32.vlgmr.msra.gmra.mxu2 %vm23_vm0, %v210_v15  ;;  %224 = vmatmul.msk.f32.vlgmr.msra.gmra.mxu3 %vm23_vm0, %v218_v16  ;;  %v236_v29 = vld [vmem:[%s376_s2 + $0x2] ss:$0 sm:$0xff]  ;;  %v237_v30 = vld [vmem:[%s376_s2 + $0x3] ss:$0 sm:$0xff]  ;;  %v238_v31 = vld [vmem:[%s376_s2 + $0x4] ss:$0 sm:$0xff] }
   0xc   :  { %188 = vmatpush.msrb.mxu0 %v229_v18  ;;  %78 = vmatpush.msra.mxu1 %v204_v19 }
   0xe   :  { %189 = vmatpush.msrb.mxu0 %v228_v20  ;;  %79 = vmatpush.msra.mxu1 %v203_v21 }
   0xf   :  { %208 = vmatmul.msk.f32.vlgmr.msra.gmra.mxu1 %vm23_vm0, %v202_v23 }
  0x10   :  { %190 = vmatpush.msrb.mxu0 %v227_v22 }
  0x11   :  { %232 = vmatmul.msk.f32.vlgmr.msrb.gmra.mxu0 %vm23_vm0, %v226_v24 }
  0x86   :  { %v44_v26 = vpop.f32.mrf.mxu0 }
  0x87   :  { %v45_v27 = vadd.f32 %v234_v25, %v44_v26 }
  0x89   :  { %48 = vst.msk [vmem:[%s377_s3] sm:$0x3] %vm47_vm1, %v45_v27 }
  0x8c   :  { %v81_v32 = vpop.f32.mrf.mxu1 }
  0x8d   :  { %v82_v34 = vadd.f32 %v235_v28, %v81_v32 }
  0x8e   :  { %v118_v33 = vpop.f32.mrf.mxu2  ;;  %v155_v36 = vpop.f32.mrf.mxu3 }
  0x8f   :  { %v119_v35 = vadd.f32 %v236_v29, %v118_v33  ;;  %v192_v37 = vpop.f32.mrf.mxu0  ;;  %v156_v38 = vadd.f32 %v237_v30, %v155_v36  ;;  %209 = vst.msk [vmem:[%s377_s3 + $0x2] sm:$0x3] %vm47_vm1, %v82_v34 }
  0x90   :  { %v193_v39 = vadd.f32 %v238_v31, %v192_v37 }
  0x91   :  { %217 = vst.msk [vmem:[%s377_s3 + $0x4] sm:$0x3] %vm47_vm1, %v119_v35 }
  0x92   :  { %225 = vst.msk [vmem:[%s377_s3 + $0x6] sm:$0x3] %vm47_vm1, %v156_v38 }
  0x93   :  { %233 = vst.msk [vmem:[%s377_s3 + $0x8] sm:$0x3] %vm47_vm1, %v193_v39 }

</bundles_post_ra>
